<compile_context>
chip_gen: v7x
topology: tpu7x:2x2x1
jax: 0.10.0
libtpu: 0.0.40
codegen_flags: <defaults>
</compile_context>

<pallas_src>
import functools

import numpy as np
import jax
import jax.numpy as jnp
from jax.experimental import pallas as pl
from jax.experimental.pallas import tpu as pltpu

EPS = 1e-5
HIGHEST = jax.lax.Precision.HIGHEST


def _bilinear_matrix(in_size: int, out_size: int) -> np.ndarray:
    """Interpolation matrix A (out_size, in_size) for align_corners=True bilinear resize."""
    A = np.zeros((out_size, in_size), dtype=np.float32)
    if out_size == 1:
        A[0, 0] = 1.0
        return A
    scale = (in_size - 1) / (out_size - 1)
    for p in range(out_size):
        src = p * scale
        i0 = min(int(np.floor(src)), in_size - 1)
        i1 = min(i0 + 1, in_size - 1)
        frac = src - i0
        A[p, i0] += 1.0 - frac
        A[p, i1] += frac
    return A


def _decoder_block_kernel(xw_ref, ah_ref, bmatw_ref, grp_ref, grpT_ref,
                          gamma_row_ref, beta_row_ref, o_ref, u_ref, *,
                          B, H, H_up, C_out, W_up, conv_precision):
    # xw_ref        : (B*H, C_in*W)           VMEM  B images, x transposed to (H, C_in, W) & flattened
    # ah_ref        : (3, H_up, H)            VMEM  ah_pad[dy:dy+H_up, :] per conv-row offset dy
    # bmatw_ref     : (C_in*W, 3*C_out*W_up)  VMEM  conv weight folded with padded bilinear W-matrix
    # grp_ref       : (C_out*W_up, C_out)     VMEM  0/1 channel-grouping matrix (per-channel sums)
    # grpT_ref      : (C_out, C_out*W_up)     VMEM  its transpose (per-channel -> lane broadcast)
    # gamma_row_ref : (1, C_out*W_up)         VMEM  InstanceNorm weight, lane-dense (repeated W_up)
    # beta_row_ref  : (1, C_out*W_up)         VMEM  InstanceNorm bias,  lane-dense
    # o_ref         : (B*H_up, C_out*W_up)    VMEM  lane-dense output slab
    # u_ref         : (B*H, 3*C_out*W_up)     VMEM  scratch for the first-stage result
    Cw = C_out * W_up
    inv_hw = 1.0 / float(H_up * W_up)

    # --- stage 1: W-upsample + 3x3 conv folded, weight-stationary, all B*H rows at once ---
    u_ref[...] = jnp.dot(xw_ref[...], bmatw_ref[...],
                         preferred_element_type=jnp.float32,
                         precision=conv_precision)                      # (B*H, 3*Cw)

    ah0 = ah_ref[0]                                                     # (H_up, H)
    ah1 = ah_ref[1]
    ah2 = ah_ref[2]
    grp = grp_ref[...]
    grpT = grpT_ref[...]
    gamma_row = gamma_row_ref[...]
    beta_row = beta_row_ref[...]

    # --- stage 2 (per image): H-upsample accumulation + InstanceNorm + ReLU ---
    for b in range(B):                                 # B is small & static -> unrolled
        r0, r1 = b * H, (b + 1) * H
        acc = jnp.dot(ah0, u_ref[r0:r1, 0:Cw],
                      preferred_element_type=jnp.float32, precision=conv_precision)
        acc = acc + jnp.dot(ah1, u_ref[r0:r1, Cw:2 * Cw],
                            preferred_element_type=jnp.float32, precision=conv_precision)
        acc = acc + jnp.dot(ah2, u_ref[r0:r1, 2 * Cw:3 * Cw],
                            preferred_element_type=jnp.float32, precision=conv_precision)
        # acc: (H_up, Cw) conv output.  Conv bias intentionally omitted (cancelled by the
        # InstanceNorm mean subtraction).

        # InstanceNorm2d stats (biased variance), packed into two tiny exact dots.
        col_sum = jnp.sum(acc, axis=0, keepdims=True)                   # (1, Cw)
        col_sq = jnp.sum(acc * acc, axis=0, keepdims=True)              # (1, Cw)
        stats = jnp.concatenate([col_sum, col_sq], axis=0)              # (2, Cw)
        stats_ch = jnp.dot(stats, grp,
                           preferred_element_type=jnp.float32, precision=HIGHEST)  # (2, C_out)
        mean = stats_ch[0:1, :] * inv_hw
        ex2 = stats_ch[1:2, :] * inv_hw
        var = ex2 - mean * mean                                         # biased variance
        invstd = jax.lax.rsqrt(var + EPS)
        rows = jnp.dot(jnp.concatenate([mean, invstd], axis=0), grpT,
                       preferred_element_type=jnp.float32, precision=HIGHEST)      # (2, Cw)
        mean_row = rows[0:1, :]
        invstd_row = rows[1:2, :]

        scale_row = gamma_row * invstd_row
        shift_row = beta_row - mean_row * scale_row
        y = jnp.maximum(acc * scale_row + shift_row, 0.0)               # affine + ReLU
        # Dropout2d: identity in eval mode.
        o_ref[b * H_up:(b + 1) * H_up, :] = y.astype(o_ref.dtype)


def clean_decoder_block(x, w, b, gamma, beta, upsample_scale=2,
                        conv_precision=None, max_block_batch=8):
    """x: (N, C_in, H, W); w: (C_out, C_in, 3, 3); b/gamma/beta: (C_out,). Returns NCHW."""
    N, C_in, H, W = x.shape
    C_out = w.shape[0]
    H_up, W_up = H * upsample_scale, W * upsample_scale
    Cw = C_out * W_up

    # ---- host-side parameter folding (numpy: exact, no device-precision surprises) ----
    ah_pad = np.pad(_bilinear_matrix(H, H_up), ((1, 1), (0, 0)))         # (H_up+2, H) zero rows = conv pad
    aw_pad = np.pad(_bilinear_matrix(W, W_up), ((1, 1), (0, 0)))         # (W_up+2, W)
    ah_win = np.stack([ah_pad[dy:dy + H_up, :] for dy in range(3)])      # (3, H_up, H)
    aw_win = np.stack([aw_pad[dx:dx + W_up, :] for dx in range(3)])      # (3, W_up, W)

    w_np = np.asarray(w, dtype=np.float32)
    # bmat[dy, ci*W + w_in, co*W_up + q] = sum_dx w[co, ci, dy, dx] * aw_pad[q + dx, w_in]
    bmat = np.einsum("oiyx,xqw->yiwoq", w_np, aw_win).reshape(3, C_in * W, Cw)
    # dy folded onto the output axis -> one weight-stationary matmul, lane slices per dy.
    bmat_wide = bmat.transpose(1, 0, 2).reshape(C_in * W, 3 * Cw).astype(np.float32)

    # 0/1 channel-grouping matrix for per-channel reductions / broadcasts.
    grp = np.kron(np.eye(C_out, dtype=np.float32),
                  np.ones((W_up, 1), dtype=np.float32))                  # (Cw, C_out)

    # gamma/beta pre-broadcast to lane-dense rows (gamma_row[co*W_up + q] = gamma[co]).
    gamma_row = np.repeat(np.asarray(gamma, dtype=np.float32), W_up).reshape(1, Cw)
    beta_row = np.repeat(np.asarray(beta, dtype=np.float32), W_up).reshape(1, Cw)

    # NOTE: conv bias `b` is not passed to the kernel (cancelled by InstanceNorm mean subtraction).

    # Block B images per grid step (largest divisor of N up to max_block_batch).
    B = 1
    for cand in range(min(N, max_block_batch), 0, -1):
        if N % cand == 0:
            B = cand
            break

    # x: NCHW -> (N*H, C_in*W)  (lane-friendly layout; done outside the kernel)
    xw = jnp.transpose(x, (0, 2, 1, 3)).reshape(N * H, C_in * W)

    kernel = functools.partial(_decoder_block_kernel, B=B, H=H, H_up=H_up,
                               C_out=C_out, W_up=W_up, conv_precision=conv_precision)

    out_flat = pl.pallas_call(
        kernel,
        out_shape=jax.ShapeDtypeStruct((N * H_up, Cw), x.dtype),
        grid=(N // B,),
        in_specs=[
            pl.BlockSpec((B * H, C_in * W), lambda g: (g, 0)),           # xw (per batch block)
            pl.BlockSpec((3, H_up, H), lambda g: (0, 0, 0)),             # ah_win (invariant)
            pl.BlockSpec((C_in * W, 3 * Cw), lambda g: (0, 0)),          # bmat_wide (invariant)
            pl.BlockSpec((Cw, C_out), lambda g: (0, 0)),                 # grp
            pl.BlockSpec((C_out, Cw), lambda g: (0, 0)),                 # grp^T
            pl.BlockSpec((1, Cw), lambda g: (0, 0)),                     # gamma_row
            pl.BlockSpec((1, Cw), lambda g: (0, 0)),                     # beta_row
        ],
        out_specs=pl.BlockSpec((B * H_up, Cw), lambda g: (g, 0)),
        scratch_shapes=[pltpu.VMEM((B * H, 3 * Cw), jnp.float32)],       # staging for U
        compiler_params=pltpu.CompilerParams(dimension_semantics=("parallel",)),
    )(xw, jnp.asarray(ah_win), jnp.asarray(bmat_wide), jnp.asarray(grp),
      jnp.asarray(np.ascontiguousarray(grp.T)), jnp.asarray(gamma_row), jnp.asarray(beta_row))

    # (N*H_up, C_out*W_up) -> (N, C_out, H_up, W_up)  (layout plumbing outside the kernel)
    return out_flat.reshape(N, H_up, C_out, W_up).transpose(0, 2, 1, 3)


def reference(x, ah_pad, aw_pad, w, b, gamma, beta):
    """Pure-JAX f32 reference of the same forward pass (eval mode)."""
    up = jnp.einsum("ph,nchw,qw->ncpq", ah_pad, x, aw_pad, precision=HIGHEST)
    out = jax.lax.conv_general_dilated(
        up, w, window_strides=(1, 1), padding="VALID",
        dimension_numbers=("NCHW", "OIHW", "NCHW"), precision=HIGHEST)
    out = out + b[None, :, None, None]
    mean = out.mean(axis=(2, 3), keepdims=True)
    var = ((out - mean) ** 2).mean(axis=(2, 3), keepdims=True)
    y = (out - mean) / jnp.sqrt(var + EPS)
    y = y * gamma[None, :, None, None] + beta[None, :, None, None]
    return jnp.maximum(y, 0.0)


if __name__ == "__main__":
    N, C_in, C_out, H, W = 2, 4, 8, 16, 16
    scale = 2
    H_up, W_up = H * scale, W * scale

    key = jax.random.PRNGKey(0)
    k1, k2, k3, k4, k5 = jax.random.split(key, 5)
    x = jax.random.normal(k1, (N, C_in, H, W), jnp.float32)
    w = jax.random.normal(k2, (C_out, C_in, 3, 3), jnp.float32) * 0.1   # Conv2d weight
    b = jax.random.normal(k3, (C_out,), jnp.float32) * 0.1              # Conv2d bias
    gamma = 1.0 + 0.1 * jax.random.normal(k4, (C_out,), jnp.float32)    # InstanceNorm weight
    beta = 0.1 * jax.random.normal(k5, (C_out,), jnp.float32)           # InstanceNorm bias

    ah_pad = jnp.asarray(np.pad(_bilinear_matrix(H, H_up), ((1, 1), (0, 0))))
    aw_pad = jnp.asarray(np.pad(_bilinear_matrix(W, W_up), ((1, 1), (0, 0))))
    ref = reference(x, ah_pad, aw_pad, w, b, gamma, beta)

    # Exact path (HIGHEST on every dot): tight tolerance against the f32 reference.
    out_hi = jax.block_until_ready(
        clean_decoder_block(x, w, b, gamma, beta, upsample_scale=scale, conv_precision=HIGHEST))
    assert out_hi.shape == (N, C_out, H_up, W_up), out_hi.shape
    err_hi = float(jnp.max(jnp.abs(out_hi - ref)))
    assert err_hi < 1e-3, f"HIGHEST-path max abs error too large: {err_hi}"

    # Production path (DEFAULT precision on the conv dots = single bf16 MXU pass);
    # looser tolerance consistent with bf16 contraction, stats math stays exact.
    out = jax.block_until_ready(
        clean_decoder_block(x, w, b, gamma, beta, upsample_scale=scale, conv_precision=None))
    assert out.shape == (N, C_out, H_up, W_up), out.shape
    err = float(jnp.max(jnp.abs(out - ref)))
    assert err < 5e-2, f"DEFAULT-path max abs error too large: {err}"

    print("KERNEL_OK")
</pallas_src>

<mosaic_0001>
module attributes {stable_mosaic.version = 11 : i64} {
  func.func @_decoder_block_kernel(%arg0: i32, %arg1: memref<32x64xf32, #tpu.memory_space<vmem>>, %arg2: memref<3x32x16xf32, #tpu.memory_space<vmem>>, %arg3: memref<64x768xf32, #tpu.memory_space<vmem>>, %arg4: memref<256x8xf32, #tpu.memory_space<vmem>>, %arg5: memref<8x256xf32, #tpu.memory_space<vmem>>, %arg6: memref<1x256xf32, #tpu.memory_space<vmem>>, %arg7: memref<1x256xf32, #tpu.memory_space<vmem>>, %arg8: memref<64x256xf32, #tpu.memory_space<vmem>>, %arg9: memref<32x768xf32, #tpu.memory_space<vmem>>) attributes {dimension_semantics = [#tpu.dimension_semantics<parallel>], iteration_bounds = array<i64: 1>, scalar_prefetch = 0 : i64, scratch_operands = 1 : i64, tpu.core_type = #tpu.core_type<tc>, window_params = [{transform_indices = @transform_0, window_bounds = array<i64: 32, 64>}, {pipeline_mode = #tpu.pipeline_mode<synchronous>, transform_indices = @transform_1, window_bounds = array<i64: 3, 32, 16>}, {pipeline_mode = #tpu.pipeline_mode<synchronous>, transform_indices = @transform_2, window_bounds = array<i64: 64, 768>}, {pipeline_mode = #tpu.pipeline_mode<synchronous>, transform_indices = @transform_3, window_bounds = array<i64: 256, 8>}, {pipeline_mode = #tpu.pipeline_mode<synchronous>, transform_indices = @transform_4, window_bounds = array<i64: 8, 256>}, {pipeline_mode = #tpu.pipeline_mode<synchronous>, transform_indices = @transform_5, window_bounds = array<i64: 1, 256>}, {pipeline_mode = #tpu.pipeline_mode<synchronous>, transform_indices = @transform_6, window_bounds = array<i64: 1, 256>}, {transform_indices = @transform_7, window_bounds = array<i64: 64, 256>}]} {
    %c0 = arith.constant 0 : index
    %c0_0 = arith.constant 0 : index
    %0 = vector.load %arg1[%c0, %c0_0] : memref<32x64xf32, #tpu.memory_space<vmem>>, vector<32x64xf32>
    %c0_1 = arith.constant 0 : index
    %c0_2 = arith.constant 0 : index
    %1 = vector.load %arg3[%c0_1, %c0_2] : memref<64x768xf32, #tpu.memory_space<vmem>>, vector<64x768xf32>
    %cst = arith.constant dense<0.000000e+00> : vector<32x768xf32>
    %2 = tpu.matmul %0, %1, %cst {dimension_numbers = #tpu.dot_dimension_numbers<[1], [0], [0], [1], [0, 0, 1, 1], [], []>, precision = #tpu.contract_precision<fp32>} : vector<32x64xf32>, vector<64x768xf32>, vector<32x768xf32> -> vector<32x768xf32>
    %c0_3 = arith.constant 0 : index
    %c0_4 = arith.constant 0 : index
    %3 = vector.load %arg9[%c0_3, %c0_4] : memref<32x768xf32, #tpu.memory_space<vmem>>, vector<32x768xf32>
    tpu.vector_store %arg9[%c0_3, %c0_4], %2 {strides = array<i32>} : memref<32x768xf32, #tpu.memory_space<vmem>>, vector<32x768xf32>,
    %c0_5 = arith.constant 0 : index
    %c0_6 = arith.constant 0 : index
    %c0_7 = arith.constant 0 : index
    %4 = vector.load %arg2[%c0_5, %c0_6, %c0_7] : memref<3x32x16xf32, #tpu.memory_space<vmem>>, vector<1x32x16xf32>
    %5 = vector.shape_cast %4 : vector<1x32x16xf32> to vector<32x16xf32>
    %c1 = arith.constant 1 : index
    %c0_8 = arith.constant 0 : index
    %c0_9 = arith.constant 0 : index
    %6 = vector.load %arg2[%c1, %c0_8, %c0_9] : memref<3x32x16xf32, #tpu.memory_space<vmem>>, vector<1x32x16xf32>
    %7 = vector.shape_cast %6 : vector<1x32x16xf32> to vector<32x16xf32>
    %c2 = arith.constant 2 : index
    %c0_10 = arith.constant 0 : index
    %c0_11 = arith.constant 0 : index
    %8 = vector.load %arg2[%c2, %c0_10, %c0_11] : memref<3x32x16xf32, #tpu.memory_space<vmem>>, vector<1x32x16xf32>
    %9 = vector.shape_cast %8 : vector<1x32x16xf32> to vector<32x16xf32>
    %c0_12 = arith.constant 0 : index
    %c0_13 = arith.constant 0 : index
    %10 = vector.load %arg4[%c0_12, %c0_13] : memref<256x8xf32, #tpu.memory_space<vmem>>, vector<256x8xf32>
    %c0_14 = arith.constant 0 : index
    %c0_15 = arith.constant 0 : index
    %11 = vector.load %arg5[%c0_14, %c0_15] : memref<8x256xf32, #tpu.memory_space<vmem>>, vector<8x256xf32>
    %c0_16 = arith.constant 0 : index
    %c0_17 = arith.constant 0 : index
    %12 = vector.load %arg6[%c0_16, %c0_17] : memref<1x256xf32, #tpu.memory_space<vmem>>, vector<1x256xf32>
    %c0_18 = arith.constant 0 : index
    %c0_19 = arith.constant 0 : index
    %13 = vector.load %arg7[%c0_18, %c0_19] : memref<1x256xf32, #tpu.memory_space<vmem>>, vector<1x256xf32>
    %c0_20 = arith.constant 0 : index
    %c0_21 = arith.constant 0 : index
    %14 = vector.load %arg9[%c0_20, %c0_21] : memref<32x768xf32, #tpu.memory_space<vmem>>, vector<16x256xf32>
    %cst_22 = arith.constant dense<0.000000e+00> : vector<32x256xf32>
    %15 = tpu.matmul %5, %14, %cst_22 {dimension_numbers = #tpu.dot_dimension_numbers<[1], [0], [0], [1], [0, 0, 1, 1], [], []>, precision = #tpu.contract_precision<fp32>} : vector<32x16xf32>, vector<16x256xf32>, vector<32x256xf32> -> vector<32x256xf32>
    %c0_23 = arith.constant 0 : index
    %c256 = arith.constant 256 : index
    %16 = vector.load %arg9[%c0_23, %c256] : memref<32x768xf32, #tpu.memory_space<vmem>>, vector<16x256xf32>
    %cst_24 = arith.constant dense<0.000000e+00> : vector<32x256xf32>
    %17 = tpu.matmul %7, %16, %cst_24 {dimension_numbers = #tpu.dot_dimension_numbers<[1], [0], [0], [1], [0, 0, 1, 1], [], []>, precision = #tpu.contract_precision<fp32>} : vector<32x16xf32>, vector<16x256xf32>, vector<32x256xf32> -> vector<32x256xf32>
    %18 = arith.addf %15, %17 : vector<32x256xf32>
    %c0_25 = arith.constant 0 : index
    %c512 = arith.constant 512 : index
    %19 = vector.load %arg9[%c0_25, %c512] : memref<32x768xf32, #tpu.memory_space<vmem>>, vector<16x256xf32>
    %cst_26 = arith.constant dense<0.000000e+00> : vector<32x256xf32>
    %20 = tpu.matmul %9, %19, %cst_26 {dimension_numbers = #tpu.dot_dimension_numbers<[1], [0], [0], [1], [0, 0, 1, 1], [], []>, precision = #tpu.contract_precision<fp32>} : vector<32x16xf32>, vector<16x256xf32>, vector<32x256xf32> -> vector<32x256xf32>
    %21 = arith.addf %18, %20 : vector<32x256xf32>
    %cst_27 = arith.constant dense<0.000000e+00> : vector<256xf32>
    %22 = vector.multi_reduction <add>, %21, %cst_27 [0] : vector<32x256xf32> to vector<256xf32>
    %23 = vector.shape_cast %22 : vector<256xf32> to vector<1x256xf32>
    %24 = arith.mulf %21, %21 : vector<32x256xf32>
    %cst_28 = arith.constant dense<0.000000e+00> : vector<256xf32>
    %25 = vector.multi_reduction <add>, %24, %cst_28 [0] : vector<32x256xf32> to vector<256xf32>
    %26 = vector.shape_cast %25 : vector<256xf32> to vector<1x256xf32>
    %27 = tpu.concatenate %23, %26 in 0 : vector<1x256xf32>, vector<1x256xf32> -> vector<2x256xf32>
    %cst_29 = arith.constant dense<0.000000e+00> : vector<2x8xf32>
    %28 = tpu.matmul %27, %10, %cst_29 {dimension_numbers = #tpu.dot_dimension_numbers<[1], [0], [0], [1], [0, 0, 1, 1], [], []>, precision = #tpu.contract_precision<fp32>} : vector<2x256xf32>, vector<256x8xf32>, vector<2x8xf32> -> vector<2x8xf32>
    %29 = vector.extract_strided_slice %28 {offsets = [0, 0], sizes = [1, 8], strides = [1, 1]} : vector<2x8xf32> to vector<1x8xf32>
    %cst_30 = arith.constant 9.765625E-4 : f32
    %30 = vector.broadcast %cst_30 : f32 to vector<1x8xf32>
    %31 = arith.mulf %29, %30 : vector<1x8xf32>
    %32 = vector.extract_strided_slice %28 {offsets = [1, 0], sizes = [1, 8], strides = [1, 1]} : vector<2x8xf32> to vector<1x8xf32>
    %cst_31 = arith.constant 9.765625E-4 : f32
    %33 = vector.broadcast %cst_31 : f32 to vector<1x8xf32>
    %34 = arith.mulf %32, %33 : vector<1x8xf32>
    %35 = arith.mulf %31, %31 : vector<1x8xf32>
    %36 = arith.subf %34, %35 : vector<1x8xf32>
    %cst_32 = arith.constant 9.99999974E-6 : f32
    %37 = vector.broadcast %cst_32 : f32 to vector<1x8xf32>
    %38 = arith.addf %36, %37 : vector<1x8xf32>
    %39 = math.rsqrt %38 : vector<1x8xf32>
    %40 = tpu.concatenate %31, %39 in 0 : vector<1x8xf32>, vector<1x8xf32> -> vector<2x8xf32>
    %cst_33 = arith.constant dense<0.000000e+00> : vector<2x256xf32>
    %41 = tpu.matmul %40, %11, %cst_33 {dimension_numbers = #tpu.dot_dimension_numbers<[1], [0], [0], [1], [0, 0, 1, 1], [], []>, precision = #tpu.contract_precision<fp32>} : vector<2x8xf32>, vector<8x256xf32>, vector<2x256xf32> -> vector<2x256xf32>
    %42 = vector.extract_strided_slice %41 {offsets = [0, 0], sizes = [1, 256], strides = [1, 1]} : vector<2x256xf32> to vector<1x256xf32>
    %43 = vector.extract_strided_slice %41 {offsets = [1, 0], sizes = [1, 256], strides = [1, 1]} : vector<2x256xf32> to vector<1x256xf32>
    %44 = arith.mulf %12, %43 : vector<1x256xf32>
    %45 = arith.mulf %42, %44 : vector<1x256xf32>
    %46 = arith.subf %13, %45 : vector<1x256xf32>
    %47 = vector.broadcast %44 : vector<1x256xf32> to vector<32x256xf32>
    %48 = arith.mulf %21, %47 : vector<32x256xf32>
    %49 = vector.broadcast %46 : vector<1x256xf32> to vector<32x256xf32>
    %50 = arith.addf %48, %49 : vector<32x256xf32>
    %cst_34 = arith.constant 0.000000e+00 : f32
    %51 = vector.broadcast %cst_34 : f32 to vector<32x256xf32>
    %52 = arith.maximumf %50, %51 : vector<32x256xf32>
    %c0_35 = arith.constant 0 : index
    %c0_36 = arith.constant 0 : index
    %53 = vector.load %arg8[%c0_35, %c0_36] : memref<64x256xf32, #tpu.memory_space<vmem>>, vector<32x256xf32>
    tpu.vector_store %arg8[%c0_35, %c0_36], %52 {strides = array<i32>} : memref<64x256xf32, #tpu.memory_space<vmem>>, vector<32x256xf32>,
    %c16 = arith.constant 16 : index
    %c0_37 = arith.constant 0 : index
    %54 = vector.load %arg9[%c16, %c0_37] : memref<32x768xf32, #tpu.memory_space<vmem>>, vector<16x256xf32>
    %cst_38 = arith.constant dense<0.000000e+00> : vector<32x256xf32>
    %55 = tpu.matmul %5, %54, %cst_38 {dimension_numbers = #tpu.dot_dimension_numbers<[1], [0], [0], [1], [0, 0, 1, 1], [], []>, precision = #tpu.contract_precision<fp32>} : vector<32x16xf32>, vector<16x256xf32>, vector<32x256xf32> -> vector<32x256xf32>
    %c16_39 = arith.constant 16 : index
    %c256_40 = arith.constant 256 : index
    %56 = vector.load %arg9[%c16_39, %c256_40] : memref<32x768xf32, #tpu.memory_space<vmem>>, vector<16x256xf32>
    %cst_41 = arith.constant dense<0.000000e+00> : vector<32x256xf32>
    %57 = tpu.matmul %7, %56, %cst_41 {dimension_numbers = #tpu.dot_dimension_numbers<[1], [0], [0], [1], [0, 0, 1, 1], [], []>, precision = #tpu.contract_precision<fp32>} : vector<32x16xf32>, vector<16x256xf32>, vector<32x256xf32> -> vector<32x256xf32>
    %58 = arith.addf %55, %57 : vector<32x256xf32>
    %c16_42 = arith.constant 16 : index
    %c512_43 = arith.constant 512 : index
    %59 = vector.load %arg9[%c16_42, %c512_43] : memref<32x768xf32, #tpu.memory_space<vmem>>, vector<16x256xf32>
    %cst_44 = arith.constant dense<0.000000e+00> : vector<32x256xf32>
    %60 = tpu.matmul %9, %59, %cst_44 {dimension_numbers = #tpu.dot_dimension_numbers<[1], [0], [0], [1], [0, 0, 1, 1], [], []>, precision = #tpu.contract_precision<fp32>} : vector<32x16xf32>, vector<16x256xf32>, vector<32x256xf32> -> vector<32x256xf32>
    %61 = arith.addf %58, %60 : vector<32x256xf32>
    %cst_45 = arith.constant dense<0.000000e+00> : vector<256xf32>
    %62 = vector.multi_reduction <add>, %61, %cst_45 [0] : vector<32x256xf32> to vector<256xf32>
    %63 = vector.shape_cast %62 : vector<256xf32> to vector<1x256xf32>
    %64 = arith.mulf %61, %61 : vector<32x256xf32>
    %cst_46 = arith.constant dense<0.000000e+00> : vector<256xf32>
    %65 = vector.multi_reduction <add>, %64, %cst_46 [0] : vector<32x256xf32> to vector<256xf32>
    %66 = vector.shape_cast %65 : vector<256xf32> to vector<1x256xf32>
    %67 = tpu.concatenate %63, %66 in 0 : vector<1x256xf32>, vector<1x256xf32> -> vector<2x256xf32>
    %cst_47 = arith.constant dense<0.000000e+00> : vector<2x8xf32>
    %68 = tpu.matmul %67, %10, %cst_47 {dimension_numbers = #tpu.dot_dimension_numbers<[1], [0], [0], [1], [0, 0, 1, 1], [], []>, precision = #tpu.contract_precision<fp32>} : vector<2x256xf32>, vector<256x8xf32>, vector<2x8xf32> -> vector<2x8xf32>
    %69 = vector.extract_strided_slice %68 {offsets = [0, 0], sizes = [1, 8], strides = [1, 1]} : vector<2x8xf32> to vector<1x8xf32>
    %cst_48 = arith.constant 9.765625E-4 : f32
    %70 = vector.broadcast %cst_48 : f32 to vector<1x8xf32>
    %71 = arith.mulf %69, %70 : vector<1x8xf32>
    %72 = vector.extract_strided_slice %68 {offsets = [1, 0], sizes = [1, 8], strides = [1, 1]} : vector<2x8xf32> to vector<1x8xf32>
    %cst_49 = arith.constant 9.765625E-4 : f32
    %73 = vector.broadcast %cst_49 : f32 to vector<1x8xf32>
    %74 = arith.mulf %72, %73 : vector<1x8xf32>
    %75 = arith.mulf %71, %71 : vector<1x8xf32>
    %76 = arith.subf %74, %75 : vector<1x8xf32>
    %cst_50 = arith.constant 9.99999974E-6 : f32
    %77 = vector.broadcast %cst_50 : f32 to vector<1x8xf32>
    %78 = arith.addf %76, %77 : vector<1x8xf32>
    %79 = math.rsqrt %78 : vector<1x8xf32>
    %80 = tpu.concatenate %71, %79 in 0 : vector<1x8xf32>, vector<1x8xf32> -> vector<2x8xf32>
    %cst_51 = arith.constant dense<0.000000e+00> : vector<2x256xf32>
    %81 = tpu.matmul %80, %11, %cst_51 {dimension_numbers = #tpu.dot_dimension_numbers<[1], [0], [0], [1], [0, 0, 1, 1], [], []>, precision = #tpu.contract_precision<fp32>} : vector<2x8xf32>, vector<8x256xf32>, vector<2x256xf32> -> vector<2x256xf32>
    %82 = vector.extract_strided_slice %81 {offsets = [0, 0], sizes = [1, 256], strides = [1, 1]} : vector<2x256xf32> to vector<1x256xf32>
    %83 = vector.extract_strided_slice %81 {offsets = [1, 0], sizes = [1, 256], strides = [1, 1]} : vector<2x256xf32> to vector<1x256xf32>
    %84 = arith.mulf %12, %83 : vector<1x256xf32>
    %85 = arith.mulf %82, %84 : vector<1x256xf32>
    %86 = arith.subf %13, %85 : vector<1x256xf32>
    %87 = vector.broadcast %84 : vector<1x256xf32> to vector<32x256xf32>
    %88 = arith.mulf %61, %87 : vector<32x256xf32>
    %89 = vector.broadcast %86 : vector<1x256xf32> to vector<32x256xf32>
    %90 = arith.addf %88, %89 : vector<32x256xf32>
    %cst_52 = arith.constant 0.000000e+00 : f32
    %91 = vector.broadcast %cst_52 : f32 to vector<32x256xf32>
    %92 = arith.maximumf %90, %91 : vector<32x256xf32>
    %c32 = arith.constant 32 : index
    %c0_53 = arith.constant 0 : index
    %93 = vector.load %arg8[%c32, %c0_53] : memref<64x256xf32, #tpu.memory_space<vmem>>, vector<32x256xf32>
    tpu.vector_store %arg8[%c32, %c0_53], %92 {strides = array<i32>} : memref<64x256xf32, #tpu.memory_space<vmem>>, vector<32x256xf32>,
    return
  }
  func.func @transform_0(%arg0: i32) -> (i32, i32) {
    %c0_i32 = arith.constant 0 : i32
    %c0_i32_0 = arith.constant 0 : i32
    return %arg0, %c0_i32 : i32, i32
  }
  func.func @transform_1(%arg0: i32) -> (i32, i32, i32) {
    %c0_i32 = arith.constant 0 : i32
    %c0_i32_0 = arith.constant 0 : i32
    %c0_i32_1 = arith.constant 0 : i32
    %c0_i32_2 = arith.constant 0 : i32
    return %c0_i32, %c0_i32_0, %c0_i32_1 : i32, i32, i32
  }
  func.func @transform_2(%arg0: i32) -> (i32, i32) {
    %c0_i32 = arith.constant 0 : i32
    %c0_i32_0 = arith.constant 0 : i32
    %c0_i32_1 = arith.constant 0 : i32
    return %c0_i32, %c0_i32_0 : i32, i32
  }
  func.func @transform_3(%arg0: i32) -> (i32, i32) {
    %c0_i32 = arith.constant 0 : i32
    %c0_i32_0 = arith.constant 0 : i32
    %c0_i32_1 = arith.constant 0 : i32
    return %c0_i32, %c0_i32_0 : i32, i32
  }
  func.func @transform_4(%arg0: i32) -> (i32, i32) {
    %c0_i32 = arith.constant 0 : i32
    %c0_i32_0 = arith.constant 0 : i32
    %c0_i32_1 = arith.constant 0 : i32
    return %c0_i32, %c0_i32_0 : i32, i32
  }
  func.func @transform_5(%arg0: i32) -> (i32, i32) {
    %c0_i32 = arith.constant 0 : i32
    %c0_i32_0 = arith.constant 0 : i32
    %c0_i32_1 = arith.constant 0 : i32
    return %c0_i32, %c0_i32_0 : i32, i32
  }
  func.func @transform_6(%arg0: i32) -> (i32, i32) {
    %c0_i32 = arith.constant 0 : i32
    %c0_i32_0 = arith.constant 0 : i32
    %c0_i32_1 = arith.constant 0 : i32
    return %c0_i32, %c0_i32_0 : i32, i32
  }
  func.func @transform_7(%arg0: i32) -> (i32, i32) {
    %c0_i32 = arith.constant 0 : i32
    %c0_i32_0 = arith.constant 0 : i32
    return %arg0, %c0_i32 : i32, i32
  }
}

</mosaic_0001>

<bundles_post_ra>
// kernel: tpu_custom_call.1
= control target key start
LH: loop header
LB: loop body
LE: loop exit
PB: predicated region body
PF: predicated region fallthrough
CT: control target
= control target key end

     0   :  { %12 = vsyncpa [#allocation4], 0  ;;  %s14292_s0 = inlined_call_operand.vmem [shape: f32[32,64], index: 0, kind: input, shape index: {}]   ;;  %s14293_s1 = inlined_call_operand.vmem [shape: f32[3,32,16], index: 1, kind: input, shape index: {}]   ;;  %s14294_s2 = inlined_call_operand.vmem [shape: f32[64,768], index: 2, kind: input, shape index: {}]   ;;  %s14295_s3 = inlined_call_operand.vmem [shape: f32[256,8], index: 3, kind: input, shape index: {}]   ;;  %s14296_s4 = inlined_call_operand.hbm [shape: f32[8,256], index: 4, kind: input, shape index: {}]   ;;  %s14297_s5 = inlined_call_operand.vmem [shape: f32[1,256], index: 5, kind: input, shape index: {}]   ;;  %s14298_s6 = inlined_call_operand.vmem [shape: f32[1,256], index: 6, kind: input, shape index: {}]   ;;  %s14299_s7 = inlined_call_operand.hbm [shape: f32[64,256], index: 7, kind: output, shape index: {}]  }
   0x1   :  { %13 = vsyncpa [#allocation5], 0  ;;  %s11158_s24 = smov [#allocation3]   ;;  %s11110_s28 = scalar_lea.hbm %s14296_s4, 256 }
   0x2   :  { %s28_s25 = sshll.u32 %s11158_s24, 4  ;;  %p11111_p0 = scmp.ne.s32.totalorder %s14296_s4, %s11110_s28  ;;  %s29_s25 = int_to_ptr.vmem [resolvable:$true] %s28_s25 }
   0x3   :  { %p11114_p1 = scmp.lt.u32.totalorder %s11110_s28, %s14296_s4 }
   0x5   :  { %p11116_p2 = pnand %p11114_p1, %p11111_p0 }
   0x7   :  { %11119 = shalt.err (!%p11116_p2)
}
   0x8   :  { %s11120_s10 = scalar_lea.vmem %s29_s25, 256  ;;  %p11125_p4 = scmp.lt.s32.totalorder %s29_s25, %s29_s25 }
   0x9   :  { %p11121_p3 = scmp.ne.s32.totalorder %s29_s25, %s11120_s10  ;;  %p11126_p5 = scmp.lt.s32.totalorder %s11120_s10, %s11120_s10 }
   0xb   :  { %p11127_p6 = por %p11126_p5, %p11125_p4 }
   0xd   :  { %p11128_p7 = pnand %p11127_p6, %p11121_p3 }
   0xf   :  { %11131 = shalt.err (!%p11128_p7)
}
  0x10   :  { %31 = dma.hbm_to_vmem [thread:$0]  %s14296_s4, 256, %s29_s25, [#allocation4]  }
  0x11   :  { %11154 = dma.done.wait [#allocation4], 256  }
  0x12   :  { %11155 = vsyncadd [#allocation4], 4294967040  ;;  %v14321_v0 = vmov 0.0   ;;  %v44_v1 = vld [vmem:[%s14294_s2 + $0x8] sm:$0xff]  ;;  %v50_v2 = vld [vmem:[%s14294_s2 + $0x38] sm:$0xff]  ;;  %vm91_vm0 = vcmask 523264  }
  0x13   :  { %184 = vmatprep.mubr.f32.mxu0 %v14321_v0  ;;  %1167 = vmatprep.mubr.f32.mxu1 %v14321_v0  ;;  %v43_v3 = vld [vmem:[%s14294_s2] sm:$0xff]  ;;  %v104_v4 = vand.u32 4294901760, %v44_v1  ;;  %v108_v5 = vand.u32 4294901760, %v50_v2  ;;  %v49_v6 = vld [vmem:[%s14294_s2 + $0x30] sm:$0xff]  ;;  %v56_v8 = vld [vmem:[%s14294_s2 + $0x68] sm:$0xff]  ;;  %vm2568_vm1 = vcmask 130048  }
  0x14   :  { %v106_v7 = vand.u32 4294901760, %v43_v3  ;;  %v62_v9 = vld [vmem:[%s14294_s2 + $0x98] sm:$0xff]  ;;  %v110_v10 = vand.u32 4294901760, %v49_v6  ;;  %v112_v11 = vand.u32 4294901760, %v56_v8  ;;  %v55_v13 = vld [vmem:[%s14294_s2 + $0x60] sm:$0xff]  ;;  %v61_v14 = vld [vmem:[%s14294_s2 + $0x90] sm:$0xff] }
  0x15   :  { %v116_v12 = vand.u32 4294901760, %v62_v9  ;;  %v68_v15 = vld [vmem:[%s14294_s2 + $0xc8] sm:$0xff]  ;;  %v11245_v16 = vpack.c.bf16 %v108_v5, %v104_v4  ;;  %v11247_v17 = vsub.f32 %v44_v1, %v104_v4  ;;  %v11249_v18 = vsub.f32 %v50_v2, %v108_v5  ;;  %v74_v19 = vld [vmem:[%s14294_s2 + $0xf8] sm:$0xff]  ;;  %v67_v26 = vld [vmem:[%s14294_s2 + $0xc0] sm:$0xff] }
  0x16   :  { %v11257_v20 = vld [vmem:[%s14294_s2 + $0x18] sm:$0xff]  ;;  %v11262_v21 = vld [vmem:[%s14294_s2 + $0x48] sm:$0xff]  ;;  %v11264_v22 = vpack.c.bf16 %v110_v10, %v106_v7  ;;  %v11266_v23 = vsub.f32 %v43_v3, %v106_v7  ;;  %v11268_v24 = vsub.f32 %v49_v6, %v110_v10  ;;  %v11276_v27 = vsub.f32 %v56_v8, %v112_v11  ;;  %v73_v35 = vld [vmem:[%s14294_s2 + $0xf0] sm:$0xff] }
  0x17   :  { %14631 = vst [vmem:[#allocation9_spill] sm:$0xff] %v11245_v16  ;;  %v11270_v25 = vpack.c.bf16 %v116_v12, %v112_v11  ;;  %9873 = vmatprep.subr.bf16.mxu0 %v11245_v16  ;;  %v114_v28 = vand.u32 4294901760, %v55_v13  ;;  %v118_v29 = vand.u32 4294901760, %v61_v14  ;;  %v120_v30 = vand.u32 4294901760, %v68_v15  ;;  %v11289_v36 = vld [vmem:[%s14294_s2 + $0x10] sm:$0xff]  ;;  %v11294_v37 = vld [vmem:[%s14294_s2 + $0x40] sm:$0xff] }
  0x18   :  { %14632 = vst [vmem:[#allocation10_spill] sm:$0xff] %v11264_v22  ;;  %9875 = vmatpush1.bf16.msra.mxu0 %v11264_v22  ;;  %v11279_v31 = vsub.f32 %v62_v9, %v116_v12  ;;  %v124_v32 = vand.u32 4294901760, %v74_v19  ;;  %v14307_v33 = vand.u32 4294901760, %v11257_v20  ;;  %v14305_v34 = vand.u32 4294901760, %v11262_v21  ;;  %v80_v42 = vld [vmem:[%s14294_s2 + $0x128] sm:$0xff]  ;;  %v86_v43 = vld [vmem:[%s14294_s2 + $0x158] sm:$0xff] }
  0x19   :  { %14633 = vst [vmem:[#allocation11_spill] sm:$0xff] %v11270_v25  ;;  %9877 = vmatprep.subr.bf16.mxu0 %v11270_v25  ;;  %v11297_v38 = vpack.c.bf16 %v118_v29, %v114_v28  ;;  %v11299_v39 = vsub.f32 %v55_v13, %v114_v28  ;;  %v11301_v40 = vsub.f32 %v61_v14, %v118_v29  ;;  %v122_v41 = vand.u32 4294901760, %v67_v26  ;;  %v11333_v56 = vld [vmem:[%s14294_s2 + $0x78] sm:$0xff]  ;;  %v11353_v61 = vld [vmem:[%s14294_s2 + $0xa8] sm:$0xff]  ;;  %v79_v62 = vld [vmem:[%s14294_s2 + $0x120] sm:$0xff] }
  0x1a   :  { %v11309_v44 = vpack.c.bf16 %v124_v32, %v120_v30  ;;  %v11311_v45 = vsub.f32 %v68_v15, %v120_v30  ;;  %v11316_v46 = vsub.f32 %v11257_v20, %v14307_v33  ;;  %v11321_v47 = vsub.f32 %v11262_v21, %v14305_v34  ;;  %v11371_v4 = vld [vmem:[%s14294_s2 + $0x150] sm:$0xff]  ;;  %v11401_v28 = vld [vmem:[%s14294_s2 + $0xa0] sm:$0xff] }
  0x1b   :  { %14634 = vst [vmem:[#allocation12_spill] sm:$0xff] %v11297_v38  ;;  %v11323_v48 = vsub.f32 %v74_v19, %v124_v32  ;;  %v126_v49 = vand.u32 4294901760, %v73_v35  ;;  %v14304_v50 = vand.u32 4294901760, %v11289_v36  ;;  %v14303_v51 = vand.u32 4294901760, %v11294_v37  ;;  %v11381_v9 = vld [vmem:[%s14294_s2 + $0x70] sm:$0xff]  ;;  %14639 = vst [vmem:[#allocation17_spill] sm:$0xff] %v11401_v28 }
  0x1c   :  { %14635 = vst [vmem:[#allocation13_spill] sm:$0xff] %v11309_v44  ;;  %9879 = vmatpush1.bf16.msra.mxu0 %v11297_v38  ;;  %v14318_v52 = vand.u32 4294901760, %v11316_v46  ;;  %v14316_v53 = vand.u32 4294901760, %v11321_v47  ;;  %v128_v54 = vand.u32 4294901760, %v80_v42  ;;  %v132_v55 = vand.u32 4294901760, %v86_v43  ;;  %14638 = vst [vmem:[#allocation16_spill] sm:$0xff] %v11381_v9 }
  0x1d   :  { %9881 = vmatprep.subr.bf16.mxu0 %v11309_v44  ;;  %v11336_v57 = vpack.c.bf16 %v126_v49, %v122_v41  ;;  %v11338_v58 = vsub.f32 %v67_v26, %v122_v41  ;;  %v11343_v59 = vsub.f32 %v11289_v36, %v14304_v50  ;;  %v11348_v60 = vsub.f32 %v11294_v37, %v14303_v51  ;;  %v39_v41 = vld [vmem:[%s14292_s0] sm:$0xff] }
  0x1e   :  { %v1026_v63 = vsub.f32 %v11316_v46, %v14318_v52  ;;  %v1038_v1 = vsub.f32 %v11321_v47, %v14316_v53  ;;  %v11364_v2 = vsub.f32 %v73_v35, %v126_v49  ;;  %v11366_v3 = vpack.c.bf16 %v132_v55, %v128_v54 }
  0x1f   :  { %14636 = vst [vmem:[#allocation14_spill] sm:$0xff] %v11336_v57  ;;  %v14314_v5 = vand.u32 4294901760, %v11343_v59  ;;  %v14313_v6 = vand.u32 4294901760, %v11348_v60  ;;  %v11375_v7 = vsub.f32 %v80_v42, %v128_v54  ;;  %v14302_v8 = vand.u32 4294901760, %v11333_v56 }
  0x20   :  { %14637 = vst [vmem:[#allocation15_spill] sm:$0xff] %v11366_v3  ;;  %v1027_v10 = vand.u32 4294901760, %v1026_v63  ;;  %v1039_v11 = vand.u32 4294901760, %v1038_v1  ;;  %9883 = vmatpush1.bf16.msra.mxu0 %v11336_v57  ;;  %v14301_v12 = vand.u32 4294901760, %v11353_v61  ;;  %v130_v13 = vand.u32 4294901760, %v79_v62 }
  0x21   :  { %v1032_v14 = vsub.f32 %v11343_v59, %v14314_v5  ;;  %v1044_v15 = vsub.f32 %v11348_v60, %v14313_v6  ;;  %9885 = vmatprep.subr.bf16.mxu0 %v11366_v3  ;;  %v11395_v19 = vsub.f32 %v11333_v56, %v14302_v8  ;;  %v14320_v26 = vand.u32 4294901760, %v11371_v4 }
  0x22   :  { %v9984_v29 = vpack.c.bf16 %v1039_v11, %v1027_v10  ;;  %v11403_v30 = vsub.f32 %v86_v43, %v132_v55  ;;  %v11408_v32 = vsub.f32 %v11353_v61, %v14301_v12  ;;  %v14300_v35 = vand.u32 4294901760, %v11381_v9  ;;  %v11431_v11 = vld [vmem:[%s14294_s2 + $0xd8] sm:$0xff]  ;;  %v11453_v12 = vld [vmem:[%s14294_s2 + $0x108] sm:$0xff] }
  0x23   :  { %v1033_v42 = vand.u32 4294901760, %v1032_v14  ;;  %v1045_v49 = vand.u32 4294901760, %v1044_v15  ;;  %v14311_v54 = vand.u32 4294901760, %v11395_v19  ;;  %v11417_v63 = vpack.c.bf16 %v14320_v26, %v130_v13  ;;  %14641 = vst [vmem:[#allocation19_spill] sm:$0xff] %v11431_v11  ;;  %14642 = vst [vmem:[#allocation20_spill] sm:$0xff] %v11453_v12 }
  0x24   :  { %9985 = vmatprep.subr.bf16.mxu1 %v9984_v29  ;;  %v14308_v43 = vand.u32 4294901760, %v11408_v32  ;;  %v11420_v55 = vsub.f32 %v79_v62, %v130_v13  ;;  %v14306_v1 = vand.u32 4294901760, %v11401_v28  ;;  %v11426_v10 = vsub.f32 %v11381_v9, %v14300_v35 }
  0x25   :  { %14640 = vst [vmem:[#allocation18_spill] sm:$0xff] %v11417_v63  ;;  %v9986_v14 = vpack.c.bf16 %v1045_v49, %v1033_v42  ;;  %v1050_v15 = vsub.f32 %v11395_v19, %v14311_v54  ;;  %9887 = vmatpush1.bf16.msra.mxu0 %v11417_v63  ;;  %v93_v62 = vsel %vm91_vm0, %v39_v41, 0  ;;  %v14309_v13 = vand.u32 4294901760, %v11247_v17 }
  0x26   :  { %v1062_v29 = vsub.f32 %v11408_v32, %v14308_v43  ;;  %v14310_v35 = vand.u32 4294901760, %v11426_v10  ;;  %v11446_v42 = vsub.f32 %v11401_v28, %v14306_v1  ;;  %v11448_v49 = vand.u32 4294901760, %v93_v62 }
  0x27   :  { %9987 = vmatpush1.bf16.msra.mxu1 %v9986_v14  ;;  %v1051_v41 = vand.u32 4294901760, %v1050_v15  ;;  %v232_v8 = vsub.f32 %v11247_v17, %v14309_v13  ;;  %v14312_v51 = vand.u32 4294901760, %v11249_v18  ;;  %v14315_v50 = vand.u32 4294901760, %v11431_v11 }
  0x28   :  { %v1063_v34 = vand.u32 4294901760, %v1062_v29  ;;  %v1056_v1 = vsub.f32 %v11426_v10, %v14310_v35  ;;  %v14317_v33 = vand.u32 4294901760, %v11446_v42  ;;  %v11465_v43 = vsub.f32 %v93_v62, %v11448_v49  ;;  %v11479_v35 = vld [vmem:[%s14294_s2 + $0xd0] sm:$0xff] }
  0x29   :  { %v233_v14 = vand.u32 4294901760, %v232_v8  ;;  %v244_v15 = vsub.f32 %v11249_v18, %v14312_v51  ;;  %v14319_v13 = vand.u32 4294901760, %v11453_v12  ;;  %v11474_v29 = vsub.f32 %v11431_v11, %v14315_v50  ;;  %14644 = vst [vmem:[#allocation22_spill] sm:$0xff] %v11479_v35 }
  0x2a   :  { %14643 = vst [vmem:[#allocation21_spill] sm:$0xff] %v11465_v43  ;;  %v9988_v54 = vpack.c.bf16 %v1063_v34, %v1051_v41  ;;  %v1057_v62 = vand.u32 4294901760, %v1056_v1  ;;  %v1068_v8 = vsub.f32 %v11446_v42, %v14317_v33  ;;  %v11485_v51 = vand.u32 4294901760, %v11465_v43  ;;  %v11497_v34 = vld [vmem:[%s14294_s2 + $0x100] sm:$0xff] }
  0x2b   :  { %v245_v6 = vand.u32 4294901760, %v244_v15  ;;  %v14325_v5 = vand.u32 4294901760, %v11474_v29  ;;  %v11491_v50 = vsub.f32 %v11453_v12, %v14319_v13  ;;  %v14326_v53 = vand.u32 4294901760, %v11266_v23  ;;  %14646 = vst [vmem:[#allocation24_spill] sm:$0xff] %v11497_v34 }
  0x2c   :  { %14645 = vst [vmem:[#allocation23_spill] sm:$0xff] %v11485_v51  ;;  %9989 = vmatprep.subr.bf16.mxu1 %v9988_v54  ;;  %v1069_v1 = vand.u32 4294901760, %v1068_v8  ;;  %v188_v41 = vsub.f32 %v11465_v43, %v11485_v51  ;;  %v14332_v15 = vand.u32 4294901760, %v11268_v24  ;;  %v40_v54 = vld [vmem:[%s14292_s0 + $0x8] sm:$0xff]  ;;  %v14648_v3 = vand.u32 4294901760, %v11479_v35 }
  0x2d   :  { %v9888_v52 = vpack.c.bf16 %v245_v6, %v233_v14  ;;  %v1074_v13 = vsub.f32 %v11474_v29, %v14325_v5  ;;  %v14331_v26 = vand.u32 4294901760, %v11491_v50  ;;  %v238_v0 = vsub.f32 %v11266_v23, %v14326_v53 }
  0x2e   :  { %v9990_v8 = vpack.c.bf16 %v1069_v1, %v1057_v62  ;;  %v11513_v63 = vand.u32 4294901760, %v188_v41  ;;  %v250_v6 = vsub.f32 %v11268_v24, %v14332_v15  ;;  %v14333_v14 = vand.u32 4294901760, %v11497_v34  ;;  %v11530_v62 = vld [vmem:[%s14294_s2 + $0x138] sm:$0xff] }
  0x2f   :  { %9889 = vmatprep.subr.bf16.mxu0 %v9888_v52  ;;  %v1075_v5 = vand.u32 4294901760, %v1074_v13  ;;  %v1086_v33 = vsub.f32 %v11491_v50, %v14331_v26  ;;  %v239_v53 = vand.u32 4294901760, %v238_v0  ;;  %v11525_v57 = vsub.f32 %v11479_v35, %v14648_v3  ;;  %14649 = vst [vmem:[#allocation26_spill] sm:$0xff] %v11530_v62 }
  0x30   :  { %14647 = vst [vmem:[#allocation25_spill] sm:$0xff] %v11513_v63  ;;  %9991 = vmatpush1.bf16.msra.mxu1 %v9990_v8  ;;  %190 = vmatmul.mubr.f32.vlgmr.msra.gmra.mrb[0].mxu0 %v11513_v63  ;;  %v251_v52 = vand.u32 4294901760, %v250_v6  ;;  %v11536_v13 = vsub.f32 %v11497_v34, %v14333_v14  ;;  %v96_v0 = vsel %vm91_vm0, %v40_v54, 0  ;;  %v14342_v1 = vand.u32 4294901760, %v11276_v27  ;;  %v11548_v6 = vld [vmem:[%s14294_s2 + $0x168] sm:$0xff] }
  0x31   :  { %v1087_v3 = vand.u32 4294901760, %v1086_v33  ;;  %v14650_v26 = vmov 0.0   ;;  %v11542_v15 = vand.u32 4294901760, %v96_v0  ;;  %14651 = vst [vmem:[#allocation27_spill] sm:$0xff] %v11548_v6  ;;  %v14652_v51 = vand.u32 4294901760, %v11525_v57 }
  0x32   :  { %195 = vmatprep.mubr.f32.mxu0 %v14650_v26  ;;  %v9890_v14 = vpack.c.bf16 %v251_v52, %v239_v53  ;;  %v14343_v63 = vand.u32 4294901760, %v11536_v13  ;;  %v256_v33 = vsub.f32 %v11276_v27, %v14342_v1  ;;  %v14654_v38 = vand.u32 4294901760, %v11279_v31 }
  0x33   :  { %v9992_v41 = vpack.c.bf16 %v1087_v3, %v1075_v5  ;;  %v1080_v44 = vsub.f32 %v11525_v57, %v14652_v51  ;;  %v11559_v8 = vsub.f32 %v96_v0, %v11542_v15  ;;  %v14655_v5 = vand.u32 4294901760, %v11530_v62  ;;  %v11576_v51 = vld [vmem:[%s14294_s2 + $0x130] sm:$0xff] }
  0x34   :  { %v268_v53 = vsub.f32 %v11279_v31, %v14654_v38  ;;  %9891 = vmatpush1.bf16.msra.mxu0 %v9890_v14  ;;  %v1092_v52 = vsub.f32 %v11536_v13, %v14343_v63  ;;  %v257_v1 = vand.u32 4294901760, %v256_v33  ;;  %14656 = vst [vmem:[#allocation29_spill] sm:$0xff] %v11576_v51  ;;  %v14354_v33 = vand.u32 4294901760, %v11299_v39 }
  0x35   :  { %14653 = vst [vmem:[#allocation28_spill] sm:$0xff] %v11559_v8  ;;  %v11571_v3 = vsub.f32 %v11530_v62, %v14655_v5  ;;  %9993 = vmatprep.subr.bf16.mxu1 %v9992_v41  ;;  %v1081_v38 = vand.u32 4294901760, %v1080_v44  ;;  %v11579_v14 = vand.u32 4294901760, %v11559_v8  ;;  %v14658_v25 = vand.u32 4294901760, %v11548_v6  ;;  %v11592_v44 = vld [vmem:[%s14294_s2 + $0x160] sm:$0xff] }
  0x36   :  { %v269_v0 = vand.u32 4294901760, %v268_v53  ;;  %v1093_v63 = vand.u32 4294901760, %v1092_v52  ;;  %14659 = vst [vmem:[#allocation31_spill] sm:$0xff] %v11592_v44  ;;  %v262_v52 = vsub.f32 %v11299_v39, %v14354_v33  ;;  %v14358_v54 = vand.u32 4294901760, %v11592_v44 }
  0x37   :  { %14657 = vst [vmem:[#allocation30_spill] sm:$0xff] %v11579_v14  ;;  %v11586_v5 = vsub.f32 %v11548_v6, %v14658_v25  ;;  %v199_v41 = vsub.f32 %v11559_v8, %v11579_v14  ;;  %v41_v25 = vld [vmem:[%s14292_s0 + $0x10] sm:$0xff]  ;;  %v14660_v6 = vand.u32 4294901760, %v11571_v3  ;;  %v14661_v14 = vand.u32 4294901760, %v11301_v40 }
  0x38   :  { %v9892_v53 = vpack.c.bf16 %v269_v0, %v257_v1  ;;  %v9994_v22 = vpack.c.bf16 %v1093_v63, %v1081_v38  ;;  %v263_v33 = vand.u32 4294901760, %v262_v52  ;;  %v14663_v34 = vand.u32 4294901760, %v11576_v51 }
  0x39   :  { %v1098_v62 = vsub.f32 %v11571_v3, %v14660_v6  ;;  %v14357_v16 = vand.u32 4294901760, %v11586_v5  ;;  %v274_v1 = vsub.f32 %v11301_v40, %v14661_v14  ;;  %v11610_v0 = vand.u32 4294901760, %v199_v41 }
  0x3a   :  { %9893 = vmatprep.subr.bf16.mxu0 %v9892_v53  ;;  %v11616_v63 = vsub.f32 %v11576_v51, %v14663_v34  ;;  %9995 = vmatpush1.bf16.msra.mxu1 %v9994_v22  ;;  %v99_v14 = vsel %vm91_vm0, %v41_v25, 0  ;;  %v11627_v53 = vsub.f32 %v11592_v44, %v14358_v54  ;;  %v14365_v22 = vand.u32 4294901760, %v11311_v45 }
  0x3b   :  { %14662 = vst [vmem:[#allocation32_spill] sm:$0xff] %v11610_v0  ;;  %v1099_v38 = vand.u32 4294901760, %v1098_v62  ;;  %v1110_v6 = vsub.f32 %v11586_v5, %v14357_v16  ;;  %v275_v35 = vand.u32 4294901760, %v274_v1  ;;  %201 = vmatmul.mubr.f32.gmra.mrb[2].mxu0 %v11610_v0  ;;  %v11629_v34 = vand.u32 4294901760, %v99_v14 }
  0x3c   :  { %v14362_v41 = vand.u32 4294901760, %v11616_v63  ;;  %v14664_v62 = vand.u32 4294901760, %v11371_v4  ;;  %206 = vmatprep.mubr.f32.mxu0 %v14650_v26  ;;  %v14364_v16 = vand.u32 4294901760, %v11323_v48  ;;  %v14368_v0 = vand.u32 4294901760, %v11627_v53 }
  0x3d   :  { %v1111_v1 = vand.u32 4294901760, %v1110_v6  ;;  %v9894_v25 = vpack.c.bf16 %v275_v35, %v263_v33  ;;  %v11644_v44 = vsub.f32 %v99_v14, %v11629_v34  ;;  %v14376_v33 = vand.u32 4294901760, %v11338_v58 }
  0x3e   :  { %v11635_v52 = vsub.f32 %v11371_v4, %v14664_v62  ;;  %v1104_v54 = vsub.f32 %v11616_v63, %v14362_v41  ;;  %v280_v4 = vsub.f32 %v11311_v45, %v14365_v22  ;;  %v292_v35 = vsub.f32 %v11323_v48, %v14364_v16  ;;  %v42_v41 = vld [vmem:[%s14292_s0 + $0x18] sm:$0xff] }
  0x3f   :  { %v9996_v62 = vpack.c.bf16 %v1111_v1, %v1099_v38  ;;  %9895 = vmatpush1.bf16.msra.mxu0 %v9894_v25  ;;  %v14375_v6 = vand.u32 4294901760, %v11364_v2  ;;  %v1116_v51 = vsub.f32 %v11627_v53, %v14368_v0  ;;  %v11661_v38 = vand.u32 4294901760, %v11644_v44 }
  0x40   :  { %v1105_v14 = vand.u32 4294901760, %v1104_v54  ;;  %v281_v1 = vand.u32 4294901760, %v280_v4  ;;  %v293_v25 = vand.u32 4294901760, %v292_v35  ;;  %v10000_v16 = vpack.c.bf16 %v11321_v47, %v11316_v46 }
  0x41   :  { %9997 = vmatprep.subr.bf16.mxu1 %v9996_v62  ;;  %v286_v22 = vsub.f32 %v11338_v58, %v14376_v33  ;;  %v298_v54 = vsub.f32 %v11364_v2, %v14375_v6  ;;  %v1117_v8 = vand.u32 4294901760, %v1116_v51  ;;  %v210_v0 = vsub.f32 %v11644_v44, %v11661_v38 }
  0x42   :  { %v102_v12 = vsel %vm91_vm0, %v42_v41, 0  ;;  %v303_v4 = vand.u32 4294901760, %v11375_v7  ;;  %v9896_v62 = vpack.c.bf16 %v293_v25, %v281_v1  ;;  %v14379_v51 = vand.u32 4294901760, %v11403_v30 }
  0x43   :  { %v287_v35 = vand.u32 4294901760, %v286_v22  ;;  %v299_v11 = vand.u32 4294901760, %v298_v54  ;;  %v11675_v28 = vand.u32 4294901760, %v102_v12  ;;  %v9998_v9 = vpack.c.bf16 %v1117_v8, %v1105_v14 }
  0x44   :  { %v11677_v43 = vand.u32 4294901760, %v210_v0  ;;  %v304_v6 = vsub.f32 %v11375_v7, %v303_v4  ;;  %9897 = vmatprep.subr.bf16.mxu0 %v9896_v62  ;;  %v14377_v1 = vand.u32 4294901760, %v11420_v55  ;;  %v10002_v8 = vpack.c.bf16 %v11348_v60, %v11343_v59 }
  0x45   :  { %v9898_v33 = vpack.c.bf16 %v299_v11, %v287_v35  ;;  %v11684_v41 = vsub.f32 %v102_v12, %v11675_v28  ;;  %9999 = vmatpush1.bf16.msra.mxu1 %v9998_v9  ;;  %v316_v22 = vsub.f32 %v11403_v30, %v14379_v51  ;;  %v14378_v14 = vand.u32 4294901760, %v11635_v52 }
  0x46   :  { %212 = vmatmul.mubr.f32.gmra.mrb[4].mxu0 %v11677_v43  ;;  %v305_v0 = vand.u32 4294901760, %v304_v6  ;;  %10001 = vmatprep.subr.bf16.mxu1 %v10000_v16  ;;  %v10004_v9 = vpack.c.bf16 %v11408_v32, %v11395_v19  ;;  %v310_v11 = vsub.f32 %v11420_v55, %v14377_v1  ;;  %v10006_v35 = vpack.c.bf16 %v11446_v42, %v11426_v10 }
  0x47   :  { %9899 = vmatpush1.bf16.msra.mxu0 %v9898_v33  ;;  %v11695_v12 = vand.u32 4294901760, %v11684_v41  ;;  %217 = vmatprep.mubr.f32.mxu0 %v14650_v26  ;;  %v317_v6 = vand.u32 4294901760, %v316_v22  ;;  %v322_v25 = vsub.f32 %v11635_v52, %v14378_v14  ;;  %v9904_v14 = vpack.c.bf16 %v11249_v18, %v11247_v17 }
  0x48   :  { %1169 = vmatmul.mubr.f32.vlgmr.msra.gmra.mrb[0].mxu1 %v11448_v49  ;;  %v311_v33 = vand.u32 4294901760, %v310_v11  ;;  %v10008_v51 = vpack.c.bf16 %v11491_v50, %v11474_v29  ;;  %v14665_v11 = vand.u32 4294901760, %v11316_v46  ;;  %v10012_v46 = vpack.c.bf16 %v11586_v5, %v11571_v3 }
  0x49   :  { %v221_v16 = vsub.f32 %v11684_v41, %v11695_v12  ;;  %10003 = vmatpush1.bf16.msra.mxu1 %v10002_v8  ;;  %1174 = vmatprep.mubr.f32.mxu1 %v14650_v26  ;;  %v9900_v54 = vpack.c.bf16 %v317_v6, %v305_v0  ;;  %v323_v62 = vand.u32 4294901760, %v322_v25  ;;  %v9906_v8 = vpack.c.bf16 %v11268_v24, %v11266_v23 }
  0x4a   :  { %10005 = vmatprep.subr.bf16.mxu1 %v10004_v9  ;;  %v10010_v0 = vpack.c.bf16 %v11536_v13, %v11525_v57  ;;  %v9908_v9 = vpack.c.bf16 %v11279_v31, %v11276_v27  ;;  %v14666_v6 = vand.u32 4294901760, %v11321_v47  ;;  %v14671_v47 = vand.u32 4294901760, %v11426_v10 }
  0x4b   :  { %v11712_v1 = vand.u32 4294901760, %v221_v16  ;;  %9901 = vmatprep.subr.bf16.mxu0 %v9900_v54  ;;  %v9902_v22 = vpack.c.bf16 %v323_v62, %v311_v33  ;;  %v14667_v16 = vand.u32 4294901760, %v11343_v59  ;;  %v14668_v33 = vand.u32 4294901760, %v11348_v60 }
  0x4c   :  { %1176 = vmatmul.mubr.f32.gmra.mrb[2].mxu1 %v11542_v15  ;;  %v11732_v25 = vpack.c.bf16 %v14666_v6, %v14665_v11  ;;  %v14669_v62 = vand.u32 4294901760, %v11395_v19  ;;  %v14672_v11 = vand.u32 4294901760, %v11446_v42  ;;  %v14673_v60 = vand.u32 4294901760, %v11247_v17 }
  0x4d   :  { %223 = vmatmul.mubr.f32.gmra.mrb[6].mxu0 %v11712_v1  ;;  %10007 = vmatpush1.bf16.msra.mxu1 %v10006_v35  ;;  %v11738_v54 = vpack.c.bf16 %v14668_v33, %v14667_v16  ;;  %v14670_v35 = vand.u32 4294901760, %v11408_v32  ;;  %v14674_v6 = vand.u32 4294901760, %v11249_v18  ;;  %v14675_v32 = vand.u32 4294901760, %v11266_v23 }
  0x4e   :  { %9903 = vmatpush1.bf16.msra.mxu0 %v9902_v22  ;;  %373 = vmatprep.mubr.f32.mxu0 %v14650_v26  ;;  %v11752_v59 = vpack.c.bf16 %v14672_v11, %v14671_v47  ;;  %v9910_v10 = vpack.c.bf16 %v11301_v40, %v11299_v39  ;;  %v10014_v17 = vpack.c.bf16 %v11627_v53, %v11616_v63  ;;  %v14677_v23 = vand.u32 4294901760, %v11257_v20  ;;  %v14686_v47 = vld [vmem:[#allocation17_spill] sm:$0xff] }
  0x4f   :  { %1181 = vmatprep.mubr.f32.mxu1 %v14650_v26  ;;  %v11744_v22 = vpack.c.bf16 %v14670_v35, %v14669_v62  ;;  %9905 = vmatprep.subr.bf16.mxu0 %v9904_v14  ;;  %v11758_v19 = vpack.c.bf16 %v14674_v6, %v14673_v60  ;;  %v9912_v18 = vpack.c.bf16 %v11323_v48, %v11311_v45  ;;  %v14682_v33 = vand.u32 4294901760, %v11353_v61  ;;  %v14684_v35 = vld [vmem:[#allocation16_spill] sm:$0xff] }
  0x50   :  { %10009 = vmatprep.subr.bf16.mxu1 %v10008_v51  ;;  %1183 = vmatmul.mubr.f32.gmra.mrb[4].mxu1 %v11629_v34  ;;  %v14676_v51 = vand.u32 4294901760, %v11268_v24  ;;  %v14678_v24 = vand.u32 4294901760, %v11262_v21  ;;  %v9916_v20 = vpack.c.bf16 %v11403_v30, %v11375_v7  ;;  %v14681_v21 = vand.u32 4294901760, %v11333_v56  ;;  %v14688_v56 = vld [vmem:[#allocation19_spill] sm:$0xff]  ;;  %v14690_v6 = vld [vmem:[#allocation20_spill] sm:$0xff] }
  0x51   :  { %375 = vmatmul.mubr.f32.vlgmr.msra.gmra.mrb[0].mxu0 %v11448_v49  ;;  %10011 = vmatpush1.bf16.msra.mxu1 %v10010_v0  ;;  %v14679_v0 = vand.u32 4294901760, %v11289_v36  ;;  %v14683_v36 = vld [vmem:[#allocation21_spill] sm:$0xff]  ;;  %v14687_v11 = vand.u32 4294901760, %v14686_v47  ;;  %v14689_v61 = vand.u32 4294901760, %v14688_v56  ;;  %v48_v7 = vld [vmem:[%s14294_s2 + $0x28] sm:$0xff]  ;;  %vm4575_vm2 = vcmask 1040384  }
  0x52   :  { %v11766_v14 = vpack.c.bf16 %v14676_v51, %v14675_v32  ;;  %9907 = vmatpush1.bf16.msra.mxu0 %v9906_v8  ;;  %380 = vmatprep.mubr.f32.mxu0 %v14650_v26  ;;  %v11780_v42 = vpack.c.bf16 %v14678_v24, %v14677_v23  ;;  %v9914_v8 = vpack.c.bf16 %v11364_v2, %v11338_v58  ;;  %v14691_v32 = vand.u32 4294901760, %v14690_v6  ;;  %v14695_v23 = vld [vmem:[#allocation24_spill] sm:$0xff]  ;;  %v14707_v6 = vld [vmem:[#allocation11_spill] sm:$0xff] }
  0x53   :  { %1188 = vmatprep.mubr.f32.mxu1 %v14650_v26  ;;  %9909 = vmatprep.subr.bf16.mxu0 %v9908_v9  ;;  %v14680_v9 = vand.u32 4294901760, %v11294_v37  ;;  %v11801_v62 = vpack.c.bf16 %v14682_v33, %v14681_v21  ;;  %v9918_v37 = vpack.c.bf16 %v11635_v52, %v11420_v55  ;;  %v14696_v24 = vand.u32 4294901760, %v14695_v23  ;;  %v14700_v21 = vld [vmem:[#allocation27_spill] sm:$0xff]  ;;  %v14711_v23 = vld [vmem:[#allocation14_spill] sm:$0xff] }
  0x54   :  { %10013 = vmatprep.subr.bf16.mxu1 %v10012_v46  ;;  %1190 = vmatmul.mubr.f32.gmra.mrb[6].mxu1 %v11675_v28  ;;  %v14685_v46 = vand.u32 4294901760, %v14684_v35  ;;  %v11821_v51 = vpack.c.bf16 %v14691_v32, %v14689_v61  ;;  %v14701_v33 = vand.u32 4294901760, %v14700_v21  ;;  %v14702_v35 = vld [vmem:[#allocation10_spill] sm:$0xff]  ;;  %v14708_v32 = vld [vmem:[#allocation12_spill] sm:$0xff]  ;;  %vm5449_vm3 = vcmask 64512  }
  0x55   :  { %382 = vmatmul.mubr.f32.gmra.mrb[2].mxu0 %v11542_v15  ;;  %10015 = vmatpush1.bf16.msra.mxu1 %v10014_v17  ;;  %v11790_v16 = vpack.c.bf16 %v14680_v9, %v14679_v0  ;;  %v14693_v17 = vld [vmem:[#allocation22_spill] sm:$0xff]  ;;  %v14697_v0 = vld [vmem:[#allocation9_spill] sm:$0xff] }
  0x56   :  { %9911 = vmatpush1.bf16.msra.mxu0 %v9910_v10  ;;  %387 = vmatprep.mubr.f32.mxu0 %v14650_v26  ;;  %v11812_v60 = vpack.c.bf16 %v14687_v11, %v14685_v46  ;;  %v14692_v10 = vld [vmem:[#allocation28_spill] sm:$0xff]  ;;  %v14698_v9 = vld [vmem:[#allocation26_spill] sm:$0xff]  ;;  %v14703_v46 = vld [vmem:[#allocation29_spill] sm:$0xff] }
  0x57   :  { %1292 = vmatprep.mubr.f32.mxu1 %v14650_v26  ;;  %9913 = vmatprep.subr.bf16.mxu0 %v9912_v18  ;;  %v14694_v18 = vand.u32 4294901760, %v14693_v17  ;;  %v14704_v47 = vand.u32 4294901760, %v14703_v46  ;;  %v14705_v11 = vld [vmem:[#allocation31_spill] sm:$0xff]  ;;  %v14709_v17 = vld [vmem:[#allocation13_spill] sm:$0xff]  ;;  %v14715_v21 = vld [vmem:[#allocation30_spill] sm:$0xff]  ;;  %v14718_v46 = vand.u32 4294901760, %v11536_v13 }
  0x58   :  { %10017 = vmatprep.subr.bf16.mxu1 %v11780_v42  ;;  %1295 = vmatmul.mubr.f32.vlgmr.msra.gmra.mrb[0].mxu1 %v14683_v36  ;;  %v14706_v56 = vand.u32 4294901760, %v14705_v11  ;;  %v14721_v11 = vand.u32 4294901760, %v11571_v3  ;;  %v14723_v13 = vand.u32 4294901760, %v11299_v39  ;;  %v14729_v39 = vand.u32 4294901760, %v11338_v58 }
  0x59   :  { %389 = vmatmul.mubr.f32.gmra.mrb[4].mxu0 %v11629_v34  ;;  %10019 = vmatpush1.bf16.msra.mxu1 %v11790_v16  ;;  %v14732_v58 = vand.u32 4294901760, %v11420_v55  ;;  %v1692_v55 = vand.u32 4294901760, %v48_v7 }
  0x5a   :  { %9915 = vmatpush1.bf16.msra.mxu0 %v9914_v8  ;;  %394 = vmatprep.mubr.f32.mxu0 %v14650_v26  ;;  %v11830_v8 = vpack.c.bf16 %v14696_v24, %v14694_v18  ;;  %v11850_v61 = vpack.c.bf16 %v14706_v56, %v14704_v47  ;;  %v14710_v18 = vld [vmem:[#allocation23_spill] sm:$0xff]  ;;  %v14726_v56 = vand.u32 4294901760, %v11627_v53 }
  0x5b   :  { %1300 = vmatprep.mubr.f32.mxu1 %v14650_v26  ;;  %9917 = vmatprep.subr.bf16.mxu0 %v9916_v20  ;;  %v14699_v20 = vand.u32 4294901760, %v14698_v9  ;;  %v14712_v24 = vld [vmem:[#allocation15_spill] sm:$0xff]  ;;  %v14713_v9 = vand.u32 4294901760, %v11474_v29  ;;  %v14720_v29 = vand.u32 4294901760, %v11279_v31  ;;  %v14725_v31 = vand.u32 4294901760, %v11616_v63 }
  0x5c   :  { %10021 = vmatprep.subr.bf16.mxu1 %v11801_v62  ;;  %1303 = vmatmul.mubr.f32.gmra.mrb[2].mxu1 %v14692_v10 }
  0x5d   :  { %396 = vmatmul.mubr.f32.gmra.mrb[6].mxu0 %v11675_v28  ;;  %10023 = vmatpush1.bf16.msra.mxu1 %v11812_v60  ;;  %v10046_v3 = vpack.c.bf16 %v14726_v56, %v14725_v31  ;;  %v84_v56 = vld [vmem:[%s14294_s2 + $0x148] sm:$0xff] }
  0x5e   :  { %9919 = vmatpush1.bf16.msra.mxu0 %v9918_v37  ;;  %498 = vmatprep.mubr.f32.mxu0 %v14650_v26  ;;  %v11840_v37 = vpack.c.bf16 %v14701_v33, %v14699_v20  ;;  %v14716_v33 = vld [vmem:[#allocation18_spill] sm:$0xff] }
  0x5f   :  { %1308 = vmatprep.mubr.f32.mxu1 %v14650_v26  ;;  %9921 = vmatprep.subr.bf16.mxu0 %v14697_v0 }
  0x60   :  { %10025 = vmatprep.subr.bf16.mxu1 %v11821_v51  ;;  %1311 = vmatmul.mubr.f32.gmra.mrb[4].mxu1 %v11644_v44 }
  0x61   :  { %501 = vmatmul.mubr.f32.vlgmr.msra.gmra.mrb[0].mxu0 %v14683_v36  ;;  %10027 = vmatpush1.bf16.msra.mxu1 %v11830_v8 }
  0x62   :  { %9923 = vmatpush1.bf16.msra.mxu0 %v14702_v35  ;;  %506 = vmatprep.mubr.f32.mxu0 %v14650_v26 }
  0x63   :  { %1316 = vmatprep.mubr.f32.mxu1 %v14650_v26  ;;  %9925 = vmatprep.subr.bf16.mxu0 %v14707_v6 }
  0x64   :  { %10029 = vmatprep.subr.bf16.mxu1 %v11840_v37  ;;  %1319 = vmatmul.mubr.f32.gmra.mrb[6].mxu1 %v11684_v41 }
  0x65   :  { %509 = vmatmul.mubr.f32.gmra.mrb[2].mxu0 %v14692_v10  ;;  %10031 = vmatpush1.bf16.msra.mxu1 %v11850_v61 }
  0x66   :  { %9927 = vmatpush1.bf16.msra.mxu0 %v14708_v32  ;;  %514 = vmatprep.mubr.f32.mxu0 %v14650_v26 }
  0x67   :  { %1405 = vmatprep.mubr.f32.mxu1 %v14650_v26  ;;  %9929 = vmatprep.subr.bf16.mxu0 %v14709_v17 }
  0x68   :  { %10033 = vmatprep.subr.bf16.mxu1 %v11732_v25  ;;  %1409 = vmatmul.mubr.f32.vlgmr.msra.gmra.mrb[0].mxu1 %v14710_v18  ;;  %v14714_v25 = vand.u32 4294901760, %v11491_v50  ;;  %v14719_v50 = vand.u32 4294901760, %v11276_v27 }
  0x69   :  { %517 = vmatmul.mubr.f32.gmra.mrb[4].mxu0 %v11644_v44  ;;  %10035 = vmatpush1.bf16.msra.mxu1 %v11738_v54  ;;  %v14717_v54 = vand.u32 4294901760, %v11525_v57 }
  0x6a   :  { %9931 = vmatpush1.bf16.msra.mxu0 %v14711_v23  ;;  %522 = vmatprep.mubr.f32.mxu0 %v14650_v26  ;;  %v10040_v20 = vpack.c.bf16 %v14714_v25, %v14713_v9 }
  0x6b   :  { %1414 = vmatprep.mubr.f32.mxu1 %v14650_v26  ;;  %9933 = vmatprep.subr.bf16.mxu0 %v14712_v24  ;;  %v10042_v47 = vpack.c.bf16 %v14718_v46, %v14717_v54 }
  0x6c   :  { %10037 = vmatprep.subr.bf16.mxu1 %v11744_v22  ;;  %1418 = vmatmul.mubr.f32.gmra.mrb[2].mxu1 %v14715_v21  ;;  %v9940_v22 = vpack.c.bf16 %v14720_v29, %v14719_v50  ;;  %v77_v50 = vld [vmem:[%s14294_s2 + $0x110] sm:$0xff] }
  0x6d   :  { %525 = vmatmul.mubr.f32.gmra.mrb[6].mxu0 %v11684_v41  ;;  %10039 = vmatpush1.bf16.msra.mxu1 %v11752_v59  ;;  %v14722_v59 = vand.u32 4294901760, %v11586_v5  ;;  %v14727_v5 = vand.u32 4294901760, %v11311_v45  ;;  %v14731_v45 = vand.u32 4294901760, %v11403_v30  ;;  %v54_v30 = vld [vmem:[%s14294_s2 + $0x58] sm:$0xff]  ;;  %v1714_v31 = vand.u32 4294901760, %v77_v50 }
  0x6e   :  { %9935 = vmatpush1.bf16.msra.mxu0 %v14716_v33  ;;  %611 = vmatprep.mubr.f32.mxu0 %v14650_v26 }
  0x6f   :  { %1423 = vmatprep.mubr.f32.mxu1 %v14650_v26  ;;  %9937 = vmatprep.subr.bf16.mxu0 %v11758_v19  ;;  %v10044_v57 = vpack.c.bf16 %v14722_v59, %v14721_v11  ;;  %v14724_v19 = vand.u32 4294901760, %v11301_v40  ;;  %v14730_v40 = vand.u32 4294901760, %v11364_v2  ;;  %v14733_v2 = vand.u32 4294901760, %v11635_v52 }
  0x70   :  { %10041 = vmatprep.subr.bf16.mxu1 %v10040_v20  ;;  %1427 = vmatmul.mubr.f32.gmra.mrb[4].mxu1 %v11661_v38  ;;  %v1696_v52 = vand.u32 4294901760, %v54_v30 }
  0x71   :  { %615 = vmatmul.mubr.f32.vlgmr.msra.gmra.mrb[0].mxu0 %v14710_v18  ;;  %10043 = vmatpush1.bf16.msra.mxu1 %v10042_v47  ;;  %v9942_v27 = vpack.c.bf16 %v14724_v19, %v14723_v13  ;;  %v9946_v63 = vpack.c.bf16 %v14730_v40, %v14729_v39  ;;  %v9950_v53 = vpack.c.bf16 %v14733_v2, %v14732_v58  ;;  %v14734_v39 = vld [vmem:[#allocation25_spill] sm:$0xff]  ;;  %v83_v40 = vld [vmem:[%s14294_s2 + $0x140] sm:$0xff] }
  0x72   :  { %9939 = vmatpush1.bf16.msra.mxu0 %v11766_v14  ;;  %620 = vmatprep.mubr.f32.mxu0 %v14650_v26  ;;  %v14728_v14 = vand.u32 4294901760, %v11323_v48  ;;  %v9948_v48 = vpack.c.bf16 %v14731_v45, %v303_v4  ;;  %v47_v4 = vld [vmem:[%s14294_s2 + $0x20] sm:$0xff] }
  0x73   :  { %1432 = vmatprep.mubr.f32.mxu1 %v14650_v26  ;;  %9941 = vmatprep.subr.bf16.mxu0 %v9940_v22 }
  0x74   :  { %10045 = vmatprep.subr.bf16.mxu1 %v10044_v57  ;;  %v9944_v9 = vpack.c.bf16 %v14728_v14, %v14727_v5  ;;  %1436 = vmatmul.mubr.f32.gmra.mrb[6].mxu1 %v11695_v12 }
  0x75   :  { %624 = vmatmul.mubr.f32.gmra.mrb[2].mxu0 %v14715_v21  ;;  %10047 = vmatpush1.bf16.msra.mxu1 %v10046_v3 }
  0x76   :  { %9943 = vmatpush1.bf16.msra.mxu0 %v9942_v27  ;;  %629 = vmatprep.mubr.f32.mxu0 %v14650_v26 }
  0x77   :  { %1554 = vmatprep.mubr.f32.mxu1 %v14650_v26  ;;  %9945 = vmatprep.subr.bf16.mxu0 %v9944_v9 }
  0x78   :  { %10049 = vmatprep.subr.bf16.mxu1 %v11780_v42  ;;  %1556 = vmatmul.mubr.f32.vlgmr.msra.gmra.mrb[0].mxu1 %v11448_v49 }
  0x79   :  { %633 = vmatmul.mubr.f32.gmra.mrb[4].mxu0 %v11661_v38  ;;  %10051 = vmatpush1.bf16.msra.mxu1 %v11790_v16 }
  0x7a   :  { %9947 = vmatpush1.bf16.msra.mxu0 %v9946_v63  ;;  %638 = vmatprep.mubr.f32.mxu0 %v14650_v26  ;;  %v89_v63 = vld [vmem:[%s14294_s2 + $0x170] sm:$0xff] }
  0x7b   :  { %1561 = vmatprep.mubr.f32.mxu1 %v14650_v26  ;;  %9949 = vmatprep.subr.bf16.mxu0 %v9948_v48 }
  0x7c   :  { %10053 = vmatprep.subr.bf16.mxu1 %v11801_v62  ;;  %1563 = vmatmul.mubr.f32.gmra.mrb[2].mxu1 %v11542_v15 }
  0x7d   :  { %642 = vmatmul.mubr.f32.gmra.mrb[6].mxu0 %v11695_v12  ;;  %10055 = vmatpush1.bf16.msra.mxu1 %v11812_v60 }
  0x7e   :  { %9951 = vmatpush1.bf16.msra.mxu0 %v9950_v53  ;;  %760 = vmatprep.mubr.f32.mxu0 %v14650_v26  ;;  %v1716_v53 = vand.u32 4294901760, %v84_v56 }
  0x7f   :  { %1568 = vmatprep.mubr.f32.mxu1 %v14650_v26  ;;  %9953 = vmatprep.subr.bf16.mxu0 %v14697_v0  ;;  %v72_v0 = vld [vmem:[%s14294_s2 + $0xe8] sm:$0xff] }
  0x80   :  { %10057 = vmatprep.subr.bf16.mxu1 %v11821_v51  ;;  %1570 = vmatmul.mubr.f32.gmra.mrb[4].mxu1 %v11629_v34  ;;  %v1708_v46 = vand.u32 4294901760, %v72_v0 }
  0x81   :  { %762 = vmatmul.mubr.f32.vlgmr.msra.gmra.mrb[0].mxu0 %v11448_v49  ;;  %10059 = vmatpush1.bf16.msra.mxu1 %v11830_v8 }
  0x82   :  { %9955 = vmatpush1.bf16.msra.mxu0 %v14702_v35  ;;  %767 = vmatprep.mubr.f32.mxu0 %v14650_v26  ;;  %v78_v35 = vld [vmem:[%s14294_s2 + $0x118] sm:$0xff] }
  0x83   :  { %1575 = vmatprep.mubr.f32.mxu1 %v14650_v26  ;;  %9957 = vmatprep.subr.bf16.mxu0 %v14707_v6  ;;  %v12014_v6 = vsub.f32 %v48_v7, %v1692_v55  ;;  %v1712_v47 = vand.u32 4294901760, %v78_v35 }
  0x84   :  { %10061 = vmatprep.subr.bf16.mxu1 %v11840_v37  ;;  %1577 = vmatmul.mubr.f32.gmra.mrb[6].mxu1 %v11675_v28 }
  0x85   :  { %769 = vmatmul.mubr.f32.gmra.mrb[2].mxu0 %v11542_v15  ;;  %10063 = vmatpush1.bf16.msra.mxu1 %v11850_v61  ;;  %v1819_v57 = vand.u32 4294901760, %v12014_v6  ;;  %v12057_v9 = vpack.c.bf16 %v1712_v47, %v1708_v46 }
  0x86   :  { %9959 = vmatpush1.bf16.msra.mxu0 %v14708_v32  ;;  %774 = vmatprep.mubr.f32.mxu0 %v14650_v26  ;;  %v12016_v32 = vsub.f32 %v54_v30, %v1696_v52 }
  0x87   :  { %1663 = vmatprep.mubr.f32.mxu1 %v14650_v26  ;;  %9961 = vmatprep.subr.bf16.mxu0 %v14709_v17  ;;  %v1694_v17 = vand.u32 4294901760, %v47_v4  ;;  %v1820_v30 = vsub.f32 %v12014_v6, %v1819_v57 }
  0x88   :  { %1665 = vmatmul.mubr.f32.vlgmr.msra.gmra.mrb[0].mxu1 %v11448_v49  ;;  %v1831_v13 = vand.u32 4294901760, %v12016_v32 }
  0x89   :  { %776 = vmatmul.mubr.f32.gmra.mrb[4].mxu0 %v11629_v34  ;;  %1670 = vmatprep.mubr.f32.mxu1 %v14650_v26  ;;  %v12028_v29 = vsub.f32 %v47_v4, %v1694_v17  ;;  %v12081_v4 = vsub.f32 %v78_v35, %v1712_v47 }
  0x8a   :  { %9963 = vmatpush1.bf16.msra.mxu0 %v14711_v23  ;;  %781 = vmatprep.mubr.f32.mxu0 %v14650_v26 }
  0x8b   :  { %9965 = vmatprep.subr.bf16.mxu0 %v14712_v24  ;;  %v12019_v24 = vpack.c.bf16 %v1696_v52, %v1692_v55  ;;  %v14383_v45 = vand.u32 4294901760, %v12028_v29  ;;  %v1832_v55 = vsub.f32 %v12016_v32, %v1831_v13  ;;  %v12079_v52 = vsub.f32 %v72_v0, %v1708_v46 }
  0x8c   :  { %1672 = vmatmul.mubr.f32.gmra.mrb[2].mxu1 %v11542_v15  ;;  %v1821_v46 = vand.u32 4294901760, %v1820_v30 }
  0x8d   :  { %783 = vmatmul.mubr.f32.gmra.mrb[6].mxu0 %v11675_v28  ;;  %1677 = vmatprep.mubr.f32.mxu1 %v14650_v26  ;;  %v1833_v47 = vand.u32 4294901760, %v1832_v55 }
  0x8e   :  { %9967 = vmatpush1.bf16.msra.mxu0 %v14716_v33  ;;  %869 = vmatprep.mubr.f32.mxu0 %v14650_v26 }
  0x8f   :  { %9969 = vmatprep.subr.bf16.mxu0 %v11780_v42  ;;  %v53_v42 = vld [vmem:[%s14294_s2 + $0x50] sm:$0xff]  ;;  %v10080_v30 = vpack.c.bf16 %v1833_v47, %v1821_v46 }
  0x90   :  { %1679 = vmatmul.mubr.f32.gmra.mrb[4].mxu1 %v11629_v34  ;;  %v1698_v23 = vand.u32 4294901760, %v53_v42 }
  0x91   :  { %871 = vmatmul.mubr.f32.vlgmr.msra.gmra.mrb[0].mxu0 %v11448_v49  ;;  %1684 = vmatprep.mubr.f32.mxu1 %v14650_v26 }
  0x92   :  { %9971 = vmatpush1.bf16.msra.mxu0 %v11790_v16  ;;  %876 = vmatprep.mubr.f32.mxu0 %v14650_v26  ;;  %v60_v16 = vld [vmem:[%s14294_s2 + $0x88] sm:$0xff]  ;;  %v12038_v59 = vpack.c.bf16 %v1698_v23, %v1694_v17 }
  0x93   :  { %9973 = vmatprep.subr.bf16.mxu0 %v11801_v62  ;;  %v66_v62 = vld [vmem:[%s14294_s2 + $0xb8] sm:$0xff]  ;;  %v1700_v25 = vand.u32 4294901760, %v60_v16 }
  0x94   :  { %1686 = vmatmul.mubr.f32.gmra.mrb[6].mxu1 %v11675_v28  ;;  %v1704_v20 = vand.u32 4294901760, %v66_v62 }
  0x95   :  { %878 = vmatmul.mubr.f32.gmra.mrb[2].mxu0 %v11542_v15  ;;  %2649 = vmatprep.mubr.f32.mxu1 %v14650_v26  ;;  %v12032_v22 = vsub.f32 %v60_v16, %v1700_v25 }
  0x96   :  { %9975 = vmatpush1.bf16.msra.mxu0 %v11812_v60  ;;  %883 = vmatprep.mubr.f32.mxu0 %v14650_v26  ;;  %v59_v60 = vld [vmem:[%s14294_s2 + $0x80] sm:$0xff]  ;;  %v12034_v11 = vsub.f32 %v66_v62, %v1704_v20  ;;  %v12043_v19 = vpack.c.bf16 %v1704_v20, %v1700_v25  ;;  %v1718_v62 = vand.u32 4294901760, %v83_v40  ;;  %v1826_v25 = vsub.f32 %v12028_v29, %v14383_v45 }
  0x97   :  { %9977 = vmatprep.subr.bf16.mxu0 %v11821_v51  ;;  %v65_v51 = vld [vmem:[%s14294_s2 + $0xb0] sm:$0xff]  ;;  %v1702_v33 = vand.u32 4294901760, %v59_v60  ;;  %v14380_v58 = vand.u32 4294901760, %v12032_v22 }
  0x98   :  { %v1706_v54 = vand.u32 4294901760, %v65_v51  ;;  %v14381_v2 = vand.u32 4294901760, %v12034_v11  ;;  %v12117_v45 = vsub.f32 %v83_v40, %v1718_v62 }
  0x99   :  { %885 = vmatmul.mubr.f32.gmra.mrb[4].mxu0 %v11629_v34  ;;  %v12053_v5 = vsub.f32 %v59_v60, %v1702_v33  ;;  %v1722_v60 = vand.u32 4294901760, %v89_v63  ;;  %v1844_v35 = vsub.f32 %v12032_v22, %v14380_v58  ;;  %v14384_v58 = vand.u32 4294901760, %v12079_v52 }
  0x9a   :  { %9979 = vmatpush1.bf16.msra.mxu0 %v11830_v8  ;;  %890 = vmatprep.mubr.f32.mxu0 %v14650_v26  ;;  %v71_v8 = vld [vmem:[%s14294_s2 + $0xe0] sm:$0xff]  ;;  %v12051_v3 = vpack.c.bf16 %v1706_v54, %v1702_v33  ;;  %v12055_v14 = vsub.f32 %v65_v51, %v1706_v54  ;;  %v1856_v20 = vsub.f32 %v12034_v11, %v14381_v2  ;;  %v14385_v2 = vand.u32 4294901760, %v12081_v4 }
  0x9b   :  { %9981 = vmatprep.subr.bf16.mxu0 %v11840_v37  ;;  %v12030_v37 = vsub.f32 %v53_v42, %v1698_v23  ;;  %v1710_v27 = vand.u32 4294901760, %v71_v8  ;;  %v14387_v51 = vand.u32 4294901760, %v12053_v5  ;;  %v14735_v23 = vld [vmem:[#allocation32_spill] sm:$0xff]  ;;  %v12104_v33 = vsub.f32 %v77_v50, %v1714_v31 }
  0x9c   :  { %v14386_v17 = vand.u32 4294901760, %v12055_v14  ;;  %v12128_v40 = vsub.f32 %v89_v63, %v1722_v60 }
  0x9d   :  { %892 = vmatmul.mubr.f32.gmra.mrb[6].mxu0 %v11675_v28  ;;  %v14382_v48 = vand.u32 4294901760, %v12030_v37  ;;  %v12083_v42 = vpack.c.bf16 %v1714_v31, %v1710_v27  ;;  %v12085_v16 = vsub.f32 %v71_v8, %v1710_v27  ;;  %v12109_v8 = vsub.f32 %v84_v56, %v1716_v53 }
  0x9e   :  { %9983 = vmatpush1.bf16.msra.mxu0 %v11850_v61  ;;  %978 = vmatprep.mubr.f32.mxu0 %v14650_v26  ;;  %v90_v61 = vld [vmem:[%s14294_s2 + $0x178] sm:$0xff]  ;;  %v1850_v50 = vsub.f32 %v12053_v5, %v14387_v51  ;;  %v1862_v31 = vsub.f32 %v12055_v14, %v14386_v17  ;;  %v1827_v56 = vand.u32 4294901760, %v1826_v25  ;;  %v1868_v25 = vsub.f32 %v12079_v52, %v14384_v58 }
  0x9f   :  { %10065 = vmatprep.subr.bf16.mxu0 %v12019_v24  ;;  %v1720_v7 = vand.u32 4294901760, %v90_v61  ;;  %v1838_v0 = vsub.f32 %v12030_v37, %v14382_v48  ;;  %v12115_v48 = vpack.c.bf16 %v1722_v60, %v1718_v62  ;;  %v1873_v55 = vand.u32 4294901760, %v12085_v16 }
  0xa0   :  { %v14388_v62 = vand.u32 4294901760, %v12104_v33  ;;  %v1851_v46 = vand.u32 4294901760, %v1850_v50  ;;  %v1863_v47 = vand.u32 4294901760, %v1862_v31  ;;  %v1897_v17 = vand.u32 4294901760, %v12117_v45 }
  0xa1   :  { %984 = vmatmul.mubr.f32.vlgmr.msra.gmra.mrb[8].mxu0 %v14734_v39  ;;  %v12106_v54 = vpack.c.bf16 %v1720_v7, %v1716_v53  ;;  %v12111_v27 = vsub.f32 %v90_v61, %v1720_v7  ;;  %v1839_v61 = vand.u32 4294901760, %v1838_v0  ;;  %v1845_v53 = vand.u32 4294901760, %v1844_v35 }
  0xa2   :  { %989 = vmatprep.mubr.f32.mxu0 %v14650_v26  ;;  %10067 = vmatpush1.bf16.msra.mxu0 %v12038_v59  ;;  %v1857_v7 = vand.u32 4294901760, %v1856_v20  ;;  %v1880_v0 = vsub.f32 %v12081_v4, %v14385_v2  ;;  %v14389_v35 = vand.u32 4294901760, %v12109_v8  ;;  %v1874_v58 = vsub.f32 %v12085_v16, %v1873_v55 }
  0xa3   :  { %10069 = vmatprep.subr.bf16.mxu0 %v12043_v19  ;;  %v14390_v63 = vand.u32 4294901760, %v12111_v27  ;;  %v10082_v60 = vpack.c.bf16 %v1839_v61, %v1827_v56  ;;  %v1886_v2 = vsub.f32 %v12104_v33, %v14388_v62  ;;  %v1909_v51 = vand.u32 4294901760, %v12128_v40 }
  0xa4   :  { %v10084_v20 = vpack.c.bf16 %v1857_v7, %v1845_v53  ;;  %v1869_v56 = vand.u32 4294901760, %v1868_v25  ;;  %v1881_v50 = vand.u32 4294901760, %v1880_v0  ;;  %v1892_v31 = vsub.f32 %v12109_v8, %v14389_v35 }
  0xa5   :  { %995 = vmatmul.mubr.f32.gmra.mrb[10].mxu0 %v14735_v23  ;;  %v1904_v61 = vsub.f32 %v12111_v27, %v14390_v63  ;;  %v10086_v53 = vpack.c.bf16 %v1863_v47, %v1851_v46  ;;  %v1875_v7 = vand.u32 4294901760, %v1874_v58  ;;  %v1887_v62 = vand.u32 4294901760, %v1886_v2 }
  0xa6   :  { %1000 = vmatprep.mubr.f32.mxu0 %v14650_v26  ;;  %10071 = vmatpush1.bf16.msra.mxu0 %v12051_v3  ;;  %v1910_v25 = vsub.f32 %v12128_v40, %v1909_v51  ;;  %v10088_v0 = vpack.c.bf16 %v1881_v50, %v1869_v56  ;;  %v1893_v35 = vand.u32 4294901760, %v1892_v31  ;;  %v10110_v47 = vpack.c.bf16 %v12128_v40, %v12117_v45 }
  0xa7   :  { %10073 = vmatprep.subr.bf16.mxu0 %v12057_v9  ;;  %v1905_v63 = vand.u32 4294901760, %v1904_v61  ;;  %v14738_v50 = vand.u32 4294901760, %v12032_v22  ;;  %v14739_v31 = vand.u32 4294901760, %v12034_v11 }
  0xa8   :  { %v1911_v2 = vand.u32 4294901760, %v1910_v25 }
  0xa9   :  { %1006 = vmatmul.mubr.f32.gmra.mrb[12].mxu0 %v11677_v43 }
  0xaa   :  { %1011 = vmatprep.mubr.f32.mxu0 %v14650_v26  ;;  %10075 = vmatpush1.bf16.msra.mxu0 %v12083_v42 }
  0xab   :  { %10077 = vmatprep.subr.bf16.mxu0 %v12106_v54 }
  0xad   :  { %1017 = vmatmul.mubr.f32.gmra.mrb[14].mxu0 %v11712_v1 }
  0xae   :  { %10079 = vmatpush1.bf16.msra.mxu0 %v12115_v48  ;;  %1772 = vmatprep.mubr.f32.mxu0 %v14650_v26 }
  0xaf   :  { %10081 = vmatprep.subr.bf16.mxu0 %v10080_v30  ;;  %v1898_v30 = vsub.f32 %v12117_v45, %v1897_v17 }
  0xb1   :  { %1778 = vmatmul.mubr.f32.vlgmr.msra.gmra.mrb[16].mxu0 %v14734_v39  ;;  %v10090_v39 = vpack.c.bf16 %v1887_v62, %v1875_v7  ;;  %v1899_v58 = vand.u32 4294901760, %v1898_v30  ;;  %v10102_v62 = vpack.c.bf16 %v12055_v14, %v12053_v5 }
  0xb2   :  { %10083 = vmatpush1.bf16.msra.mxu0 %v10082_v60  ;;  %1783 = vmatprep.mubr.f32.mxu0 %v14650_v26  ;;  %v10092_v60 = vpack.c.bf16 %v1905_v63, %v1893_v35  ;;  %v10106_v35 = vpack.c.bf16 %v12104_v33, %v12085_v16  ;;  %v10108_v63 = vpack.c.bf16 %v12111_v27, %v12109_v8 }
  0xb3   :  { %10085 = vmatprep.subr.bf16.mxu0 %v10084_v20  ;;  %v10094_v46 = vpack.c.bf16 %v1911_v2, %v1899_v58  ;;  %v10096_v20 = vpack.c.bf16 %v12016_v32, %v12014_v6  ;;  %v10132_v6 = vpack.c.bf16 %v14739_v31, %v14738_v50  ;;  %v14741_v32 = vand.u32 4294901760, %v12055_v14 }
  0xb5   :  { %1789 = vmatmul.mubr.f32.gmra.mrb[18].mxu0 %v14735_v23  ;;  %v10098_v23 = vpack.c.bf16 %v12030_v37, %v12028_v29 }
  0xb6   :  { %10087 = vmatpush1.bf16.msra.mxu0 %v10086_v53  ;;  %1794 = vmatprep.mubr.f32.mxu0 %v14650_v26 }
  0xb7   :  { %10089 = vmatprep.subr.bf16.mxu0 %v10088_v0 }
  0xb9   :  { %1800 = vmatmul.mubr.f32.gmra.mrb[20].mxu0 %v11677_v43  ;;  %v10100_v43 = vpack.c.bf16 %v12034_v11, %v12032_v22  ;;  %v14745_v11 = vand.u32 4294901760, %v12109_v8 }
  0xba   :  { %10091 = vmatpush1.bf16.msra.mxu0 %v10090_v39  ;;  %1805 = vmatprep.mubr.f32.mxu0 %v14650_v26 }
  0xbb   :  { %10093 = vmatprep.subr.bf16.mxu0 %v10092_v60 }
  0xbd   :  { %1811 = vmatmul.mubr.f32.gmra.mrb[22].mxu0 %v11712_v1  ;;  %v10104_v1 = vpack.c.bf16 %v12081_v4, %v12079_v52 }
  0xbe   :  { %10095 = vmatpush1.bf16.msra.mxu0 %v10094_v46  ;;  %1961 = vmatprep.mubr.f32.mxu0 %v14650_v26 }
  0xbf   :  { %10097 = vmatprep.subr.bf16.mxu0 %v10096_v20 }
  0xc1   :  { %1963 = vmatmul.mubr.f32.vlgmr.msra.gmra.mrb[16].mxu0 %v11448_v49 }
  0xc2   :  { %10099 = vmatpush1.bf16.msra.mxu0 %v10098_v23  ;;  %1968 = vmatprep.mubr.f32.mxu0 %v14650_v26 }
  0xc3   :  { %10101 = vmatprep.subr.bf16.mxu0 %v10100_v43 }
  0xc5   :  { %1970 = vmatmul.mubr.f32.gmra.mrb[18].mxu0 %v11542_v15 }
  0xc6   :  { %10103 = vmatpush1.bf16.msra.mxu0 %v10102_v62  ;;  %1975 = vmatprep.mubr.f32.mxu0 %v14650_v26 }
  0xc7   :  { %10105 = vmatprep.subr.bf16.mxu0 %v10104_v1 }
  0xc9   :  { %1977 = vmatmul.mubr.f32.gmra.mrb[20].mxu0 %v11629_v34 }
  0xca   :  { %10107 = vmatpush1.bf16.msra.mxu0 %v10106_v35  ;;  %1982 = vmatprep.mubr.f32.mxu0 %v14650_v26 }
  0xcb   :  { %10109 = vmatprep.subr.bf16.mxu0 %v10108_v63 }
  0xcd   :  { %1984 = vmatmul.mubr.f32.gmra.mrb[22].mxu0 %v11675_v28 }
  0xce   :  { %10111 = vmatpush1.bf16.msra.mxu0 %v10110_v47  ;;  %2086 = vmatprep.mubr.f32.mxu0 %v14650_v26 }
  0xcf   :  { %10113 = vmatprep.subr.bf16.mxu0 %v12019_v24 }
  0xd1   :  { %2089 = vmatmul.mubr.f32.vlgmr.msra.gmra.mrb[16].mxu0 %v14683_v36  ;;  %v10128_v36 = vpack.c.bf16 %v1831_v13, %v1819_v57 }
  0xd2   :  { %10115 = vmatpush1.bf16.msra.mxu0 %v12038_v59  ;;  %2094 = vmatprep.mubr.f32.mxu0 %v14650_v26 }
  0xd3   :  { %10117 = vmatprep.subr.bf16.mxu0 %v12043_v19 }
  0xd5   :  { %2097 = vmatmul.mubr.f32.gmra.mrb[18].mxu0 %v14692_v10  ;;  %v14736_v10 = vand.u32 4294901760, %v12028_v29  ;;  %v14742_v29 = vand.u32 4294901760, %v12079_v52 }
  0xd6   :  { %10119 = vmatpush1.bf16.msra.mxu0 %v12051_v3  ;;  %2102 = vmatprep.mubr.f32.mxu0 %v14650_v26 }
  0xd7   :  { %10121 = vmatprep.subr.bf16.mxu0 %v12057_v9 }
  0xd9   :  { %2105 = vmatmul.mubr.f32.gmra.mrb[20].mxu0 %v11644_v44  ;;  %v14737_v44 = vand.u32 4294901760, %v12030_v37  ;;  %v14743_v37 = vand.u32 4294901760, %v12081_v4 }
  0xda   :  { %10123 = vmatpush1.bf16.msra.mxu0 %v12083_v42  ;;  %2110 = vmatprep.mubr.f32.mxu0 %v14650_v26 }
  0xdb   :  { %10125 = vmatprep.subr.bf16.mxu0 %v12106_v54  ;;  %v10130_v56 = vpack.c.bf16 %v14737_v44, %v14736_v10  ;;  %v10136_v13 = vpack.c.bf16 %v14743_v37, %v14742_v29 }
  0xdd   :  { %2113 = vmatmul.mubr.f32.gmra.mrb[22].mxu0 %v11684_v41  ;;  %v14740_v41 = vand.u32 4294901760, %v12053_v5  ;;  %v14746_v5 = vand.u32 4294901760, %v12111_v27 }
  0xde   :  { %10127 = vmatpush1.bf16.msra.mxu0 %v12115_v48  ;;  %2199 = vmatprep.mubr.f32.mxu0 %v14650_v26 }
  0xdf   :  { %10129 = vmatprep.subr.bf16.mxu0 %v10128_v36  ;;  %v10134_v57 = vpack.c.bf16 %v14741_v32, %v14740_v41  ;;  %v10140_v14 = vpack.c.bf16 %v14746_v5, %v14745_v11  ;;  %v9447_v36 = vld [vmem:[%s14293_s1 + $0x38] sm:$0xff] }
  0xe1   :  { %2203 = vmatmul.mubr.f32.vlgmr.msra.gmra.mrb[16].mxu0 %v14710_v18  ;;  %v14744_v18 = vand.u32 4294901760, %v12104_v33 }
  0xe2   :  { %10131 = vmatpush1.bf16.msra.mxu0 %v10130_v56  ;;  %2208 = vmatprep.mubr.f32.mxu0 %v14650_v26 }
  0xe3   :  { %10133 = vmatprep.subr.bf16.mxu0 %v10132_v6  ;;  %v10138_v22 = vpack.c.bf16 %v14744_v18, %v1873_v55 }
  0xe5   :  { %2212 = vmatmul.mubr.f32.gmra.mrb[18].mxu0 %v14715_v21  ;;  %v10142_v21 = vpack.c.bf16 %v1909_v51, %v1897_v17  ;;  %v9446_v51 = vld [vmem:[%s14293_s1 + $0x30] sm:$0xff] }
  0xe6   :  { %10135 = vmatpush1.bf16.msra.mxu0 %v10134_v57  ;;  %2217 = vmatprep.mubr.f32.mxu0 %v14650_v26  ;;  %v2576_v30 = vsel %vm2568_vm1, %v9446_v51, 0 }
  0xe7   :  { %10137 = vmatprep.subr.bf16.mxu0 %v10136_v13  ;;  %v12335_v43 = vand.u32 4294901760, %v2576_v30  ;;  %v2579_v13 = vsel %vm2568_vm1, %v9447_v36, 0 }
  0xe9   :  { %2221 = vmatmul.mubr.f32.gmra.mrb[20].mxu0 %v11661_v38  ;;  %v9444_v38 = vld [vmem:[%s14293_s1 + $0x20] sm:$0xff]  ;;  %14752 = vst [vmem:[#allocation28_spill] sm:$0xff] %v12335_v43 }
  0xea   :  { %10139 = vmatpush1.bf16.msra.mxu0 %v10138_v22  ;;  %2226 = vmatprep.mubr.f32.mxu0 %v14650_v26 }
  0xeb   :  { %10141 = vmatprep.subr.bf16.mxu0 %v10140_v14 }
  0xed   :  { %2230 = vmatmul.mubr.f32.gmra.mrb[22].mxu0 %v11695_v12 }
  0xee   :  { %10143 = vmatpush1.bf16.msra.mxu0 %v10142_v21  ;;  %2348 = vmatprep.mubr.f32.mxu0 %v14650_v26 }
  0xef   :  { %10145 = vmatprep.subr.bf16.mxu0 %v12019_v24  ;;  %v2570_v24 = vsel %vm2568_vm1, %v9444_v38, 0 }
  0xf1   :  { %2350 = vmatmul.mubr.f32.vlgmr.msra.gmra.mrb[16].mxu0 %v11448_v49 }
  0xf2   :  { %10147 = vmatpush1.bf16.msra.mxu0 %v12038_v59  ;;  %2355 = vmatprep.mubr.f32.mxu0 %v14650_v26  ;;  %v12288_v59 = vand.u32 4294901760, %v2570_v24 }
  0xf3   :  { %10149 = vmatprep.subr.bf16.mxu0 %v12043_v19 }
  0xf5   :  { %2357 = vmatmul.mubr.f32.gmra.mrb[18].mxu0 %v11542_v15 }
  0xf6   :  { %10151 = vmatpush1.bf16.msra.mxu0 %v12051_v3  ;;  %2362 = vmatprep.mubr.f32.mxu0 %v14650_v26 }
  0xf7   :  { %10153 = vmatprep.subr.bf16.mxu0 %v12057_v9 }
  0xf9   :  { %2364 = vmatmul.mubr.f32.gmra.mrb[20].mxu0 %v11629_v34 }
  0xfa   :  { %10155 = vmatpush1.bf16.msra.mxu0 %v12083_v42  ;;  %2369 = vmatprep.mubr.f32.mxu0 %v14650_v26 }
  0xfb   :  { %10157 = vmatprep.subr.bf16.mxu0 %v12106_v54 }
  0xfd   :  { %2371 = vmatmul.mubr.f32.gmra.mrb[22].mxu0 %v11675_v28 }
  0xfe   :  { %10159 = vmatpush1.bf16.msra.mxu0 %v12115_v48  ;;  %2457 = vmatprep.mubr.f32.mxu0 %v14650_v26  ;;  %v12298_v48 = vsub.f32 %v2570_v24, %v12288_v59 }
 0x100   :  { %14748 = vst [vmem:[#allocation16_spill] sm:$0xff] %v12298_v48  ;;  %v12315_v40 = vand.u32 4294901760, %v12298_v48 }
 0x101   :  { %2459 = vmatmul.mubr.f32.vlgmr.msra.gmra.mrb[16].mxu0 %v11448_v49 }
 0x102   :  { %2464 = vmatprep.mubr.f32.mxu0 %v14650_v26  ;;  %14750 = vst [vmem:[#allocation19_spill] sm:$0xff] %v12315_v40  ;;  %v2653_v23 = vsub.f32 %v12298_v48, %v12315_v40 }
 0x105   :  { %2466 = vmatmul.mubr.f32.gmra.mrb[18].mxu0 %v11542_v15  ;;  %v9445_v15 = vld [vmem:[%s14293_s1 + $0x28] sm:$0xff] }
 0x106   :  { %2471 = vmatprep.mubr.f32.mxu0 %v14650_v26 }
 0x109   :  { %2473 = vmatmul.mubr.f32.gmra.mrb[20].mxu0 %v11629_v34 }
 0x10a   :  { %2478 = vmatprep.mubr.f32.mxu0 %v14650_v26 }
 0x10d   :  { %2480 = vmatmul.mubr.f32.gmra.mrb[22].mxu0 %v11675_v28  ;;  %v2573_v28 = vsel %vm2568_vm1, %v9445_v15, 0 }
 0x10e   :  { %v12293_v3 = vand.u32 4294901760, %v2573_v28 }
 0x110   :  { %14747 = vst [vmem:[#allocation21_spill] sm:$0xff] %v12293_v3  ;;  %v12308_v33 = vsub.f32 %v2573_v28, %v12293_v3 }
 0x112   :  { %14749 = vst [vmem:[#allocation17_spill] sm:$0xff] %v12308_v33  ;;  %v12327_v2 = vand.u32 4294901760, %v12308_v33 }
 0x114   :  { %14751 = vst [vmem:[#allocation20_spill] sm:$0xff] %v12327_v2  ;;  %v2664_v41 = vsub.f32 %v12308_v33, %v12327_v2 }
 0x15b   :  { %v12278_v12 = vpop.f32.mrb[0].mxu1 }
 0x15c   :  { %v12280_v49 = vpop.f32.mrb[1].mxu1 }
 0x15f   :  { %v12286_v34 = vpop.f32.mrb[2].mxu1 }
 0x160   :  { %v12291_v19 = vpop.f32.mrb[3].mxu1 }
 0x163   :  { %v12295_v45 = vpop.f32.mrb[4].mxu1 }
 0x164   :  { %v872_v9 = vpop.f32.mrb[0].mxu0  ;;  %v12300_v42 = vpop.f32.mrb[5].mxu1 }
 0x165   :  { %v3233_v52 = vand.u32 4294901760, %v872_v9  ;;  %v874_v4 = vpop.f32.mrb[1].mxu0 }
 0x166   :  { %v3231_v16 = vand.u32 4294901760, %v874_v4 }
 0x167   :  { %v12305_v17 = vsub.f32 %v872_v9, %v3233_v52  ;;  %v12312_v27 = vpop.f32.mrb[6].mxu1 }
 0x168   :  { %v12310_v54 = vsub.f32 %v874_v4, %v3231_v16  ;;  %v879_v8 = vpop.f32.mrb[2].mxu0  ;;  %v12318_v7 = vpop.f32.mrb[7].mxu1  ;;  %v12368_v4 = vsub.f32 %v2576_v30, %v12335_v43 }
 0x169   :  { %v3352_v55 = vand.u32 4294901760, %v12305_v17  ;;  %v3237_v61 = vand.u32 4294901760, %v879_v8  ;;  %v881_v53 = vpop.f32.mrb[3].mxu0 }
 0x16a   :  { %v3346_v25 = vand.u32 4294901760, %v12310_v54  ;;  %v3235_v0 = vand.u32 4294901760, %v881_v53  ;;  %14757 = vst [vmem:[#allocation27_spill] sm:$0xff] %v12368_v4 }
 0x16b   :  { %v12322_v39 = vpack.c.bf16 %v3237_v61, %v3233_v52  ;;  %v12324_v58 = vsub.f32 %v879_v8, %v3237_v61  ;;  %v3353_v62 = vsub.f32 %v12305_v17, %v3352_v55  ;;  %v12376_v61 = vand.u32 4294901760, %v2579_v13 }
 0x16c   :  { %v12329_v60 = vpack.c.bf16 %v3235_v0, %v3231_v16  ;;  %v12331_v46 = vsub.f32 %v881_v53, %v3235_v0  ;;  %v886_v20 = vpop.f32.mrb[4].mxu0  ;;  %v3347_v10 = vsub.f32 %v12310_v54, %v3346_v25 }
 0x16d   :  { %v3364_v1 = vand.u32 4294901760, %v12324_v58  ;;  %v6661_v63 = vand.u32 4294901760, %v886_v20  ;;  %v888_v47 = vpop.f32.mrb[5].mxu0  ;;  %v3354_v22 = vand.u32 4294901760, %v3353_v62  ;;  %14760 = vst [vmem:[#allocation31_spill] sm:$0xff] %v12376_v61 }
 0x16e   :  { %v3358_v44 = vand.u32 4294901760, %v12331_v46  ;;  %v6659_v56 = vand.u32 4294901760, %v888_v47  ;;  %v3348_v15 = vand.u32 4294901760, %v3347_v10 }
 0x16f   :  { %v3365_v31 = vsub.f32 %v12324_v58, %v3364_v1  ;;  %v12349_v6 = vsub.f32 %v886_v20, %v6661_v63  ;;  %v12353_v32 = vpack.c.bf16 %v3364_v1, %v3352_v55 }
 0x170   :  { %v3359_v57 = vsub.f32 %v12331_v46, %v3358_v44  ;;  %v12356_v29 = vsub.f32 %v888_v47, %v6659_v56  ;;  %v893_v37 = vpop.f32.mrb[6].mxu0  ;;  %v12359_v18 = vpack.c.bf16 %v3358_v44, %v3346_v25 }
 0x171   :  { %14753 = vst [vmem:[#allocation22_spill] sm:$0xff] %v12349_v6  ;;  %v3366_v11 = vand.u32 4294901760, %v3365_v31  ;;  %v6780_v5 = vand.u32 4294901760, %v12349_v6  ;;  %v6665_v14 = vand.u32 4294901760, %v893_v37  ;;  %v895_v21 = vpop.f32.mrb[7].mxu0 }
 0x172   :  { %14754 = vst [vmem:[#allocation24_spill] sm:$0xff] %v12356_v29  ;;  %v6774_v38 = vand.u32 4294901760, %v12356_v29  ;;  %v6663_v24 = vand.u32 4294901760, %v895_v21  ;;  %v3360_v28 = vand.u32 4294901760, %v3359_v57 }
 0x173   :  { %v12363_v9 = vpack.c.bf16 %v6665_v14, %v6661_v63  ;;  %v12365_v52 = vsub.f32 %v893_v37, %v6665_v14  ;;  %v12370_v16 = vpack.c.bf16 %v3366_v11, %v3354_v22  ;;  %v6781_v25 = vsub.f32 %v12349_v6, %v6780_v5 }
 0x174   :  { %v12372_v51 = vpack.c.bf16 %v6663_v24, %v6659_v56  ;;  %v12374_v8 = vsub.f32 %v895_v21, %v6663_v24  ;;  %v985_v55 = vpop.f32.mrb[8].mxu0  ;;  %v12378_v53 = vpack.c.bf16 %v3360_v28, %v3348_v15  ;;  %v6775_v1 = vsub.f32 %v12356_v29, %v6774_v38 }
 0x175   :  { %14755 = vst [vmem:[#allocation9_spill] sm:$0xff] %v12363_v9  ;;  %14756 = vst [vmem:[#allocation26_spill] sm:$0xff] %v12365_v52  ;;  %v6792_v0 = vand.u32 4294901760, %v12365_v52  ;;  %v10688_v30 = vadd.f32 %v12278_v12, %v985_v55  ;;  %v987_v62 = vpop.f32.mrb[9].mxu0  ;;  %v12392_v56 = vand.u32 4294901760, %v12368_v4  ;;  %v12398_v22 = vsub.f32 %v2579_v13, %v12376_v61 }
 0x176   :  { %14758 = vst [vmem:[#allocation10_spill] sm:$0xff] %v12372_v51  ;;  %14759 = vst [vmem:[#allocation29_spill] sm:$0xff] %v12374_v8  ;;  %v6786_v63 = vand.u32 4294901760, %v12374_v8  ;;  %v10689_v47 = vadd.f32 %v12280_v49, %v987_v62  ;;  %v6782_v49 = vand.u32 4294901760, %v6781_v25  ;;  %v6776_v55 = vand.u32 4294901760, %v6775_v1 }
 0x177   :  { %v6793_v10 = vsub.f32 %v12365_v52, %v6792_v0  ;;  %v2583_v44 = vand.u32 4294901760, %v10688_v30  ;;  %14761 = vst [vmem:[#allocation11_spill] sm:$0xff] %v12392_v56  ;;  %v12394_v31 = vpack.c.bf16 %v6792_v0, %v6780_v5  ;;  %14763 = vst [vmem:[#allocation13_spill] sm:$0xff] %v12398_v22  ;;  %v12412_v13 = vand.u32 4294901760, %v2653_v23 }
 0x178   :  { %v6787_v12 = vsub.f32 %v12374_v8, %v6786_v63  ;;  %v2581_v57 = vand.u32 4294901760, %v10689_v47  ;;  %v996_v37 = vpop.f32.mrb[10].mxu0  ;;  %v12400_v11 = vpack.c.bf16 %v6786_v63, %v6774_v38  ;;  %v12417_v63 = vand.u32 4294901760, %v2664_v41 }
 0x179   :  { %14762 = vst [vmem:[#allocation12_spill] sm:$0xff] %v12394_v31  ;;  %v6794_v14 = vand.u32 4294901760, %v6793_v10  ;;  %v12402_v21 = vsub.f32 %v10688_v30, %v2583_v44  ;;  %v10690_v24 = vadd.f32 %v12286_v34, %v996_v37  ;;  %v998_v15 = vpop.f32.mrb[11].mxu0  ;;  %14765 = vst [vmem:[#allocation14_spill] sm:$0xff] %v12412_v13  ;;  %v2675_v23 = vsub.f32 %v12368_v4, %v12392_v56 }
 0x17a   :  { %14764 = vst [vmem:[#allocation23_spill] sm:$0xff] %v12400_v11  ;;  %v12405_v28 = vsub.f32 %v10689_v47, %v2581_v57  ;;  %v10691_v5 = vadd.f32 %v12291_v19, %v998_v15  ;;  %v6788_v0 = vand.u32 4294901760, %v6787_v12  ;;  %14767 = vst [vmem:[#allocation30_spill] sm:$0xff] %v12417_v63  ;;  %v12432_v41 = vand.u32 4294901760, %v12398_v22 }
 0x17b   :  { %v2702_v62 = vand.u32 4294901760, %v12402_v21  ;;  %v2587_v20 = vand.u32 4294901760, %v10690_v24  ;;  %v12414_v38 = vpack.c.bf16 %v6794_v14, %v6782_v49 }
 0x17c   :  { %v2696_v25 = vand.u32 4294901760, %v12405_v28  ;;  %v2585_v34 = vand.u32 4294901760, %v10691_v5  ;;  %v1007_v30 = vpop.f32.mrb[12].mxu0  ;;  %v12419_v47 = vpack.c.bf16 %v6788_v0, %v6776_v55  ;;  %14769 = vst [vmem:[#allocation25_spill] sm:$0xff] %v12432_v41 }
 0x17d   :  { %14766 = vst [vmem:[#allocation15_spill] sm:$0xff] %v12414_v38  ;;  %v12421_v19 = vpack.c.bf16 %v2587_v20, %v2583_v44  ;;  %v12423_v1 = vsub.f32 %v10690_v24, %v2587_v20  ;;  %v10692_v10 = vadd.f32 %v12295_v45, %v1007_v30  ;;  %v1009_v12 = vpop.f32.mrb[13].mxu0  ;;  %v2703_v15 = vsub.f32 %v12402_v21, %v2702_v62 }
 0x17e   :  { %14768 = vst [vmem:[#allocation18_spill] sm:$0xff] %v12419_v47  ;;  %v2707_v37 = vsub.f32 %v10691_v5, %v2585_v34  ;;  %v10693_v49 = vadd.f32 %v12300_v42, %v1009_v12  ;;  %v12429_v14 = vpack.c.bf16 %v2585_v34, %v2581_v57  ;;  %v2697_v42 = vsub.f32 %v12405_v28, %v2696_v25 }
 0x17f   :  { %v2714_v44 = vand.u32 4294901760, %v12423_v1  ;;  %v10170_v20 = vpack.c.bf16 %v12423_v1, %v12402_v21  ;;  %v6023_v45 = vand.u32 4294901760, %v10692_v10  ;;  %v2704_v11 = vand.u32 4294901760, %v2703_v15 }
 0x180   :  { %v2708_v24 = vand.u32 4294901760, %v2707_v37  ;;  %v6021_v55 = vand.u32 4294901760, %v10693_v49  ;;  %v1018_v0 = vpop.f32.mrb[14].mxu0  ;;  %10161 = vmatprep.subr.bf16.mxu1 %v12429_v14  ;;  %v10168_v57 = vpack.c.bf16 %v2707_v37, %v12405_v28 }
 0x181   :  { %v2715_v5 = vsub.f32 %v12423_v1, %v2714_v44  ;;  %v12442_v34 = vsub.f32 %v10692_v10, %v6023_v45  ;;  %v10694_v30 = vadd.f32 %v12312_v27, %v1018_v0  ;;  %v1020_v12 = vpop.f32.mrb[15].mxu0  ;;  %10163 = vmatpush1.bf16.msra.mxu1 %v12421_v19  ;;  %v12446_v21 = vpack.c.bf16 %v2714_v44, %v2702_v62 }
 0x182   :  { %v12448_v36 = vsub.f32 %v10693_v49, %v6021_v55  ;;  %v10695_v35 = vadd.f32 %v12318_v7, %v1020_v12  ;;  %v2709_v50 = vsub.f32 %v2707_v37, %v2708_v24  ;;  %v10176_v31 = vpack.c.bf16 %v2708_v24, %v2696_v25 }
 0x183   :  { %v2716_v6 = vand.u32 4294901760, %v2715_v5  ;;  %v6142_v28 = vand.u32 4294901760, %v12442_v34  ;;  %v6027_v1 = vand.u32 4294901760, %v10694_v30  ;;  %v2698_v27 = vand.u32 4294901760, %v2697_v42 }
 0x184   :  { %v6136_v10 = vand.u32 4294901760, %v12448_v36  ;;  %v6025_v52 = vand.u32 4294901760, %v10695_v35  ;;  %2655 = vmatmul.mubr.f32.vlgmr.msra.gmra.mrb[8].mxu1 %v12412_v13  ;;  %v2710_v0 = vand.u32 4294901760, %v2709_v50  ;;  %v12467_v50 = vand.u32 4294901760, %v2675_v23 }
 0x185   :  { %v12454_v62 = vpack.c.bf16 %v6027_v1, %v6023_v45  ;;  %v12456_v49 = vsub.f32 %v10694_v30, %v6027_v1  ;;  %2660 = vmatprep.mubr.f32.mxu1 %v14650_v26  ;;  %v10166_v7 = vpack.c.bf16 %v2716_v6, %v2704_v11  ;;  %v6143_v44 = vsub.f32 %v12442_v34, %v6142_v28 }
 0x186   :  { %v12459_v25 = vsub.f32 %v10695_v35, %v6025_v52  ;;  %v10164_v37 = vpack.c.bf16 %v2710_v0, %v2698_v27  ;;  %v12461_v15 = vpack.c.bf16 %v6025_v52, %v6021_v55  ;;  %14772 = vst [vmem:[#allocation34_spill] sm:$0xff] %v12467_v50  ;;  %v2686_v35 = vsub.f32 %v12398_v22, %v12432_v41 }
 0x187   :  { %14770 = vst [vmem:[#allocation32_spill] sm:$0xff] %v12454_v62  ;;  %v6154_v24 = vand.u32 4294901760, %v12456_v49  ;;  %v6137_v6 = vsub.f32 %v12448_v36, %v6136_v10  ;;  %v6144_v30 = vand.u32 4294901760, %v6143_v44 }
 0x188   :  { %14771 = vst [vmem:[#allocation33_spill] sm:$0xff] %v12461_v15  ;;  %v6148_v45 = vand.u32 4294901760, %v12459_v25  ;;  %2666 = vmatmul.mubr.f32.gmra.mrb[10].mxu1 %v12417_v63  ;;  %10165 = vmatprep.subr.bf16.mxu1 %v10164_v37  ;;  %v12484_v1 = vand.u32 4294901760, %v2686_v35 }
 0x189   :  { %v6155_v11 = vsub.f32 %v12456_v49, %v6154_v24  ;;  %10167 = vmatpush1.bf16.msra.mxu1 %v10166_v7  ;;  %2671 = vmatprep.mubr.f32.mxu1 %v14650_v26  ;;  %v12478_v23 = vpack.c.bf16 %v6154_v24, %v6142_v28  ;;  %v6138_v27 = vand.u32 4294901760, %v6137_v6 }
 0x18a   :  { %10169 = vmatprep.subr.bf16.mxu1 %v10168_v57  ;;  %v6149_v55 = vsub.f32 %v12459_v25, %v6148_v45  ;;  %v12481_v5 = vpack.c.bf16 %v6148_v45, %v6136_v10  ;;  %14775 = vst [vmem:[#allocation37_spill] sm:$0xff] %v12484_v1  ;;  %v2512_v10 = vld [vmem:[%s14293_s1 + $0x10] sm:$0xff] }
 0x18b   :  { %14773 = vst [vmem:[#allocation35_spill] sm:$0xff] %v12478_v23  ;;  %v6156_v12 = vand.u32 4294901760, %v6155_v11  ;;  %v3226_v24 = vsel %vm2568_vm1, %v2512_v10, 0  ;;  %v2513_v11 = vld [vmem:[%s14293_s1 + $0x18] sm:$0xff] }
 0x18c   :  { %14774 = vst [vmem:[#allocation36_spill] sm:$0xff] %v12481_v5  ;;  %2677 = vmatmul.mubr.f32.gmra.mrb[12].mxu1 %v12467_v50  ;;  %v6150_v0 = vand.u32 4294901760, %v6149_v55 }
 0x18d   :  { %2682 = vmatprep.mubr.f32.mxu1 %v14650_v26  ;;  %v12487_v7 = vpack.c.bf16 %v6156_v12, %v6144_v30  ;;  %v12565_v12 = vand.u32 4294901760, %v3226_v24 }
 0x18e   :  { %v12489_v37 = vpack.c.bf16 %v6150_v0, %v6138_v27 }
 0x18f   :  { %v12581_v52 = vsub.f32 %v3226_v24, %v12565_v12 }
 0x190   :  { %2688 = vmatmul.mubr.f32.gmra.mrb[14].mxu1 %v12484_v1 }
 0x191   :  { %2778 = vmatprep.mubr.f32.mxu1 %v14650_v26  ;;  %v12606_v51 = vand.u32 4294901760, %v12581_v52 }
 0x194   :  { %2780 = vmatmul.mubr.f32.vlgmr.msra.gmra.mrb[8].mxu1 %v12288_v59 }
 0x195   :  { %10171 = vmatpush1.bf16.msra.mxu1 %v10170_v20  ;;  %2785 = vmatprep.mubr.f32.mxu1 %v14650_v26 }
 0x196   :  { %10173 = vmatprep.subr.bf16.mxu1 %v12429_v14 }
 0x198   :  { %2787 = vmatmul.mubr.f32.gmra.mrb[10].mxu1 %v12293_v3 }
 0x199   :  { %2792 = vmatprep.mubr.f32.mxu1 %v14650_v26 }
 0x19c   :  { %2794 = vmatmul.mubr.f32.gmra.mrb[12].mxu1 %v12335_v43 }
 0x19d   :  { %2799 = vmatprep.mubr.f32.mxu1 %v14650_v26 }
 0x1a0   :  { %2801 = vmatmul.mubr.f32.gmra.mrb[14].mxu1 %v12376_v61 }
 0x1a1   :  { %2879 = vmatprep.mubr.f32.mxu1 %v14650_v26 }
 0x1a4   :  { %2882 = vmatmul.mubr.f32.vlgmr.msra.gmra.mrb[8].mxu1 %v12298_v48 }
 0x1a5   :  { %10175 = vmatpush1.bf16.msra.mxu1 %v12421_v19  ;;  %2887 = vmatprep.mubr.f32.mxu1 %v14650_v26 }
 0x1a6   :  { %10177 = vmatprep.subr.bf16.mxu1 %v10176_v31  ;;  %v2510_v31 = vld [vmem:[%s14293_s1] sm:$0xff] }
 0x1a7   :  { %v3220_v20 = vsel %vm2568_vm1, %v2510_v31, 0 }
 0x1a8   :  { %2890 = vmatmul.mubr.f32.gmra.mrb[10].mxu1 %v12308_v33  ;;  %v12535_v57 = vand.u32 4294901760, %v3220_v20 }
 0x1a9   :  { %2895 = vmatprep.mubr.f32.mxu1 %v14650_v26 }
 0x1aa   :  { %v12542_v28 = vsub.f32 %v3220_v20, %v12535_v57 }
 0x1ac   :  { %2898 = vmatmul.mubr.f32.gmra.mrb[12].mxu1 %v12368_v4  ;;  %v12554_v45 = vand.u32 4294901760, %v12542_v28 }
 0x1ad   :  { %2903 = vmatprep.mubr.f32.mxu1 %v14650_v26 }
 0x1ae   :  { %v3303_v31 = vsub.f32 %v12542_v28, %v12554_v45 }
 0x1b0   :  { %2906 = vmatmul.mubr.f32.gmra.mrb[14].mxu1 %v12398_v22  ;;  %v12591_v29 = vand.u32 4294901760, %v3303_v31 }
 0x1b1   :  { %2980 = vmatprep.mubr.f32.mxu1 %v14650_v26 }
 0x1b4   :  { %2984 = vmatmul.mubr.f32.vlgmr.msra.gmra.mrb[8].mxu1 %v12315_v40 }
 0x1b5   :  { %10179 = vmatpush1.bf16.msra.mxu1 %v12446_v21  ;;  %2989 = vmatprep.mubr.f32.mxu1 %v14650_v26 }
 0x1b6   :  { %10181 = vmatprep.subr.bf16.mxu1 %v12429_v14  ;;  %v2511_v14 = vld [vmem:[%s14293_s1 + $0x8] sm:$0xff] }
 0x1b8   :  { %2993 = vmatmul.mubr.f32.gmra.mrb[10].mxu1 %v12327_v2 }
 0x1b9   :  { %2998 = vmatprep.mubr.f32.mxu1 %v14650_v26 }
 0x1bc   :  { %3002 = vmatmul.mubr.f32.gmra.mrb[12].mxu1 %v12392_v56 }
 0x1bd   :  { %3007 = vmatprep.mubr.f32.mxu1 %v14650_v26 }
 0x1c0   :  { %3011 = vmatmul.mubr.f32.gmra.mrb[14].mxu1 %v12432_v41 }
 0x1c1   :  { %3093 = vmatprep.mubr.f32.mxu1 %v14650_v26 }
 0x1c4   :  { %3095 = vmatmul.mubr.f32.vlgmr.msra.gmra.mrb[8].mxu1 %v12288_v59 }
 0x1c5   :  { %10183 = vmatpush1.bf16.msra.mxu1 %v12421_v19  ;;  %3100 = vmatprep.mubr.f32.mxu1 %v14650_v26  ;;  %v3223_v19 = vsel %vm2568_vm1, %v2511_v14, 0  ;;  %v3229_v14 = vsel %vm2568_vm1, %v2513_v11, 0 }
 0x1c6   :  { %10185 = vmatprep.subr.bf16.mxu1 %v12329_v60  ;;  %v12538_v21 = vand.u32 4294901760, %v3223_v19  ;;  %v12584_v50 = vand.u32 4294901760, %v3229_v14 }
 0x1c8   :  { %3102 = vmatmul.mubr.f32.gmra.mrb[10].mxu1 %v12293_v3  ;;  %v12549_v44 = vsub.f32 %v3223_v19, %v12538_v21 }
 0x1c9   :  { %3107 = vmatprep.mubr.f32.mxu1 %v14650_v26 }
 0x1ca   :  { %v12558_v6 = vand.u32 4294901760, %v12549_v44 }
 0x1cc   :  { %3109 = vmatmul.mubr.f32.gmra.mrb[12].mxu1 %v12335_v43  ;;  %v3314_v10 = vsub.f32 %v12549_v44, %v12558_v6 }
 0x1cd   :  { %3114 = vmatprep.mubr.f32.mxu1 %v14650_v26 }
 0x1ce   :  { %v12599_v9 = vand.u32 4294901760, %v3314_v10 }
 0x1d0   :  { %3116 = vmatmul.mubr.f32.gmra.mrb[14].mxu1 %v12376_v61 }
 0x1d1   :  { %3190 = vmatprep.mubr.f32.mxu1 %v14650_v26 }
 0x1d4   :  { %3192 = vmatmul.mubr.f32.vlgmr.msra.gmra.mrb[8].mxu1 %v12288_v59  ;;  %v2460_v35 = vpop.f32.mrb[16].mxu0 }
 0x1d5   :  { %10187 = vmatpush1.bf16.msra.mxu1 %v12322_v39  ;;  %3197 = vmatprep.mubr.f32.mxu1 %v14650_v26  ;;  %v3887_v55 = vand.u32 4294901760, %v2460_v35  ;;  %v2462_v30 = vpop.f32.mrb[17].mxu0 }
 0x1d6   :  { %10189 = vmatprep.subr.bf16.mxu1 %v12378_v53  ;;  %v3885_v27 = vand.u32 4294901760, %v2462_v30 }
 0x1d7   :  { %v12568_v0 = vsub.f32 %v2460_v35, %v3887_v55 }
 0x1d8   :  { %3199 = vmatmul.mubr.f32.gmra.mrb[10].mxu1 %v12293_v3  ;;  %v12574_v20 = vsub.f32 %v2462_v30, %v3885_v27  ;;  %v2467_v19 = vpop.f32.mrb[18].mxu0 }
 0x1d9   :  { %3204 = vmatprep.mubr.f32.mxu1 %v14650_v26  ;;  %v4006_v53 = vand.u32 4294901760, %v12568_v0  ;;  %v3891_v42 = vand.u32 4294901760, %v2467_v19  ;;  %v2469_v35 = vpop.f32.mrb[19].mxu0 }
 0x1da   :  { %v4000_v1 = vand.u32 4294901760, %v12574_v20  ;;  %v3889_v11 = vand.u32 4294901760, %v2469_v35 }
 0x1db   :  { %v4007_v30 = vsub.f32 %v12568_v0, %v4006_v53  ;;  %v12587_v63 = vpack.c.bf16 %v3891_v42, %v3887_v55  ;;  %v12589_v13 = vsub.f32 %v2467_v19, %v3891_v42 }
 0x1dc   :  { %3206 = vmatmul.mubr.f32.gmra.mrb[12].mxu1 %v12335_v43  ;;  %v4001_v8 = vsub.f32 %v12574_v20, %v4000_v1  ;;  %v12595_v38 = vpack.c.bf16 %v3889_v11, %v3885_v27  ;;  %v12597_v24 = vsub.f32 %v2469_v35, %v3889_v11  ;;  %v2474_v47 = vpop.f32.mrb[20].mxu0  ;;  %v12610_v35 = vsub.f32 %v3229_v14, %v12584_v50 }
 0x1dd   :  { %3211 = vmatprep.mubr.f32.mxu1 %v14650_v26  ;;  %v4018_v55 = vand.u32 4294901760, %v12589_v13  ;;  %v7303_v31 = vand.u32 4294901760, %v2474_v47  ;;  %v2476_v19 = vpop.f32.mrb[21].mxu0  ;;  %v4008_v11 = vand.u32 4294901760, %v4007_v30 }
 0x1de   :  { %v4012_v27 = vand.u32 4294901760, %v12597_v24  ;;  %v7301_v41 = vand.u32 4294901760, %v2476_v19  ;;  %v4002_v4 = vand.u32 4294901760, %v4001_v8 }
 0x1df   :  { %v4019_v56 = vsub.f32 %v12589_v13, %v4018_v55  ;;  %v12615_v2 = vsub.f32 %v2474_v47, %v7303_v31  ;;  %v12617_v42 = vpack.c.bf16 %v4018_v55, %v4006_v53  ;;  %v3325_v53 = vsub.f32 %v12581_v52, %v12606_v51 }
 0x1e0   :  { %3213 = vmatmul.mubr.f32.gmra.mrb[14].mxu1 %v12376_v61  ;;  %v4013_v23 = vsub.f32 %v12597_v24, %v4012_v27  ;;  %v12621_v40 = vsub.f32 %v2476_v19, %v7301_v41  ;;  %v2481_v22 = vpop.f32.mrb[22].mxu0  ;;  %v12623_v14 = vpack.c.bf16 %v4012_v27, %v4000_v1  ;;  %v12631_v19 = vand.u32 4294901760, %v12610_v35 }
 0x1e1   :  { %14776 = vst [vmem:[#allocation38_spill] sm:$0xff] %v12615_v2  ;;  %v4020_v33 = vand.u32 4294901760, %v4019_v56  ;;  %3299 = vmatprep.mubr.f32.mxu1 %v14650_v26  ;;  %v7422_v30 = vand.u32 4294901760, %v12615_v2  ;;  %v7307_v10 = vand.u32 4294901760, %v2481_v22  ;;  %v2483_v47 = vpop.f32.mrb[23].mxu0 }
 0x1e2   :  { %14777 = vst [vmem:[#allocation39_spill] sm:$0xff] %v12621_v40  ;;  %v7416_v55 = vand.u32 4294901760, %v12621_v40  ;;  %v7305_v5 = vand.u32 4294901760, %v2483_v47  ;;  %v4014_v62 = vand.u32 4294901760, %v4013_v23 }
 0x1e3   :  { %v7423_v8 = vsub.f32 %v12615_v2, %v7422_v30  ;;  %v12634_v1 = vpack.c.bf16 %v7307_v10, %v7303_v31  ;;  %v12636_v56 = vsub.f32 %v2481_v22, %v7307_v10  ;;  %v12638_v27 = vpack.c.bf16 %v4020_v33, %v4008_v11 }
 0x1e4   :  { %3305 = vmatmul.mubr.f32.vlgmr.msra.gmra.mrb[8].mxu1 %v12591_v29  ;;  %v7417_v48 = vsub.f32 %v12621_v40, %v7416_v55  ;;  %v12642_v61 = vpack.c.bf16 %v7305_v5, %v7301_v41  ;;  %v12644_v43 = vsub.f32 %v2483_v47, %v7305_v5  ;;  %v12646_v3 = vpack.c.bf16 %v4014_v62, %v4002_v4 }
 0x1e5   :  { %14778 = vst [vmem:[#allocation40_spill] sm:$0xff] %v12634_v1  ;;  %14779 = vst [vmem:[#allocation41_spill] sm:$0xff] %v12636_v56  ;;  %10191 = vmatpush1.bf16.msra.mxu1 %v12370_v16  ;;  %3310 = vmatprep.mubr.f32.mxu1 %v14650_v26  ;;  %v7434_v23 = vand.u32 4294901760, %v12636_v56  ;;  %v14781_v22 = vpack.c.bf16 %v12331_v46, %v12310_v54  ;;  %v7424_v4 = vand.u32 4294901760, %v7423_v8  ;;  %v12660_v16 = vand.u32 4294901760, %v3325_v53 }
 0x1e6   :  { %14780 = vst [vmem:[#allocation42_spill] sm:$0xff] %v12644_v43  ;;  %v7428_v41 = vand.u32 4294901760, %v12644_v43  ;;  %v3336_v54 = vsub.f32 %v12610_v35, %v12631_v19  ;;  %v7418_v46 = vand.u32 4294901760, %v7417_v48  ;;  %v14786_v48 = vpack.c.bf16 %v12324_v58, %v12305_v17  ;;  %v9448_v17 = vld [vmem:[%s14293_s1 + $0x40] sm:$0xff] }
 0x1e7   :  { %10193 = vmatprep.subr.bf16.mxu1 %v14781_v22  ;;  %v7435_v62 = vsub.f32 %v12636_v56, %v7434_v23  ;;  %v12662_v31 = vpack.c.bf16 %v7434_v23, %v7422_v30  ;;  %v3874_v58 = vsel %vm2568_vm1, %v9448_v17, 0 }
 0x1e8   :  { %3316 = vmatmul.mubr.f32.gmra.mrb[10].mxu1 %v12599_v9  ;;  %v7429_v10 = vsub.f32 %v12644_v43, %v7428_v41  ;;  %v12668_v11 = vpack.c.bf16 %v7428_v41, %v7416_v55  ;;  %v12674_v30 = vand.u32 4294901760, %v3336_v54 }
 0x1e9   :  { %14782 = vst [vmem:[#allocation43_spill] sm:$0xff] %v12662_v31  ;;  %v7436_v47 = vand.u32 4294901760, %v7435_v62  ;;  %3321 = vmatprep.mubr.f32.mxu1 %v14650_v26 }
 0x1ea   :  { %14783 = vst [vmem:[#allocation44_spill] sm:$0xff] %v12668_v11  ;;  %v7430_v8 = vand.u32 4294901760, %v7429_v10  ;;  %v13157_v11 = vld [vmem:[%s14295_s3 + $0xe0] sm:$0xff] }
 0x1eb   :  { %v12671_v22 = vpack.c.bf16 %v7436_v47, %v7424_v4  ;;  %v9451_v4 = vld [vmem:[%s14293_s1 + $0x58] sm:$0xff] }
 0x1ec   :  { %3327 = vmatmul.mubr.f32.gmra.mrb[12].mxu1 %v12660_v16  ;;  %v12676_v53 = vpack.c.bf16 %v7430_v8, %v7418_v46  ;;  %v3883_v46 = vsel %vm2568_vm1, %v9451_v4, 0 }
 0x1ed   :  { %14784 = vst [vmem:[#allocation45_spill] sm:$0xff] %v12671_v22  ;;  %3332 = vmatprep.mubr.f32.mxu1 %v14650_v26 }
 0x1ee   :  { %14785 = vst [vmem:[#allocation46_spill] sm:$0xff] %v12676_v53 }
 0x1f0   :  { %3338 = vmatmul.mubr.f32.gmra.mrb[14].mxu1 %v12674_v30 }
 0x1f1   :  { %3428 = vmatprep.mubr.f32.mxu1 %v14650_v26 }
 0x1f4   :  { %3430 = vmatmul.mubr.f32.vlgmr.msra.gmra.mrb[8].mxu1 %v12535_v57 }
 0x1f5   :  { %10195 = vmatpush1.bf16.msra.mxu1 %v14786_v48  ;;  %3435 = vmatprep.mubr.f32.mxu1 %v14650_v26  ;;  %v12769_v48 = vand.u32 4294901760, %v3883_v46 }
 0x1f6   :  { %10197 = vmatprep.subr.bf16.mxu1 %v12329_v60 }
 0x1f7   :  { %14795 = vst [vmem:[#allocation55_spill] sm:$0xff] %v12769_v48 }
 0x1f8   :  { %3437 = vmatmul.mubr.f32.gmra.mrb[10].mxu1 %v12538_v21 }
 0x1f9   :  { %3442 = vmatprep.mubr.f32.mxu1 %v14650_v26 }
 0x1fc   :  { %3444 = vmatmul.mubr.f32.gmra.mrb[12].mxu1 %v12565_v12 }
 0x1fd   :  { %3449 = vmatprep.mubr.f32.mxu1 %v14650_v26 }
 0x200   :  { %3451 = vmatmul.mubr.f32.gmra.mrb[14].mxu1 %v12584_v50 }
 0x201   :  { %3529 = vmatprep.mubr.f32.mxu1 %v14650_v26 }
 0x204   :  { %3532 = vmatmul.mubr.f32.vlgmr.msra.gmra.mrb[8].mxu1 %v12542_v28 }
 0x205   :  { %10199 = vmatpush1.bf16.msra.mxu1 %v12322_v39  ;;  %3537 = vmatprep.mubr.f32.mxu1 %v14650_v26 }
 0x206   :  { %10201 = vmatprep.subr.bf16.mxu1 %v12359_v18  ;;  %v9450_v18 = vld [vmem:[%s14293_s1 + $0x50] sm:$0xff] }
 0x207   :  { %v3880_v41 = vsel %vm2568_vm1, %v9450_v18, 0 }
 0x208   :  { %3540 = vmatmul.mubr.f32.gmra.mrb[10].mxu1 %v12549_v44  ;;  %v12756_v54 = vand.u32 4294901760, %v3880_v41 }
 0x209   :  { %3545 = vmatprep.mubr.f32.mxu1 %v14650_v26 }
 0x20a   :  { %14792 = vst [vmem:[#allocation52_spill] sm:$0xff] %v12756_v54  ;;  %v12767_v8 = vsub.f32 %v3880_v41, %v12756_v54 }
 0x20c   :  { %3548 = vmatmul.mubr.f32.gmra.mrb[12].mxu1 %v12581_v52  ;;  %14794 = vst [vmem:[#allocation54_spill] sm:$0xff] %v12767_v8 }
 0x20d   :  { %3553 = vmatprep.mubr.f32.mxu1 %v14650_v26 }
 0x210   :  { %3556 = vmatmul.mubr.f32.gmra.mrb[14].mxu1 %v12610_v35 }
 0x211   :  { %3630 = vmatprep.mubr.f32.mxu1 %v14650_v26 }
 0x214   :  { %3634 = vmatmul.mubr.f32.vlgmr.msra.gmra.mrb[8].mxu1 %v12554_v45 }
 0x215   :  { %10203 = vmatpush1.bf16.msra.mxu1 %v12353_v32  ;;  %3639 = vmatprep.mubr.f32.mxu1 %v14650_v26 }
 0x216   :  { %10205 = vmatprep.subr.bf16.mxu1 %v12329_v60  ;;  %v12729_v60 = vand.u32 4294901760, %v3874_v58 }
 0x218   :  { %3643 = vmatmul.mubr.f32.gmra.mrb[10].mxu1 %v12558_v6  ;;  %14787 = vst [vmem:[#allocation47_spill] sm:$0xff] %v12729_v60  ;;  %v12738_v55 = vsub.f32 %v3874_v58, %v12729_v60 }
 0x219   :  { %3648 = vmatprep.mubr.f32.mxu1 %v14650_v26 }
 0x21a   :  { %14788 = vst [vmem:[#allocation48_spill] sm:$0xff] %v12738_v55  ;;  %v12751_v62 = vand.u32 4294901760, %v12738_v55 }
 0x21c   :  { %3652 = vmatmul.mubr.f32.gmra.mrb[12].mxu1 %v12606_v51  ;;  %14790 = vst [vmem:[#allocation50_spill] sm:$0xff] %v12751_v62 }
 0x21d   :  { %3657 = vmatprep.mubr.f32.mxu1 %v14650_v26 }
 0x220   :  { %3661 = vmatmul.mubr.f32.gmra.mrb[14].mxu1 %v12631_v19 }
 0x221   :  { %3743 = vmatprep.mubr.f32.mxu1 %v14650_v26 }
 0x224   :  { %3745 = vmatmul.mubr.f32.vlgmr.msra.gmra.mrb[8].mxu1 %v12535_v57 }
 0x225   :  { %10207 = vmatpush1.bf16.msra.mxu1 %v12322_v39  ;;  %3750 = vmatprep.mubr.f32.mxu1 %v14650_v26  ;;  %v9449_v39 = vld [vmem:[%s14293_s1 + $0x48] sm:$0xff] }
 0x226   :  { %10209 = vmatprep.subr.bf16.mxu1 %v12595_v38  ;;  %v3877_v32 = vsel %vm2568_vm1, %v9449_v39, 0  ;;  %v12778_v39 = vand.u32 4294901760, %v12767_v8 }
 0x227   :  { %v12740_v23 = vand.u32 4294901760, %v3877_v32 }
 0x228   :  { %3752 = vmatmul.mubr.f32.gmra.mrb[10].mxu1 %v12538_v21  ;;  %14797 = vst [vmem:[#allocation57_spill] sm:$0xff] %v12778_v39  ;;  %v3979_v41 = vsub.f32 %v12767_v8, %v12778_v39 }
 0x229   :  { %3757 = vmatprep.mubr.f32.mxu1 %v14650_v26  ;;  %14789 = vst [vmem:[#allocation49_spill] sm:$0xff] %v12740_v23  ;;  %v12754_v10 = vsub.f32 %v3877_v32, %v12740_v23  ;;  %v12781_v32 = vsub.f32 %v3883_v46, %v12769_v48  ;;  %v14801_v46 = vpack.c.bf16 %v12597_v24, %v12574_v20  ;;  %v14815_v24 = vld [vmem:[#allocation13_spill] sm:$0xff] }
 0x22a   :  { %v14804_v20 = vpack.c.bf16 %v12589_v13, %v12568_v0  ;;  %v14805_v13 = vpack.c.bf16 %v12459_v25, %v12448_v36  ;;  %v14807_v36 = vld [vmem:[#allocation21_spill] sm:$0xff]  ;;  %v14809_v25 = vld [vmem:[#allocation31_spill] sm:$0xff] }
 0x22b   :  { %14791 = vst [vmem:[#allocation51_spill] sm:$0xff] %v12754_v10  ;;  %v12764_v47 = vand.u32 4294901760, %v12754_v10  ;;  %14798 = vst [vmem:[#allocation58_spill] sm:$0xff] %v12781_v32  ;;  %v12790_v4 = vand.u32 4294901760, %v12781_v32  ;;  %v14814_v0 = vld [vmem:[#allocation27_spill] sm:$0xff] }
 0x22c   :  { %3759 = vmatmul.mubr.f32.gmra.mrb[12].mxu1 %v12565_v12 }
 0x22d   :  { %3764 = vmatprep.mubr.f32.mxu1 %v14650_v26  ;;  %14793 = vst [vmem:[#allocation53_spill] sm:$0xff] %v12764_v47  ;;  %v3968_v58 = vsub.f32 %v12754_v10, %v12764_v47  ;;  %14800 = vst [vmem:[#allocation60_spill] sm:$0xff] %v12790_v4 }
 0x22f   :  { %v12785_v18 = vand.u32 4294901760, %v3968_v58  ;;  %v3990_v58 = vsub.f32 %v12781_v32, %v12790_v4 }
 0x230   :  { %3766 = vmatmul.mubr.f32.gmra.mrb[14].mxu1 %v12584_v50 }
 0x231   :  { %3840 = vmatprep.mubr.f32.mxu1 %v14650_v26  ;;  %14799 = vst [vmem:[#allocation59_spill] sm:$0xff] %v12785_v18  ;;  %v12804_v33 = vand.u32 4294901760, %v3990_v58  ;;  %v14821_v58 = vld [vmem:[#allocation10_spill] sm:$0xff] }
 0x233   :  { %14803 = vst [vmem:[#allocation62_spill] sm:$0xff] %v12804_v33 }
 0x234   :  { %3842 = vmatmul.mubr.f32.vlgmr.msra.gmra.mrb[8].mxu1 %v12535_v57 }
 0x235   :  { %10211 = vmatpush1.bf16.msra.mxu1 %v12587_v63  ;;  %3847 = vmatprep.mubr.f32.mxu1 %v14650_v26 }
 0x236   :  { %10213 = vmatprep.subr.bf16.mxu1 %v12646_v3  ;;  %v3957_v3 = vsub.f32 %v12738_v55, %v12751_v62 }
 0x238   :  { %3849 = vmatmul.mubr.f32.gmra.mrb[10].mxu1 %v12538_v21  ;;  %v12773_v17 = vand.u32 4294901760, %v3957_v3  ;;  %v12798_v3 = vand.u32 4294901760, %v3979_v41  ;;  %v14819_v41 = vld [vmem:[#allocation11_spill] sm:$0xff] }
 0x239   :  { %3854 = vmatprep.mubr.f32.mxu1 %v14650_v26 }
 0x23a   :  { %14796 = vst [vmem:[#allocation56_spill] sm:$0xff] %v12773_v17  ;;  %14802 = vst [vmem:[#allocation61_spill] sm:$0xff] %v12798_v3 }
 0x23c   :  { %3856 = vmatmul.mubr.f32.gmra.mrb[12].mxu1 %v12565_v12 }
 0x23d   :  { %3861 = vmatprep.mubr.f32.mxu1 %v14650_v26 }
 0x240   :  { %3863 = vmatmul.mubr.f32.gmra.mrb[14].mxu1 %v12584_v50 }
 0x241   :  { %3953 = vmatprep.mubr.f32.mxu1 %v14650_v26 }
 0x244   :  { %3959 = vmatmul.mubr.f32.vlgmr.msra.gmra.mrb[8].mxu1 %v12773_v17 }
 0x245   :  { %10215 = vmatpush1.bf16.msra.mxu1 %v12638_v27  ;;  %3964 = vmatprep.mubr.f32.mxu1 %v14650_v26  ;;  %v14818_v27 = vld [vmem:[#allocation20_spill] sm:$0xff] }
 0x246   :  { %10217 = vmatprep.subr.bf16.mxu1 %v14801_v46  ;;  %v14820_v46 = vld [vmem:[#allocation25_spill] sm:$0xff] }
 0x248   :  { %3970 = vmatmul.mubr.f32.gmra.mrb[10].mxu1 %v12785_v18 }
 0x249   :  { %3975 = vmatprep.mubr.f32.mxu1 %v14650_v26 }
 0x24c   :  { %3981 = vmatmul.mubr.f32.gmra.mrb[12].mxu1 %v12798_v3 }
 0x24d   :  { %3986 = vmatprep.mubr.f32.mxu1 %v14650_v26 }
 0x250   :  { %3992 = vmatmul.mubr.f32.gmra.mrb[14].mxu1 %v12804_v33 }
 0x251   :  { %4082 = vmatprep.mubr.f32.mxu1 %v14650_v26 }
 0x254   :  { %4084 = vmatmul.mubr.f32.vlgmr.msra.gmra.mrb[8].mxu1 %v12729_v60 }
 0x255   :  { %10219 = vmatpush1.bf16.msra.mxu1 %v14804_v20  ;;  %4089 = vmatprep.mubr.f32.mxu1 %v14650_v26  ;;  %v14822_v20 = vld [vmem:[#allocation9_spill] sm:$0xff] }
 0x256   :  { %10221 = vmatprep.subr.bf16.mxu1 %v12595_v38 }
 0x258   :  { %4091 = vmatmul.mubr.f32.gmra.mrb[10].mxu1 %v12740_v23 }
 0x259   :  { %4096 = vmatprep.mubr.f32.mxu1 %v14650_v26 }
 0x25c   :  { %4098 = vmatmul.mubr.f32.gmra.mrb[12].mxu1 %v12756_v54 }
 0x25d   :  { %4103 = vmatprep.mubr.f32.mxu1 %v14650_v26 }
 0x260   :  { %4105 = vmatmul.mubr.f32.gmra.mrb[14].mxu1 %v12769_v48 }
 0x261   :  { %4183 = vmatprep.mubr.f32.mxu1 %v14650_v26 }
 0x264   :  { %4186 = vmatmul.mubr.f32.vlgmr.msra.gmra.mrb[8].mxu1 %v12738_v55 }
 0x265   :  { %10223 = vmatpush1.bf16.msra.mxu1 %v12587_v63  ;;  %4191 = vmatprep.mubr.f32.mxu1 %v14650_v26 }
 0x266   :  { %10225 = vmatprep.subr.bf16.mxu1 %v12623_v14  ;;  %v14817_v14 = vld [vmem:[#allocation35_spill] sm:$0xff] }
 0x268   :  { %4194 = vmatmul.mubr.f32.gmra.mrb[10].mxu1 %v12754_v10 }
 0x269   :  { %4199 = vmatprep.mubr.f32.mxu1 %v14650_v26 }
 0x26c   :  { %4202 = vmatmul.mubr.f32.gmra.mrb[12].mxu1 %v12767_v8 }
 0x26d   :  { %4207 = vmatprep.mubr.f32.mxu1 %v14650_v26 }
 0x270   :  { %4210 = vmatmul.mubr.f32.gmra.mrb[14].mxu1 %v12781_v32  ;;  %v13117_v32 = vld [vmem:[%s14295_s3 + $0xd0] sm:$0xff] }
 0x271   :  { %4284 = vmatprep.mubr.f32.mxu1 %v14650_v26 }
 0x274   :  { %4288 = vmatmul.mubr.f32.vlgmr.msra.gmra.mrb[8].mxu1 %v12751_v62 }
 0x275   :  { %10227 = vmatpush1.bf16.msra.mxu1 %v12617_v42  ;;  %4293 = vmatprep.mubr.f32.mxu1 %v14650_v26  ;;  %v14816_v42 = vld [vmem:[#allocation19_spill] sm:$0xff] }
 0x276   :  { %10229 = vmatprep.subr.bf16.mxu1 %v12595_v38  ;;  %v14806_v38 = vpack.c.bf16 %v12456_v49, %v12442_v34  ;;  %v14811_v34 = vld [vmem:[#allocation32_spill] sm:$0xff] }
 0x277   :  { %v14812_v49 = vld [vmem:[#allocation36_spill] sm:$0xff] }
 0x278   :  { %4297 = vmatmul.mubr.f32.gmra.mrb[10].mxu1 %v12764_v47  ;;  %v13077_v47 = vld [vmem:[%s14295_s3 + $0xc0] sm:$0xff] }
 0x279   :  { %4302 = vmatprep.mubr.f32.mxu1 %v14650_v26 }
 0x27c   :  { %4306 = vmatmul.mubr.f32.gmra.mrb[12].mxu1 %v12778_v39 }
 0x27d   :  { %4311 = vmatprep.mubr.f32.mxu1 %v14650_v26 }
 0x280   :  { %4315 = vmatmul.mubr.f32.gmra.mrb[14].mxu1 %v12790_v4 }
 0x281   :  { %4397 = vmatprep.mubr.f32.mxu1 %v14650_v26 }
 0x284   :  { %4399 = vmatmul.mubr.f32.vlgmr.msra.gmra.mrb[8].mxu1 %v12729_v60 }
 0x285   :  { %10231 = vmatpush1.bf16.msra.mxu1 %v12587_v63  ;;  %4404 = vmatprep.mubr.f32.mxu1 %v14650_v26  ;;  %v14808_v63 = vld [vmem:[#allocation28_spill] sm:$0xff] }
 0x286   :  { %10429 = vmatprep.subr.bf16.mxu1 %v12489_v37  ;;  %v14813_v37 = vld [vmem:[#allocation17_spill] sm:$0xff] }
 0x288   :  { %4406 = vmatmul.mubr.f32.gmra.mrb[10].mxu1 %v12740_v23 }
 0x289   :  { %4411 = vmatprep.mubr.f32.mxu1 %v14650_v26 }
 0x28c   :  { %4413 = vmatmul.mubr.f32.gmra.mrb[12].mxu1 %v12756_v54 }
 0x28d   :  { %4418 = vmatprep.mubr.f32.mxu1 %v14650_v26 }
 0x290   :  { %4420 = vmatmul.mubr.f32.gmra.mrb[14].mxu1 %v12769_v48 }
 0x291   :  { %4494 = vmatprep.mubr.f32.mxu1 %v14650_v26 }
 0x294   :  { %4496 = vmatmul.mubr.f32.vlgmr.msra.gmra.mrb[8].mxu1 %v12729_v60  ;;  %v13235_v60 = vld [vmem:[%s14295_s3 + $0x70] sm:$0xff] }
 0x295   :  { %10431 = vmatpush1.bf16.msra.mxu1 %v12487_v7  ;;  %4501 = vmatprep.mubr.f32.mxu1 %v14650_v26  ;;  %v14810_v7 = vld [vmem:[#allocation16_spill] sm:$0xff] }
 0x296   :  { %10433 = vmatprep.subr.bf16.mxu1 %v14805_v13  ;;  %v14823_v13 = vld [vmem:[#allocation18_spill] sm:$0xff] }
 0x298   :  { %4503 = vmatmul.mubr.f32.gmra.mrb[10].mxu1 %v12740_v23 }
 0x299   :  { %4508 = vmatprep.mubr.f32.mxu1 %v14650_v26 }
 0x29c   :  { %4510 = vmatmul.mubr.f32.gmra.mrb[12].mxu1 %v12756_v54  ;;  %v13178_v54 = vld [vmem:[%s14295_s3 + $0x68] sm:$0xff] }
 0x29d   :  { %4515 = vmatprep.mubr.f32.mxu1 %v14650_v26 }
 0x2a0   :  { %4517 = vmatmul.mubr.f32.gmra.mrb[14].mxu1 %v12769_v48  ;;  %v14484_v48 = vand.u32 4294901760, %v13157_v11 }
 0x2a1   :  { %6218 = vmatprep.mubr.f32.mxu1 %v14650_v26 }
 0x2a4   :  { %6220 = vmatmul.mubr.f32.vlgmr.msra.gmra.mrb[16].mxu1 %v12288_v59 }
 0x2a5   :  { %10435 = vmatpush1.bf16.msra.mxu1 %v14806_v38  ;;  %6225 = vmatprep.mubr.f32.mxu1 %v14650_v26  ;;  %v12915_v38 = vld [vmem:[%s14295_s3 + $0x80] sm:$0xff] }
 0x2a6   :  { %10437 = vmatprep.subr.bf16.mxu1 %v12461_v15  ;;  %v14845_v23 = vand.u32 4294901760, %v12915_v38 }
 0x2a8   :  { %6227 = vmatmul.mubr.f32.gmra.mrb[18].mxu1 %v14807_v36  ;;  %v13194_v2 = vsub.f32 %v12915_v38, %v14845_v23  ;;  %v13216_v23 = vld [vmem:[%s14295_s3 + $0xf8] sm:$0xff] }
 0x2a9   :  { %6232 = vmatprep.mubr.f32.mxu1 %v14650_v26  ;;  %v14851_v3 = vand.u32 4294901760, %v13216_v23 }
 0x2ac   :  { %6234 = vmatmul.mubr.f32.gmra.mrb[20].mxu1 %v14808_v63 }
 0x2ad   :  { %6239 = vmatprep.mubr.f32.mxu1 %v14650_v26 }
 0x2b0   :  { %6241 = vmatmul.mubr.f32.gmra.mrb[22].mxu1 %v14809_v25 }
 0x2b1   :  { %6319 = vmatprep.mubr.f32.mxu1 %v14650_v26 }
 0x2b4   :  { %6322 = vmatmul.mubr.f32.vlgmr.msra.gmra.mrb[16].mxu1 %v14810_v7  ;;  %v14419_v7 = vand.u32 4294901760, %v12915_v38 }
 0x2b5   :  { %10439 = vmatpush1.bf16.msra.mxu1 %v14811_v34  ;;  %6327 = vmatprep.mubr.f32.mxu1 %v14650_v26 }
 0x2b6   :  { %10441 = vmatprep.subr.bf16.mxu1 %v14812_v49  ;;  %v12933_v49 = vld [vmem:[%s14295_s3 + $0x8] sm:$0xff] }
 0x2b8   :  { %6330 = vmatmul.mubr.f32.gmra.mrb[18].mxu1 %v14813_v37 }
 0x2b9   :  { %6335 = vmatprep.mubr.f32.mxu1 %v14650_v26 }
 0x2bc   :  { %6338 = vmatmul.mubr.f32.gmra.mrb[20].mxu1 %v14814_v0  ;;  %v14416_v0 = vand.u32 4294901760, %v12933_v49 }
 0x2bd   :  { %6343 = vmatprep.mubr.f32.mxu1 %v14650_v26 }
 0x2c0   :  { %6346 = vmatmul.mubr.f32.gmra.mrb[22].mxu1 %v14815_v24 }
 0x2c1   :  { %6420 = vmatprep.mubr.f32.mxu1 %v14650_v26 }
 0x2c4   :  { %6424 = vmatmul.mubr.f32.vlgmr.msra.gmra.mrb[16].mxu1 %v14816_v42 }
 0x2c5   :  { %10443 = vmatpush1.bf16.msra.mxu1 %v14817_v14  ;;  %6429 = vmatprep.mubr.f32.mxu1 %v14650_v26  ;;  %v12953_v14 = vld [vmem:[%s14295_s3 + $0x90] sm:$0xff] }
 0x2c6   :  { %10445 = vmatprep.subr.bf16.mxu1 %v12461_v15  ;;  %v14829_v15 = vld [vmem:[#allocation29_spill] sm:$0xff] }
 0x2c8   :  { %6433 = vmatmul.mubr.f32.gmra.mrb[18].mxu1 %v14818_v27  ;;  %v12958_v27 = vld [vmem:[%s14295_s3 + $0x98] sm:$0xff] }
 0x2c9   :  { %6438 = vmatprep.mubr.f32.mxu1 %v14650_v26  ;;  %v14860_v22 = vand.u32 4294901760, %v12958_v27 }
 0x2cc   :  { %6442 = vmatmul.mubr.f32.gmra.mrb[20].mxu1 %v14819_v41  ;;  %v14421_v41 = vand.u32 4294901760, %v12958_v27 }
 0x2cd   :  { %6447 = vmatprep.mubr.f32.mxu1 %v14650_v26 }
 0x2d0   :  { %6451 = vmatmul.mubr.f32.gmra.mrb[22].mxu1 %v14820_v46  ;;  %v12967_v46 = vld [vmem:[%s14295_s3 + $0x10] sm:$0xff] }
 0x2d1   :  { %6533 = vmatprep.mubr.f32.mxu1 %v14650_v26  ;;  %v14424_v5 = vand.u32 4294901760, %v12967_v46  ;;  %v14861_v17 = vand.u32 4294901760, %v12967_v46 }
 0x2d4   :  { %6535 = vmatmul.mubr.f32.vlgmr.msra.gmra.mrb[16].mxu1 %v12288_v59 }
 0x2d5   :  { %10447 = vmatpush1.bf16.msra.mxu1 %v14811_v34  ;;  %6540 = vmatprep.mubr.f32.mxu1 %v14650_v26  ;;  %v12998_v34 = vld [vmem:[%s14295_s3 + $0xa8] sm:$0xff] }
 0x2d6   :  { %10449 = vmatprep.subr.bf16.mxu1 %v14821_v58  ;;  %v14832_v4 = vand.u32 4294901760, %v12998_v34 }
 0x2d8   :  { %6542 = vmatmul.mubr.f32.gmra.mrb[18].mxu1 %v14807_v36 }
 0x2d9   :  { %6547 = vmatprep.mubr.f32.mxu1 %v14650_v26 }
 0x2dc   :  { %6549 = vmatmul.mubr.f32.gmra.mrb[20].mxu1 %v14808_v63 }
 0x2dd   :  { %6554 = vmatprep.mubr.f32.mxu1 %v14650_v26 }
 0x2e0   :  { %6556 = vmatmul.mubr.f32.gmra.mrb[22].mxu1 %v14809_v25 }
 0x2e1   :  { %6630 = vmatprep.mubr.f32.mxu1 %v14650_v26 }
 0x2e4   :  { %6632 = vmatmul.mubr.f32.vlgmr.msra.gmra.mrb[16].mxu1 %v12288_v59  ;;  %v12920_v59 = vld [vmem:[%s14295_s3 + $0x88] sm:$0xff] }
 0x2e5   :  { %10451 = vmatpush1.bf16.msra.mxu1 %v14822_v20  ;;  %6637 = vmatprep.mubr.f32.mxu1 %v14650_v26  ;;  %v14846_v56 = vand.u32 4294901760, %v12920_v59 }
 0x2e6   :  { %10453 = vmatprep.subr.bf16.mxu1 %v14823_v13  ;;  %v12972_v13 = vld [vmem:[%s14295_s3 + $0x18] sm:$0xff] }
 0x2e8   :  { %6639 = vmatmul.mubr.f32.gmra.mrb[18].mxu1 %v14807_v36  ;;  %v14418_v36 = vand.u32 4294901760, %v12920_v59 }
 0x2e9   :  { %6644 = vmatprep.mubr.f32.mxu1 %v14650_v26 }
 0x2ea   :  { %v12941_v24 = vpack.c.bf16 %v14418_v36, %v14419_v7  ;;  %v12993_v7 = vld [vmem:[%s14295_s3 + $0xa0] sm:$0xff] }
 0x2ec   :  { %6646 = vmatmul.mubr.f32.gmra.mrb[20].mxu1 %v14808_v63  ;;  %v12928_v63 = vld [vmem:[%s14295_s3] sm:$0xff]  ;;  %14824 = vst [vmem:[#allocation21_spill] sm:$0xff] %v12941_v24  ;;  %10233 = vmatprep.subr.bf16.mxu0 %v12941_v24 }
 0x2ed   :  { %6651 = vmatprep.mubr.f32.mxu1 %v14650_v26  ;;  %v14417_v37 = vand.u32 4294901760, %v12928_v63 }
 0x2ef   :  { %v12948_v42 = vpack.c.bf16 %v14416_v0, %v14417_v37  ;;  %v14423_v0 = vand.u32 4294901760, %v12972_v13 }
 0x2f0   :  { %6653 = vmatmul.mubr.f32.gmra.mrb[22].mxu1 %v14809_v25  ;;  %v14422_v25 = vand.u32 4294901760, %v12953_v14 }
 0x2f1   :  { %14825 = vst [vmem:[#allocation28_spill] sm:$0xff] %v12948_v42  ;;  %6727 = vmatprep.mubr.f32.mxu1 %v14650_v26  ;;  %10235 = vmatpush3.bf16.msra.mxu0 %v12948_v42  ;;  %v12988_v36 = vpack.c.bf16 %v14423_v0, %v14424_v5  ;;  %v13007_v0 = vld [vmem:[%s14295_s3 + $0x20] sm:$0xff]  ;;  %v13012_v5 = vld [vmem:[%s14295_s3 + $0x28] sm:$0xff] }
 0x2f2   :  { %v12981_v37 = vpack.c.bf16 %v14421_v41, %v14422_v25  ;;  %v14828_v41 = vld [vmem:[#allocation15_spill] sm:$0xff]  ;;  %v14830_v42 = vld [vmem:[#allocation24_spill] sm:$0xff]  ;;  %v14432_v25 = vand.u32 4294901760, %v13012_v5 }
 0x2f3   :  { %14827 = vst [vmem:[#allocation16_spill] sm:$0xff] %v12988_v36  ;;  %v14831_v24 = vpack.c.bf16 %v14829_v15, %v14830_v42  ;;  %v13042_v42 = vld [vmem:[%s14295_s3 + $0xb8] sm:$0xff] }
 0x2f4   :  { %14826 = vst [vmem:[#allocation31_spill] sm:$0xff] %v12981_v37  ;;  %6733 = vmatmul.mubr.f32.vlgmr.msra.gmra.mrb[16].mxu1 %v12591_v29  ;;  %v14434_v29 = vand.u32 4294901760, %v12993_v7  ;;  %10237 = vmatprep.subr.bf16.mxu0 %v12981_v37 }
 0x2f5   :  { %10455 = vmatpush1.bf16.msra.mxu1 %v14828_v41  ;;  %6738 = vmatprep.mubr.f32.mxu1 %v14650_v26  ;;  %v14433_v41 = vand.u32 4294901760, %v13007_v0 }
 0x2f6   :  { %10457 = vmatprep.subr.bf16.mxu1 %v14831_v24  ;;  %10239 = vmatpush3.bf16.msra.mxu0 %v12988_v36  ;;  %v13025_v39 = vpack.c.bf16 %v14832_v4, %v14434_v29  ;;  %v13037_v24 = vld [vmem:[%s14295_s3 + $0xb0] sm:$0xff]  ;;  %v14444_v4 = vand.u32 4294901760, %v13042_v42 }
 0x2f7   :  { %v13032_v15 = vpack.c.bf16 %v14432_v25, %v14433_v41  ;;  %v13051_v25 = vld [vmem:[%s14295_s3 + $0x30] sm:$0xff]  ;;  %v13056_v41 = vld [vmem:[%s14295_s3 + $0x38] sm:$0xff] }
 0x2f8   :  { %14833 = vst [vmem:[#allocation36_spill] sm:$0xff] %v13025_v39  ;;  %6744 = vmatmul.mubr.f32.gmra.mrb[18].mxu1 %v12599_v9  ;;  %10241 = vmatprep.subr.bf16.mxu0 %v13025_v39  ;;  %v14447_v9 = vand.u32 4294901760, %v13037_v24  ;;  %v14446_v29 = vand.u32 4294901760, %v13051_v25  ;;  %v14445_v36 = vand.u32 4294901760, %v13056_v41 }
 0x2f9   :  { %14834 = vst [vmem:[#allocation17_spill] sm:$0xff] %v13032_v15  ;;  %6749 = vmatprep.mubr.f32.mxu1 %v14650_v26 }
 0x2fa   :  { %10243 = vmatpush3.bf16.msra.mxu0 %v13032_v15  ;;  %v13065_v39 = vpack.c.bf16 %v14444_v4, %v14447_v9  ;;  %v13072_v37 = vpack.c.bf16 %v14445_v36, %v14446_v29  ;;  %v13082_v15 = vld [vmem:[%s14295_s3 + $0xc8] sm:$0xff]  ;;  %v13091_v36 = vld [vmem:[%s14295_s3 + $0x40] sm:$0xff] }
 0x2fb   :  { %v14454_v4 = vand.u32 4294901760, %v13082_v15  ;;  %v13096_v29 = vld [vmem:[%s14295_s3 + $0x48] sm:$0xff]  ;;  %v14456_v9 = vand.u32 4294901760, %v13091_v36 }
 0x2fc   :  { %14835 = vst [vmem:[#allocation27_spill] sm:$0xff] %v13065_v39  ;;  %6755 = vmatmul.mubr.f32.gmra.mrb[20].mxu1 %v12660_v16  ;;  %14836 = vst [vmem:[#allocation13_spill] sm:$0xff] %v13072_v37  ;;  %10245 = vmatprep.subr.bf16.mxu0 %v13065_v39  ;;  %v14457_v16 = vand.u32 4294901760, %v13077_v47  ;;  %v14455_v31 = vand.u32 4294901760, %v13096_v29 }
 0x2fd   :  { %6760 = vmatprep.mubr.f32.mxu1 %v14650_v26 }
 0x2fe   :  { %10247 = vmatpush3.bf16.msra.mxu0 %v13072_v37  ;;  %v13105_v39 = vpack.c.bf16 %v14454_v4, %v14457_v16  ;;  %v13112_v62 = vpack.c.bf16 %v14455_v31, %v14456_v9  ;;  %v13122_v37 = vld [vmem:[%s14295_s3 + $0xd8] sm:$0xff]  ;;  %v13131_v31 = vld [vmem:[%s14295_s3 + $0x50] sm:$0xff] }
 0x2ff   :  { %v14464_v4 = vand.u32 4294901760, %v13122_v37  ;;  %v13136_v9 = vld [vmem:[%s14295_s3 + $0x58] sm:$0xff]  ;;  %v14470_v16 = vand.u32 4294901760, %v13131_v31 }
 0x300   :  { %14837 = vst [vmem:[#allocation19_spill] sm:$0xff] %v13105_v39  ;;  %6766 = vmatmul.mubr.f32.gmra.mrb[22].mxu1 %v12674_v30  ;;  %14838 = vst [vmem:[#allocation35_spill] sm:$0xff] %v13112_v62  ;;  %10249 = vmatprep.subr.bf16.mxu0 %v13105_v39  ;;  %v14465_v30 = vand.u32 4294901760, %v13117_v32  ;;  %v14469_v8 = vand.u32 4294901760, %v13136_v9 }
 0x301   :  { %6856 = vmatprep.mubr.f32.mxu1 %v14650_v26 }
 0x302   :  { %10251 = vmatpush3.bf16.msra.mxu0 %v13112_v62  ;;  %v13145_v39 = vpack.c.bf16 %v14464_v4, %v14465_v30  ;;  %v13152_v10 = vpack.c.bf16 %v14469_v8, %v14470_v16  ;;  %v13162_v62 = vld [vmem:[%s14295_s3 + $0xe8] sm:$0xff]  ;;  %v14841_v4 = vld [vmem:[#allocation26_spill] sm:$0xff]  ;;  %v13173_v16 = vld [vmem:[%s14295_s3 + $0x60] sm:$0xff] }
 0x303   :  { %v14842_v30 = vld [vmem:[#allocation22_spill] sm:$0xff]  ;;  %v14481_v8 = vand.u32 4294901760, %v13162_v62 }
 0x304   :  { %14839 = vst [vmem:[#allocation20_spill] sm:$0xff] %v13145_v39  ;;  %6858 = vmatmul.mubr.f32.vlgmr.msra.gmra.mrb[16].mxu1 %v12535_v57  ;;  %14840 = vst [vmem:[#allocation11_spill] sm:$0xff] %v13152_v10  ;;  %v14843_v55 = vpack.c.bf16 %v14841_v4, %v14842_v30  ;;  %10253 = vmatprep.subr.bf16.mxu0 %v13145_v39  ;;  %v14482_v4 = vand.u32 4294901760, %v13178_v54  ;;  %v13199_v39 = vsub.f32 %v12920_v59, %v14846_v56 }
 0x305   :  { %6863 = vmatprep.mubr.f32.mxu1 %v14650_v26  ;;  %v13189_v30 = vpack.c.bf16 %v14481_v8, %v14484_v48  ;;  %v13211_v8 = vld [vmem:[%s14295_s3 + $0xf0] sm:$0xff]  ;;  %v14848_v56 = vand.u32 4294901760, %v12928_v63  ;;  %v14849_v59 = vand.u32 4294901760, %v12933_v49  ;;  %v14854_v48 = vand.u32 4294901760, %v12953_v14 }
 0x306   :  { %10459 = vmatpush1.bf16.msra.mxu1 %v14843_v55  ;;  %v14483_v55 = vand.u32 4294901760, %v13173_v16  ;;  %10255 = vmatpush3.bf16.msra.mxu0 %v13152_v10  ;;  %v14850_v33 = vand.u32 4294901760, %v13211_v8 }
 0x307   :  { %10461 = vmatprep.subr.bf16.mxu1 %v14821_v58  ;;  %14844 = vst [vmem:[#allocation25_spill] sm:$0xff] %v13189_v30  ;;  %v13221_v38 = vsub.f32 %v12928_v63, %v14848_v56  ;;  %10257 = vmatprep.subr.bf16.mxu0 %v13189_v30  ;;  %v13240_v63 = vld [vmem:[%s14295_s3 + $0x78] sm:$0xff]  ;;  %v13264_v30 = vsub.f32 %v12953_v14, %v14854_v48 }
 0x308   :  { %6865 = vmatmul.mubr.f32.gmra.mrb[18].mxu1 %v12538_v21  ;;  %v13206_v10 = vpack.c.bf16 %v14482_v4, %v14483_v55  ;;  %v13226_v4 = vsub.f32 %v12933_v49, %v14849_v59  ;;  %v14495_v49 = vand.u32 4294901760, %v13194_v2  ;;  %v13253_v18 = vpack.c.bf16 %v14851_v3, %v14850_v33 }
 0x309   :  { %6870 = vmatprep.mubr.f32.mxu1 %v14650_v26  ;;  %v14853_v59 = vand.u32 4294901760, %v13199_v39  ;;  %v14856_v33 = vand.u32 4294901760, %v13240_v63  ;;  %v14858_v40 = vand.u32 4294901760, %v13221_v38  ;;  %v13282_v48 = vsub.f32 %v12958_v27, %v14860_v22 }
 0x30a   :  { %14847 = vst [vmem:[#allocation10_spill] sm:$0xff] %v13206_v10  ;;  %10259 = vmatpush3.bf16.msra.mxu0 %v13206_v10  ;;  %14852 = vst [vmem:[#allocation9_spill] sm:$0xff] %v13253_v18  ;;  %v4806_v56 = vsub.f32 %v13194_v2, %v14495_v49  ;;  %v14855_v10 = vand.u32 4294901760, %v13235_v60  ;;  %v14859_v43 = vand.u32 4294901760, %v13226_v4  ;;  %v14862_v22 = vand.u32 4294901760, %v12972_v13 }
 0x30b   :  { %v4813_v55 = vsub.f32 %v13199_v39, %v14853_v59  ;;  %v4694_v49 = vsub.f32 %v13221_v38, %v14858_v40  ;;  %10261 = vmatprep.subr.bf16.mxu0 %v13253_v18  ;;  %v13290_v40 = vsub.f32 %v12967_v46, %v14861_v17  ;;  %v14499_v1 = vand.u32 4294901760, %v13282_v48 }
 0x30c   :  { %6872 = vmatmul.mubr.f32.gmra.mrb[20].mxu1 %v12565_v12  ;;  %v13271_v3 = vpack.c.bf16 %v14856_v33, %v14855_v10  ;;  %v4701_v59 = vsub.f32 %v13226_v4, %v14859_v43  ;;  %v4807_v14 = vand.u32 4294901760, %v4806_v56  ;;  %v14500_v33 = vand.u32 4294901760, %v13264_v30 }
 0x30d   :  { %6877 = vmatprep.mubr.f32.mxu1 %v14650_v26  ;;  %v4814_v10 = vand.u32 4294901760, %v4813_v55  ;;  %v4695_v53 = vand.u32 4294901760, %v4694_v49  ;;  %v13296_v27 = vsub.f32 %v12972_v13, %v14862_v22  ;;  %v14502_v17 = vand.u32 4294901760, %v13290_v40 }
 0x30e   :  { %14857 = vst [vmem:[#allocation18_spill] sm:$0xff] %v13271_v3  ;;  %v4702_v43 = vand.u32 4294901760, %v4701_v59  ;;  %10263 = vmatpush3.bf16.msra.mxu0 %v13271_v3  ;;  %v4820_v55 = vsub.f32 %v13264_v30, %v14500_v33  ;;  %v14865_v46 = vand.u32 4294901760, %v12993_v7  ;;  %v4827_v13 = vsub.f32 %v13282_v48, %v14499_v1 }
 0x30f   :  { %14863 = vst [vmem:[#allocation15_spill] sm:$0xff] %v13296_v27  ;;  %v13299_v56 = vpack.c.bf16 %v4814_v10, %v4807_v14  ;;  %v14505_v14 = vand.u32 4294901760, %v13296_v27  ;;  %v14867_v10 = vand.u32 4294901760, %v12998_v34  ;;  %v14880_v18 = vand.u32 4294901760, %v13051_v25 }
 0x310   :  { %v13308_v49 = vsub.f32 %v12993_v7, %v14865_v46  ;;  %6879 = vmatmul.mubr.f32.gmra.mrb[22].mxu1 %v12584_v50  ;;  %v13311_v59 = vpack.c.bf16 %v4702_v43, %v4695_v53  ;;  %v4821_v7 = vand.u32 4294901760, %v4820_v55  ;;  %v4708_v53 = vsub.f32 %v13290_v40, %v14502_v17 }
 0x311   :  { %14864 = vst [vmem:[#allocation29_spill] sm:$0xff] %v13299_v56  ;;  %v13320_v22 = vsub.f32 %v12998_v34, %v14867_v10  ;;  %6957 = vmatprep.mubr.f32.mxu1 %v14650_v26  ;;  %10265 = vmatprep.subr.bf16.mxu0 %v13299_v56  ;;  %v14869_v46 = vand.u32 4294901760, %v13007_v0  ;;  %v4828_v33 = vand.u32 4294901760, %v4827_v13  ;;  %v4715_v34 = vsub.f32 %v13296_v27, %v14505_v14 }
 0x312   :  { %14866 = vst [vmem:[#allocation24_spill] sm:$0xff] %v13308_v49  ;;  %v14506_v43 = vand.u32 4294901760, %v13308_v49  ;;  %v14871_v55 = vand.u32 4294901760, %v13012_v5  ;;  %v4709_v17 = vand.u32 4294901760, %v4708_v53  ;;  %v14873_v13 = vand.u32 4294901760, %v13037_v24 }
 0x313   :  { %14868 = vst [vmem:[#allocation26_spill] sm:$0xff] %v13320_v22  ;;  %v13331_v1 = vsub.f32 %v13007_v0, %v14869_v46  ;;  %v13352_v14 = vpack.c.bf16 %v4828_v33, %v4821_v7  ;;  %v4716_v10 = vand.u32 4294901760, %v4715_v34  ;;  %v14877_v33 = vand.u32 4294901760, %v13042_v42  ;;  %v14879_v34 = vld [vmem:[#allocation23_spill] sm:$0xff] }
 0x314   :  { %v13340_v56 = vsub.f32 %v13012_v5, %v14871_v55  ;;  %v4834_v3 = vsub.f32 %v13308_v49, %v14506_v43  ;;  %v13349_v46 = vsub.f32 %v13037_v24, %v14873_v13  ;;  %6960 = vmatmul.mubr.f32.vlgmr.msra.gmra.mrb[16].mxu1 %v12542_v28  ;;  %v14876_v5 = vand.u32 4294901760, %v13320_v22 }
 0x315   :  { %14870 = vst [vmem:[#allocation22_spill] sm:$0xff] %v13331_v1  ;;  %v14509_v0 = vand.u32 4294901760, %v13331_v1  ;;  %14875 = vst [vmem:[#allocation65_spill] sm:$0xff] %v13352_v14  ;;  %10463 = vmatpush1.bf16.msra.mxu1 %v14822_v20  ;;  %6965 = vmatprep.mubr.f32.mxu1 %v14650_v26  ;;  %v13367_v7 = vsub.f32 %v13042_v42, %v14877_v33  ;;  %v13370_v13 = vpack.c.bf16 %v4716_v10, %v4709_v17 }
 0x316   :  { %14872 = vst [vmem:[#allocation63_spill] sm:$0xff] %v13340_v56  ;;  %14874 = vst [vmem:[#allocation64_spill] sm:$0xff] %v13349_v46  ;;  %v4841_v53 = vsub.f32 %v13320_v22, %v14876_v5  ;;  %v14512_v55 = vand.u32 4294901760, %v13340_v56  ;;  %v4835_v43 = vand.u32 4294901760, %v4834_v3  ;;  %10465 = vmatprep.subr.bf16.mxu1 %v14879_v34  ;;  %v14882_v14 = vand.u32 4294901760, %v13349_v46 }
 0x317   :  { %v4722_v24 = vsub.f32 %v13331_v1, %v14509_v0  ;;  %14878 = vst [vmem:[#allocation66_spill] sm:$0xff] %v13367_v7  ;;  %v13378_v0 = vsub.f32 %v13051_v25, %v14880_v18  ;;  %v14511_v33 = vand.u32 4294901760, %v13367_v7  ;;  %v14883_v17 = vand.u32 4294901760, %v13056_v41 }
 0x318   :  { %v4842_v5 = vand.u32 4294901760, %v4841_v53  ;;  %v4729_v3 = vsub.f32 %v13340_v56, %v14512_v55  ;;  %v4848_v42 = vsub.f32 %v13349_v46, %v14882_v14  ;;  %6968 = vmatmul.mubr.f32.gmra.mrb[18].mxu1 %v12549_v44  ;;  %v14885_v25 = vand.u32 4294901760, %v13077_v47 }
 0x319   :  { %14881 = vst [vmem:[#allocation23_spill] sm:$0xff] %v13378_v0  ;;  %v4723_v28 = vand.u32 4294901760, %v4722_v24  ;;  %v13387_v10 = vsub.f32 %v13056_v41, %v14883_v17  ;;  %v14514_v18 = vand.u32 4294901760, %v13378_v0  ;;  %6973 = vmatprep.mubr.f32.mxu1 %v14650_v26  ;;  %v4855_v41 = vsub.f32 %v13367_v7, %v14511_v33 }
 0x31a   :  { %v13390_v53 = vpack.c.bf16 %v4842_v5, %v4835_v43  ;;  %v4730_v34 = vand.u32 4294901760, %v4729_v3  ;;  %v13396_v24 = vsub.f32 %v13077_v47, %v14885_v25  ;;  %v4849_v14 = vand.u32 4294901760, %v4848_v42 }
 0x31b   :  { %14884 = vst [vmem:[#allocation67_spill] sm:$0xff] %v13387_v10  ;;  %v14513_v17 = vand.u32 4294901760, %v13387_v10  ;;  %v14887_v44 = vand.u32 4294901760, %v13082_v15  ;;  %v4736_v47 = vsub.f32 %v13378_v0, %v14514_v18  ;;  %v14890_v42 = vand.u32 4294901760, %v13091_v36 }
 0x31c   :  { %14886 = vst [vmem:[#allocation68_spill] sm:$0xff] %v13396_v24  ;;  %v13408_v5 = vpack.c.bf16 %v4730_v34, %v4723_v28  ;;  %v14515_v3 = vand.u32 4294901760, %v13396_v24  ;;  %v4856_v33 = vand.u32 4294901760, %v4855_v41  ;;  %v14892_v28 = vand.u32 4294901760, %v13096_v29  ;;  %6976 = vmatmul.mubr.f32.gmra.mrb[20].mxu1 %v12581_v52 }
 0x31d   :  { %v13406_v43 = vsub.f32 %v13082_v15, %v14887_v44  ;;  %v13417_v25 = vsub.f32 %v13091_v36, %v14890_v42  ;;  %v4743_v55 = vsub.f32 %v13387_v10, %v14513_v17  ;;  %v4737_v44 = vand.u32 4294901760, %v4736_v47  ;;  %6981 = vmatprep.mubr.f32.mxu1 %v14650_v26 }
 0x31e   :  { %14889 = vst [vmem:[#allocation70_spill] sm:$0xff] %v13408_v5  ;;  %v13426_v34 = vsub.f32 %v13096_v29, %v14892_v28  ;;  %v4862_v36 = vsub.f32 %v13396_v24, %v14515_v3  ;;  %v14894_v42 = vand.u32 4294901760, %v13117_v32  ;;  %v13439_v18 = vpack.c.bf16 %v4856_v33, %v4849_v14 }
 0x31f   :  { %14888 = vst [vmem:[#allocation69_spill] sm:$0xff] %v13406_v43  ;;  %14891 = vst [vmem:[#allocation71_spill] sm:$0xff] %v13417_v25  ;;  %v14517_v15 = vand.u32 4294901760, %v13406_v43  ;;  %v14518_v41 = vand.u32 4294901760, %v13417_v25  ;;  %v4744_v29 = vand.u32 4294901760, %v4743_v55 }
 0x320   :  { %14893 = vst [vmem:[#allocation72_spill] sm:$0xff] %v13426_v34  ;;  %v13436_v17 = vsub.f32 %v13117_v32, %v14894_v42  ;;  %v14520_v47 = vand.u32 4294901760, %v13426_v34  ;;  %v4863_v28 = vand.u32 4294901760, %v4862_v36  ;;  %v14896_v32 = vand.u32 4294901760, %v13122_v37  ;;  %6984 = vmatmul.mubr.f32.gmra.mrb[22].mxu1 %v12610_v35 }
 0x321   :  { %v4869_v52 = vsub.f32 %v13406_v43, %v14517_v15  ;;  %v4750_v3 = vsub.f32 %v13417_v25, %v14518_v41  ;;  %v13454_v33 = vpack.c.bf16 %v4744_v29, %v4737_v44  ;;  %v14898_v36 = vand.u32 4294901760, %v13131_v31  ;;  %7058 = vmatprep.mubr.f32.mxu1 %v14650_v26 }
 0x322   :  { %14895 = vst [vmem:[#allocation73_spill] sm:$0xff] %v13436_v17  ;;  %v14519_v5 = vand.u32 4294901760, %v13436_v17  ;;  %v13452_v42 = vsub.f32 %v13122_v37, %v14896_v32  ;;  %v4757_v14 = vsub.f32 %v13426_v34, %v14520_v47  ;;  %v14900_v29 = vand.u32 4294901760, %v13136_v9 }
 0x323   :  { %v4870_v55 = vand.u32 4294901760, %v4869_v52  ;;  %v13462_v15 = vsub.f32 %v13131_v31, %v14898_v36  ;;  %v4751_v41 = vand.u32 4294901760, %v4750_v3  ;;  %v14903_v35 = vand.u32 4294901760, %v13157_v11 }
 0x324   :  { %14897 = vst [vmem:[#allocation74_spill] sm:$0xff] %v13452_v42  ;;  %v4876_v37 = vsub.f32 %v13436_v17, %v14519_v5  ;;  %v14521_v44 = vand.u32 4294901760, %v13452_v42  ;;  %v13472_v52 = vsub.f32 %v13136_v9, %v14900_v29  ;;  %v4758_v31 = vand.u32 4294901760, %v4757_v14  ;;  %7062 = vmatmul.mubr.f32.vlgmr.msra.gmra.mrb[16].mxu1 %v12554_v45 }
 0x325   :  { %14899 = vst [vmem:[#allocation75_spill] sm:$0xff] %v13462_v15  ;;  %v13475_v32 = vpack.c.bf16 %v4870_v55, %v4863_v28  ;;  %v14522_v36 = vand.u32 4294901760, %v13462_v15  ;;  %v13481_v3 = vsub.f32 %v13157_v11, %v14903_v35  ;;  %v14905_v29 = vand.u32 4294901760, %v13162_v62  ;;  %7067 = vmatprep.mubr.f32.mxu1 %v14650_v26 }
 0x326   :  { %14901 = vst [vmem:[#allocation76_spill] sm:$0xff] %v13472_v52  ;;  %v4877_v5 = vand.u32 4294901760, %v4876_v37  ;;  %v4883_v47 = vsub.f32 %v13452_v42, %v14521_v44  ;;  %v14523_v9 = vand.u32 4294901760, %v13472_v52  ;;  %v13492_v55 = vpack.c.bf16 %v4758_v31, %v4751_v41 }
 0x327   :  { %14902 = vst [vmem:[#allocation77_spill] sm:$0xff] %v13475_v32  ;;  %14904 = vst [vmem:[#allocation78_spill] sm:$0xff] %v13481_v3  ;;  %v13490_v28 = vsub.f32 %v13162_v62, %v14905_v29  ;;  %v4764_v14 = vsub.f32 %v13462_v15, %v14522_v36  ;;  %v14525_v11 = vand.u32 4294901760, %v13481_v3  ;;  %v14908_v37 = vand.u32 4294901760, %v13173_v16  ;;  %v14912_v36 = vld [vmem:[#allocation12_spill] sm:$0xff] }
 0x328   :  { %14907 = vst [vmem:[#allocation80_spill] sm:$0xff] %v13492_v55  ;;  %v4884_v44 = vand.u32 4294901760, %v4883_v47  ;;  %v4771_v62 = vsub.f32 %v13472_v52, %v14523_v9  ;;  %v14910_v31 = vand.u32 4294901760, %v13178_v54  ;;  %10467 = vmatpush1.bf16.msra.mxu1 %v14912_v36 }
 0x329   :  { %14906 = vst [vmem:[#allocation79_spill] sm:$0xff] %v13490_v28  ;;  %v13501_v35 = vsub.f32 %v13173_v16, %v14908_v37  ;;  %v14533_v41 = vand.u32 4294901760, %v13490_v28  ;;  %v4765_v16 = vand.u32 4294901760, %v4764_v14  ;;  %v4890_v45 = vsub.f32 %v13481_v3, %v14525_v11  ;;  %10469 = vmatprep.subr.bf16.mxu1 %v14821_v58  ;;  %7071 = vmatmul.mubr.f32.gmra.mrb[18].mxu1 %v12558_v6 }
 0x32a   :  { %v13511_v29 = vsub.f32 %v13178_v54, %v14910_v31  ;;  %v14913_v37 = vand.u32 4294901760, %v13211_v8  ;;  %v13525_v54 = vpack.c.bf16 %v4884_v44, %v4877_v5  ;;  %v4772_v31 = vand.u32 4294901760, %v4771_v62  ;;  %7076 = vmatprep.mubr.f32.mxu1 %v14650_v26 }
 0x32b   :  { %14909 = vst [vmem:[#allocation81_spill] sm:$0xff] %v13501_v35  ;;  %v14527_v47 = vand.u32 4294901760, %v13501_v35  ;;  %v4897_v36 = vsub.f32 %v13490_v28, %v14533_v41  ;;  %v4891_v55 = vand.u32 4294901760, %v4890_v45  ;;  %v14917_v45 = vand.u32 4294901760, %v13235_v60 }
 0x32c   :  { %14911 = vst [vmem:[#allocation82_spill] sm:$0xff] %v13511_v29  ;;  %v13522_v9 = vsub.f32 %v13211_v8, %v14913_v37  ;;  %v14528_v14 = vand.u32 4294901760, %v13511_v29  ;;  %v14915_v8 = vand.u32 4294901760, %v13216_v23  ;;  %v13541_v5 = vpack.c.bf16 %v4772_v31, %v4765_v16 }
 0x32d   :  { %v4778_v11 = vsub.f32 %v13501_v35, %v14527_v47  ;;  %v4898_v44 = vand.u32 4294901760, %v4897_v36  ;;  %v13549_v37 = vsub.f32 %v13235_v60, %v14917_v45  ;;  %v14919_v16 = vand.u32 4294901760, %v13240_v63  ;;  %7080 = vmatmul.mubr.f32.gmra.mrb[20].mxu1 %v12606_v51 }
 0x32e   :  { %14914 = vst [vmem:[#allocation12_spill] sm:$0xff] %v13522_v9  ;;  %v14529_v32 = vand.u32 4294901760, %v13522_v9  ;;  %v13538_v58 = vsub.f32 %v13216_v23, %v14915_v8  ;;  %v4785_v62 = vsub.f32 %v13511_v29, %v14528_v14  ;;  %7085 = vmatprep.mubr.f32.mxu1 %v14650_v26  ;;  %v13582_v51 = vpack.c.bf16 %v13199_v39, %v13194_v2 }
 0x32f   :  { %14918 = vst [vmem:[#allocation84_spill] sm:$0xff] %v13549_v37  ;;  %v4779_v47 = vand.u32 4294901760, %v4778_v11  ;;  %v13559_v31 = vsub.f32 %v13240_v63, %v14919_v16  ;;  %v13561_v36 = vpack.c.bf16 %v4898_v44, %v4891_v55  ;;  %v14531_v60 = vand.u32 4294901760, %v13549_v37 }
 0x330   :  { %14916 = vst [vmem:[#allocation83_spill] sm:$0xff] %v13538_v58  ;;  %v4904_v23 = vsub.f32 %v13522_v9, %v14529_v32  ;;  %v14532_v6 = vand.u32 4294901760, %v13538_v58  ;;  %v4786_v8 = vand.u32 4294901760, %v4785_v62  ;;  %14921 = vst [vmem:[#allocation86_spill] sm:$0xff] %v13582_v51  ;;  %v13648_v41 = vpack.c.bf16 %v13490_v28, %v13481_v3 }
 0x331   :  { %14920 = vst [vmem:[#allocation85_spill] sm:$0xff] %v13559_v31  ;;  %v14530_v14 = vand.u32 4294901760, %v13559_v31  ;;  %v4792_v63 = vsub.f32 %v13549_v37, %v14531_v60  ;;  %7089 = vmatmul.mubr.f32.gmra.mrb[22].mxu1 %v12631_v19  ;;  %v13606_v19 = vpack.c.bf16 %v13320_v22, %v13308_v49  ;;  %v14933_v60 = vld [vmem:[#allocation40_spill] sm:$0xff] }
 0x332   :  { %v4905_v45 = vand.u32 4294901760, %v4904_v23  ;;  %v4911_v11 = vsub.f32 %v13538_v58, %v14532_v6  ;;  %v13569_v32 = vpack.c.bf16 %v4786_v8, %v4779_v47  ;;  %v13587_v47 = vpack.c.bf16 %v13226_v4, %v13221_v38  ;;  %7171 = vmatprep.mubr.f32.mxu1 %v14650_v26  ;;  %v14934_v6 = vld [vmem:[#allocation46_spill] sm:$0xff]  ;;  %14935 = vst [vmem:[#allocation40_spill] sm:$0xff] %v13648_v41 }
 0x333   :  { %v4799_v44 = vsub.f32 %v13559_v31, %v14530_v14  ;;  %v4793_v62 = vand.u32 4294901760, %v4792_v63  ;;  %14925 = vst [vmem:[#allocation90_spill] sm:$0xff] %v13606_v19  ;;  %v13610_v63 = vpack.c.bf16 %v13340_v56, %v13331_v1  ;;  %v13640_v14 = vpack.c.bf16 %v13472_v52, %v13462_v15 }
 0x334   :  { %v4912_v55 = vand.u32 4294901760, %v4911_v11  ;;  %14922 = vst [vmem:[#allocation87_spill] sm:$0xff] %v13587_v47  ;;  %v13594_v11 = vpack.c.bf16 %v13282_v48, %v13264_v30  ;;  %v13662_v52 = vpack.c.bf16 %v13559_v31, %v13549_v37  ;;  %v14944_v31 = vld [vmem:[#allocation59_spill] sm:$0xff]  ;;  %v14949_v37 = vld [vmem:[#allocation38_spill] sm:$0xff] }
 0x335   :  { %v4800_v16 = vand.u32 4294901760, %v4799_v44  ;;  %7173 = vmatmul.mubr.f32.vlgmr.msra.gmra.mrb[16].mxu1 %v12535_v57  ;;  %14926 = vst [vmem:[#allocation91_spill] sm:$0xff] %v13610_v63  ;;  %v13626_v44 = vpack.c.bf16 %v13406_v43, %v13396_v24  ;;  %14932 = vst [vmem:[#allocation97_spill] sm:$0xff] %v13640_v14  ;;  %v14959_v24 = vld [vmem:[#allocation55_spill] sm:$0xff] }
 0x336   :  { %v13578_v23 = vpack.c.bf16 %v4912_v55, %v4905_v45  ;;  %14923 = vst [vmem:[#allocation88_spill] sm:$0xff] %v13594_v11  ;;  %v13598_v45 = vpack.c.bf16 %v13296_v27, %v13290_v40  ;;  %10471 = vmatpush1.bf16.msra.mxu1 %v14822_v20  ;;  %7178 = vmatprep.mubr.f32.mxu1 %v14650_v26  ;;  %14938 = vst [vmem:[#allocation99_spill] sm:$0xff] %v13662_v52  ;;  %v14965_v27 = vld [vmem:[#allocation54_spill] sm:$0xff] }
 0x337   :  { %v13590_v8 = vpack.c.bf16 %v4800_v16, %v4793_v62  ;;  %10473 = vmatprep.subr.bf16.mxu1 %v12642_v61  ;;  %v13616_v55 = vpack.c.bf16 %v13367_v7, %v13349_v46  ;;  %v13620_v20 = vpack.c.bf16 %v13387_v10, %v13378_v0  ;;  %14929 = vst [vmem:[#allocation94_spill] sm:$0xff] %v13626_v44  ;;  %v14962_v10 = vld [vmem:[#allocation48_spill] sm:$0xff]  ;;  %v14964_v7 = vld [vmem:[#allocation51_spill] sm:$0xff] }
 0x338   :  { %14924 = vst [vmem:[#allocation89_spill] sm:$0xff] %v13598_v45  ;;  %v13630_v62 = vpack.c.bf16 %v13426_v34, %v13417_v25  ;;  %v13636_v16 = vpack.c.bf16 %v13452_v42, %v13436_v17  ;;  %v13652_v42 = vpack.c.bf16 %v13511_v29, %v13501_v35 }
 0x339   :  { %7180 = vmatmul.mubr.f32.gmra.mrb[18].mxu1 %v12538_v21  ;;  %14927 = vst [vmem:[#allocation92_spill] sm:$0xff] %v13616_v55  ;;  %14928 = vst [vmem:[#allocation93_spill] sm:$0xff] %v13620_v20 }
 0x33a   :  { %7185 = vmatprep.mubr.f32.mxu1 %v14650_v26  ;;  %14930 = vst [vmem:[#allocation95_spill] sm:$0xff] %v13630_v62  ;;  %14931 = vst [vmem:[#allocation96_spill] sm:$0xff] %v13636_v16 }
 0x33b   :  { %14936 = vst [vmem:[#allocation46_spill] sm:$0xff] %v13652_v42 }
 0x33d   :  { %7187 = vmatmul.mubr.f32.gmra.mrb[20].mxu1 %v12565_v12 }
 0x33e   :  { %7192 = vmatprep.mubr.f32.mxu1 %v14650_v26 }
 0x341   :  { %7194 = vmatmul.mubr.f32.gmra.mrb[22].mxu1 %v12584_v50 }
 0x342   :  { %7268 = vmatprep.mubr.f32.mxu1 %v14650_v26 }
 0x345   :  { %7270 = vmatmul.mubr.f32.vlgmr.msra.gmra.mrb[16].mxu1 %v12535_v57  ;;  %v13658_v57 = vpack.c.bf16 %v13538_v58, %v13522_v9  ;;  %v14941_v58 = vld [vmem:[#allocation42_spill] sm:$0xff]  ;;  %v14942_v9 = vld [vmem:[#allocation39_spill] sm:$0xff] }
 0x346   :  { %10475 = vmatpush1.bf16.msra.mxu1 %v14933_v60  ;;  %7275 = vmatprep.mubr.f32.mxu1 %v14650_v26  ;;  %v14943_v29 = vpack.c.bf16 %v14941_v58, %v14942_v9  ;;  %v14953_v58 = vld [vmem:[#allocation49_spill] sm:$0xff] }
 0x347   :  { %10477 = vmatprep.subr.bf16.mxu1 %v14934_v6  ;;  %14937 = vst [vmem:[#allocation98_spill] sm:$0xff] %v13658_v57  ;;  %v14939_v6 = vld [vmem:[#allocation56_spill] sm:$0xff] }
 0x349   :  { %7277 = vmatmul.mubr.f32.gmra.mrb[18].mxu1 %v12538_v21  ;;  %v14940_v21 = vld [vmem:[#allocation45_spill] sm:$0xff] }
 0x34a   :  { %7282 = vmatprep.mubr.f32.mxu1 %v14650_v26 }
 0x34d   :  { %7284 = vmatmul.mubr.f32.gmra.mrb[20].mxu1 %v12565_v12  ;;  %v14945_v12 = vld [vmem:[#allocation61_spill] sm:$0xff] }
 0x34e   :  { %7289 = vmatprep.mubr.f32.mxu1 %v14650_v26 }
 0x351   :  { %7291 = vmatmul.mubr.f32.gmra.mrb[22].mxu1 %v12584_v50  ;;  %v14946_v50 = vld [vmem:[#allocation62_spill] sm:$0xff] }
 0x352   :  { %7369 = vmatprep.mubr.f32.mxu1 %v14650_v26 }
 0x355   :  { %7375 = vmatmul.mubr.f32.vlgmr.msra.gmra.mrb[16].mxu1 %v14939_v6  ;;  %v14947_v6 = vld [vmem:[#allocation47_spill] sm:$0xff] }
 0x356   :  { %10479 = vmatpush1.bf16.msra.mxu1 %v14940_v21  ;;  %7380 = vmatprep.mubr.f32.mxu1 %v14650_v26  ;;  %v14948_v21 = vld [vmem:[#allocation41_spill] sm:$0xff] }
 0x357   :  { %10481 = vmatprep.subr.bf16.mxu1 %v14943_v29  ;;  %v14950_v35 = vpack.c.bf16 %v14948_v21, %v14949_v37  ;;  %v14956_v21 = vld [vmem:[#allocation52_spill] sm:$0xff] }
 0x359   :  { %7386 = vmatmul.mubr.f32.gmra.mrb[18].mxu1 %v14944_v31 }
 0x35a   :  { %7391 = vmatprep.mubr.f32.mxu1 %v14650_v26 }
 0x35d   :  { %7397 = vmatmul.mubr.f32.gmra.mrb[20].mxu1 %v14945_v12 }
 0x35e   :  { %7402 = vmatprep.mubr.f32.mxu1 %v14650_v26 }
 0x361   :  { %7408 = vmatmul.mubr.f32.gmra.mrb[22].mxu1 %v14946_v50 }
 0x362   :  { %7498 = vmatprep.mubr.f32.mxu1 %v14650_v26 }
 0x365   :  { %7500 = vmatmul.mubr.f32.vlgmr.msra.gmra.mrb[16].mxu1 %v14947_v6 }
 0x366   :  { %10483 = vmatpush1.bf16.msra.mxu1 %v14950_v35  ;;  %7505 = vmatprep.mubr.f32.mxu1 %v14650_v26 }
 0x367   :  { %10485 = vmatprep.subr.bf16.mxu1 %v12642_v61  ;;  %v13686_v9 = vpop.f32.mrb[8].mxu1 }
 0x368   :  { %14951 = vst [vmem:[#allocation56_spill] sm:$0xff] %v13686_v9  ;;  %v13688_v29 = vpop.f32.mrb[9].mxu1  ;;  %v4549_v12 = vmul.f32 %v13686_v9, %v13686_v9 }
 0x369   :  { %14952 = vst [vmem:[#allocation45_spill] sm:$0xff] %v13688_v29  ;;  %7507 = vmatmul.mubr.f32.gmra.mrb[18].mxu1 %v14953_v58  ;;  %v4550_v28 = vmul.f32 %v13688_v29, %v13688_v29 }
 0x36a   :  { %7512 = vmatprep.mubr.f32.mxu1 %v14650_v26 }
 0x36b   :  { %v13692_v31 = vpop.f32.mrb[10].mxu1 }
 0x36c   :  { %14954 = vst [vmem:[#allocation42_spill] sm:$0xff] %v13692_v31  ;;  %v4531_v35 = vadd.f32 %v13692_v31, %v13686_v9  ;;  %v4551_v37 = vmul.f32 %v13692_v31, %v13692_v31  ;;  %v13700_v50 = vpop.f32.mrb[11].mxu1 }
 0x36d   :  { %14955 = vst [vmem:[#allocation39_spill] sm:$0xff] %v13700_v50  ;;  %7514 = vmatmul.mubr.f32.gmra.mrb[20].mxu1 %v14956_v21  ;;  %v4540_v3 = vadd.f32 %v13700_v50, %v13688_v29  ;;  %v4552_v15 = vmul.f32 %v13700_v50, %v13700_v50 }
 0x36e   :  { %7519 = vmatprep.mubr.f32.mxu1 %v14650_v26  ;;  %v4557_v17 = vadd.f32 %v4551_v37, %v4549_v12 }
 0x36f   :  { %v4566_v9 = vadd.f32 %v4552_v15, %v4550_v28  ;;  %v13710_v34 = vpop.f32.mrb[12].mxu1 }
 0x370   :  { %14957 = vst [vmem:[#allocation59_spill] sm:$0xff] %v13710_v34  ;;  %v4532_v31 = vadd.f32 %v4531_v35, %v13710_v34  ;;  %v4553_v25 = vmul.f32 %v13710_v34, %v13710_v34  ;;  %v13715_v43 = vpop.f32.mrb[13].mxu1 }
 0x371   :  { %14958 = vst [vmem:[#allocation61_spill] sm:$0xff] %v13715_v43  ;;  %7521 = vmatmul.mubr.f32.gmra.mrb[22].mxu1 %v14959_v24  ;;  %v4541_v29 = vadd.f32 %v4540_v3, %v13715_v43  ;;  %v4554_v50 = vmul.f32 %v13715_v43, %v13715_v43 }
 0x372   :  { %7599 = vmatprep.mubr.f32.mxu1 %v14650_v26  ;;  %v4558_v12 = vadd.f32 %v4557_v17, %v4553_v25 }
 0x373   :  { %v4567_v15 = vadd.f32 %v4566_v9, %v4554_v50  ;;  %v13722_v28 = vpop.f32.mrb[14].mxu1  ;;  %v14963_v9 = vld [vmem:[#allocation44_spill] sm:$0xff] }
 0x374   :  { %14960 = vst [vmem:[#allocation62_spill] sm:$0xff] %v13722_v28  ;;  %v4533_v35 = vadd.f32 %v4532_v31, %v13722_v28  ;;  %v4555_v37 = vmul.f32 %v13722_v28, %v13722_v28  ;;  %v13727_v34 = vpop.f32.mrb[15].mxu1 }
 0x375   :  { %14961 = vst [vmem:[#allocation47_spill] sm:$0xff] %v13727_v34  ;;  %7602 = vmatmul.mubr.f32.vlgmr.msra.gmra.mrb[16].mxu1 %v14962_v10  ;;  %v4542_v3 = vadd.f32 %v4541_v29, %v13727_v34  ;;  %v4556_v43 = vmul.f32 %v13727_v34, %v13727_v34 }
 0x376   :  { %10487 = vmatpush1.bf16.msra.mxu1 %v14933_v60  ;;  %7607 = vmatprep.mubr.f32.mxu1 %v14650_v26  ;;  %v4534_v17 = vrot.slane %v4533_v35, 4  ;;  %v4559_v25 = vadd.f32 %v4558_v12, %v4555_v37 }
 0x377   :  { %10489 = vmatprep.subr.bf16.mxu1 %v14963_v9  ;;  %v4543_v31 = vrot.slane %v4542_v3, 4  ;;  %v4568_v50 = vadd.f32 %v4567_v15, %v4556_v43 }
 0x378   :  { %v4535_v28 = vadd.f32 %v4534_v17, %v4533_v35  ;;  %v4560_v0 = vrot.slane %v4559_v25, 4  ;;  %v14966_v17 = vld [vmem:[#allocation58_spill] sm:$0xff] }
 0x379   :  { %7610 = vmatmul.mubr.f32.gmra.mrb[18].mxu1 %v14964_v7  ;;  %v4544_v10 = vadd.f32 %v4543_v31, %v4542_v3  ;;  %v4569_v46 = vrot.slane %v4568_v50, 4 }
 0x37a   :  { %7615 = vmatprep.mubr.f32.mxu1 %v14650_v26  ;;  %v4536_v29 = vrot.slane %v4535_v28, 2  ;;  %v4561_v34 = vadd.f32 %v4560_v0, %v4559_v25 }
 0x37b   :  { %v4545_v56 = vrot.slane %v4544_v10, 2  ;;  %v4570_v1 = vadd.f32 %v4569_v46, %v4568_v50  ;;  %v14969_v50 = vld [vmem:[#allocation53_spill] sm:$0xff] }
 0x37c   :  { %v4537_v22 = vadd.f32 %v4536_v29, %v4535_v28  ;;  %v4562_v49 = vrot.slane %v4561_v34, 2 }
 0x37d   :  { %7618 = vmatmul.mubr.f32.gmra.mrb[20].mxu1 %v14965_v27  ;;  %v4546_v12 = vadd.f32 %v4545_v56, %v4544_v10  ;;  %v4571_v37 = vrot.slane %v4570_v1, 2  ;;  %v14967_v56 = vld [vmem:[#allocation50_spill] sm:$0xff] }
 0x37e   :  { %7623 = vmatprep.mubr.f32.mxu1 %v14650_v26  ;;  %v4538_v43 = vrot.slane %v4537_v22, 1  ;;  %v4563_v15 = vadd.f32 %v4562_v49, %v4561_v34  ;;  %v14968_v49 = vld [vmem:[#allocation43_spill] sm:$0xff] }
 0x37f   :  { %v4547_v35 = vrot.slane %v4546_v12, 1  ;;  %v4572_v7 = vadd.f32 %v4571_v37, %v4570_v1  ;;  %v14970_v37 = vld [vmem:[#allocation57_spill] sm:$0xff] }
 0x380   :  { %v4564_v3 = vrot.slane %v4563_v15, 1  ;;  %v4539_v0 = vadd.f32 %v4538_v43, %v4537_v22 }
 0x381   :  { %7626 = vmatmul.mubr.f32.gmra.mrb[22].mxu1 %v14966_v17  ;;  %v4573_v9 = vrot.slane %v4572_v7, 1  ;;  %v4548_v28 = vadd.f32 %v4547_v35, %v4546_v12  ;;  %v14973_v17 = vld [vmem:[#allocation70_spill] sm:$0xff] }
 0x382   :  { %7700 = vmatprep.mubr.f32.mxu1 %v14650_v26  ;;  %v4565_v46 = vadd.f32 %v4564_v3, %v4563_v15  ;;  %v14972_v3 = vld [vmem:[#allocation65_spill] sm:$0xff] }
 0x383   :  { %v4574_v25 = vadd.f32 %v4573_v9, %v4572_v7  ;;  %v14971_v7 = vld [vmem:[#allocation60_spill] sm:$0xff] }
 0x384   :  { %v4576_v27 = vsel %vm4575_vm2, %v4539_v0, %v4565_v46  ;;  %v14975_v9 = vld [vmem:[#allocation80_spill] sm:$0xff]  ;;  %v14981_v46 = vld [vmem:[#allocation17_spill] sm:$0xff] }
 0x385   :  { %7704 = vmatmul.mubr.f32.vlgmr.msra.gmra.mrb[16].mxu1 %v14967_v56  ;;  %v13744_v31 = vand.u32 4294901760, %v4576_v27  ;;  %v4577_v1 = vsel %vm4575_vm2, %v4548_v28, %v4574_v25  ;;  %v14980_v0 = vld [vmem:[#allocation36_spill] sm:$0xff]  ;;  %v14982_v28 = vld [vmem:[#allocation27_spill] sm:$0xff]  ;;  %v14983_v25 = vld [vmem:[#allocation13_spill] sm:$0xff] }
 0x386   :  { %10491 = vmatpush1.bf16.msra.mxu1 %v14968_v49  ;;  %7709 = vmatprep.mubr.f32.mxu1 %v14650_v26  ;;  %v13750_v34 = vand.u32 4294901760, %v4577_v1  ;;  %v14985_v56 = vld [vmem:[#allocation35_spill] sm:$0xff]  ;;  %v14986_v49 = vld [vmem:[#allocation20_spill] sm:$0xff] }
 0x387   :  { %10493 = vmatprep.subr.bf16.mxu1 %v12642_v61  ;;  %v13753_v22 = vsub.f32 %v4576_v27, %v13744_v31  ;;  %v14984_v27 = vld [vmem:[#allocation19_spill] sm:$0xff] }
 0x388   :  { %v13757_v10 = vsub.f32 %v4577_v1, %v13750_v34  ;;  %v14987_v1 = vld [vmem:[#allocation11_spill] sm:$0xff] }
 0x389   :  { %7713 = vmatmul.mubr.f32.gmra.mrb[18].mxu1 %v14969_v50  ;;  %v14567_v29 = vand.u32 4294901760, %v13753_v22  ;;  %v14988_v50 = vld [vmem:[#allocation25_spill] sm:$0xff] }
 0x38a   :  { %7718 = vmatprep.mubr.f32.mxu1 %v14650_v26  ;;  %v4676_v12 = vand.u32 4294901760, %v13757_v10 }
 0x38b   :  { %v4683_v61 = vsub.f32 %v13753_v22, %v14567_v29 }
 0x38c   :  { %v4677_v43 = vsub.f32 %v13757_v10, %v4676_v12 }
 0x38d   :  { %7722 = vmatmul.mubr.f32.gmra.mrb[20].mxu1 %v14970_v37  ;;  %v4684_v35 = vand.u32 4294901760, %v4683_v61  ;;  %v14991_v61 = vand.u32 4294901760, %v13194_v2  ;;  %v14992_v37 = vand.u32 4294901760, %v13199_v39  ;;  %v15001_v2 = vand.u32 4294901760, %v13753_v22 }
 0x38e   :  { %7727 = vmatprep.mubr.f32.mxu1 %v14650_v26  ;;  %v4678_v15 = vand.u32 4294901760, %v4677_v43  ;;  %v15002_v39 = vand.u32 4294901760, %v13290_v40  ;;  %v15016_v40 = vld [vmem:[#allocation64_spill] sm:$0xff] }
 0x38f   :  { %v13844_v43 = vpack.c.bf16 %v14992_v37, %v14991_v61 }
 0x390   :  { %4679 = vmatprep.mubr.f32.mxu0 %v4678_v15  ;;  %v14994_v15 = vld [vmem:[#allocation18_spill] sm:$0xff] }
 0x391   :  { %7731 = vmatmul.mubr.f32.gmra.mrb[22].mxu1 %v14971_v7  ;;  %4685 = vmatmul.mubr.f32.vlgmr.msra.gmra.mrb[24].mxu0 %v4684_v35  ;;  %14993 = vst [vmem:[#allocation41_spill] sm:$0xff] %v13844_v43  ;;  %v14995_v35 = vand.u32 4294901760, %v13221_v38  ;;  %v14996_v7 = vand.u32 4294901760, %v13226_v4  ;;  %v15003_v4 = vld [vmem:[#allocation15_spill] sm:$0xff] }
 0x392   :  { %7813 = vmatprep.mubr.f32.mxu1 %v14650_v26  ;;  %10267 = vmatpush3.bf16.msra.mxu0 %v13311_v59  ;;  %v15004_v38 = vand.u32 4294901760, %v15003_v4  ;;  %v15018_v4 = vld [vmem:[#allocation66_spill] sm:$0xff] }
 0x393   :  { %4915 = vmatprep.mubr.f32.mxu0 %v13750_v34  ;;  %10269 = vmatprep.subr.bf16.mxu0 %v14972_v3  ;;  %v13851_v29 = vpack.c.bf16 %v14996_v7, %v14995_v35  ;;  %v15013_v7 = vld [vmem:[#allocation63_spill] sm:$0xff] }
 0x394   :  { %v13868_v61 = vpack.c.bf16 %v15004_v38, %v15002_v39  ;;  %v15017_v39 = vand.u32 4294901760, %v15016_v40  ;;  %v15019_v38 = vand.u32 4294901760, %v15018_v4  ;;  %v15031_v40 = vld [vmem:[#allocation71_spill] sm:$0xff]  ;;  %v15033_v4 = vld [vmem:[#allocation72_spill] sm:$0xff] }
 0x395   :  { %7815 = vmatmul.mubr.f32.vlgmr.msra.gmra.mrb[16].mxu1 %v14947_v6  ;;  %14997 = vst [vmem:[#allocation38_spill] sm:$0xff] %v13851_v29 }
 0x396   :  { %10495 = vmatpush1.bf16.msra.mxu1 %v14933_v60  ;;  %7820 = vmatprep.mubr.f32.mxu1 %v14650_v26  ;;  %v14974_v60 = vld [vmem:[#allocation77_spill] sm:$0xff]  ;;  %15005 = vst [vmem:[#allocation52_spill] sm:$0xff] %v13868_v61 }
 0x397   :  { %10271 = vmatpush3.bf16.msra.mxu0 %v13370_v13 }
 0x398   :  { %10273 = vmatprep.subr.bf16.mxu0 %v13390_v53 }
 0x399   :  { %7822 = vmatmul.mubr.f32.gmra.mrb[18].mxu1 %v14953_v58 }
 0x39a   :  { %7827 = vmatprep.mubr.f32.mxu1 %v14650_v26 }
 0x39b   :  { %10275 = vmatpush3.bf16.msra.mxu0 %v14973_v17 }
 0x39c   :  { %10277 = vmatprep.subr.bf16.mxu0 %v13439_v18 }
 0x39d   :  { %7829 = vmatmul.mubr.f32.gmra.mrb[20].mxu1 %v14956_v21 }
 0x39e   :  { %7834 = vmatprep.mubr.f32.mxu1 %v14650_v26 }
 0x39f   :  { %10279 = vmatpush3.bf16.msra.mxu0 %v13454_v33 }
 0x3a0   :  { %10281 = vmatprep.subr.bf16.mxu0 %v14974_v60 }
 0x3a1   :  { %7836 = vmatmul.mubr.f32.gmra.mrb[22].mxu1 %v14959_v24 }
 0x3a2   :  { %7910 = vmatprep.mubr.f32.mxu1 %v14650_v26 }
 0x3a3   :  { %10283 = vmatpush3.bf16.msra.mxu0 %v14975_v9 }
 0x3a4   :  { %10285 = vmatprep.subr.bf16.mxu0 %v13525_v54 }
 0x3a5   :  { %7912 = vmatmul.mubr.f32.vlgmr.msra.gmra.mrb[16].mxu1 %v14947_v6  ;;  %v14977_v6 = vld [vmem:[#allocation28_spill] sm:$0xff] }
 0x3a6   :  { %7917 = vmatprep.mubr.f32.mxu1 %v14650_v26 }
 0x3a7   :  { %10287 = vmatpush3.bf16.msra.mxu0 %v13541_v5 }
 0x3a8   :  { %10289 = vmatprep.subr.bf16.mxu0 %v13561_v36 }
 0x3a9   :  { %7919 = vmatmul.mubr.f32.gmra.mrb[18].mxu1 %v14953_v58  ;;  %v14978_v58 = vld [vmem:[#allocation31_spill] sm:$0xff] }
 0x3aa   :  { %7924 = vmatprep.mubr.f32.mxu1 %v14650_v26 }
 0x3ab   :  { %10291 = vmatpush3.bf16.msra.mxu0 %v13569_v32 }
 0x3ac   :  { %10293 = vmatprep.subr.bf16.mxu0 %v13578_v23 }
 0x3ad   :  { %7926 = vmatmul.mubr.f32.gmra.mrb[20].mxu1 %v14956_v21  ;;  %v14979_v21 = vld [vmem:[#allocation16_spill] sm:$0xff] }
 0x3ae   :  { %7931 = vmatprep.mubr.f32.mxu1 %v14650_v26 }
 0x3af   :  { %10295 = vmatpush3.bf16.msra.mxu0 %v13590_v8 }
 0x3b0   :  { %10297 = vmatprep.subr.bf16.mxu0 %v13582_v51 }
 0x3b1   :  { %7933 = vmatmul.mubr.f32.gmra.mrb[22].mxu1 %v14959_v24  ;;  %v14976_v24 = vld [vmem:[#allocation21_spill] sm:$0xff] }
 0x3b2   :  { %4917 = vmatmul.mubr.f32.vlgmr.msra.gmra.mrb[26].mxu0 %v13744_v31 }
 0x3b3   :  { %10299 = vmatpush3.bf16.msra.mxu0 %v13587_v47  ;;  %5052 = vmatprep.mubr.f32.mxu0 %v13757_v10  ;;  %v14989_v10 = vld [vmem:[#allocation10_spill] sm:$0xff] }
 0x3b4   :  { %10301 = vmatprep.subr.bf16.mxu0 %v13594_v11 }
 0x3b7   :  { %10303 = vmatpush3.bf16.msra.mxu0 %v13598_v45 }
 0x3b8   :  { %10305 = vmatprep.subr.bf16.mxu0 %v13606_v19 }
 0x3bb   :  { %10307 = vmatpush3.bf16.msra.mxu0 %v13610_v63 }
 0x3bc   :  { %10309 = vmatprep.subr.bf16.mxu0 %v13616_v55 }
 0x3bf   :  { %10311 = vmatpush3.bf16.msra.mxu0 %v13620_v20 }
 0x3c0   :  { %10313 = vmatprep.subr.bf16.mxu0 %v13626_v44 }
 0x3c3   :  { %10315 = vmatpush3.bf16.msra.mxu0 %v13630_v62 }
 0x3c4   :  { %10317 = vmatprep.subr.bf16.mxu0 %v13636_v16 }
 0x3c7   :  { %10319 = vmatpush3.bf16.msra.mxu0 %v13640_v14 }
 0x3c8   :  { %10321 = vmatprep.subr.bf16.mxu0 %v13648_v41 }
 0x3cb   :  { %10323 = vmatpush3.bf16.msra.mxu0 %v13652_v42 }
 0x3cc   :  { %10325 = vmatprep.subr.bf16.mxu0 %v13658_v57  ;;  %v14999_v57 = vand.u32 4294901760, %v13282_v48  ;;  %v15008_v48 = vld [vmem:[#allocation26_spill] sm:$0xff] }
 0x3cf   :  { %10327 = vmatpush3.bf16.msra.mxu0 %v13662_v52  ;;  %v14998_v52 = vand.u32 4294901760, %v13264_v30  ;;  %v15006_v30 = vld [vmem:[#allocation24_spill] sm:$0xff] }
 0x3d0   :  { %10329 = vmatprep.subr.bf16.mxu0 %v14976_v24  ;;  %v15007_v37 = vand.u32 4294901760, %v15006_v30  ;;  %v15021_v30 = vld [vmem:[#allocation23_spill] sm:$0xff] }
 0x3d1   :  { %v13858_v42 = vpack.c.bf16 %v14999_v57, %v14998_v52  ;;  %v15009_v52 = vand.u32 4294901760, %v15008_v48  ;;  %v15023_v48 = vld [vmem:[#allocation67_spill] sm:$0xff] }
 0x3d2   :  { %5055 = vmatmul.mubr.f32.vlgmr.msra.gmra.mrb[28].mxu0 %v13753_v22  ;;  %v15011_v22 = vld [vmem:[#allocation22_spill] sm:$0xff] }
 0x3d3   :  { %10331 = vmatpush3.bf16.msra.mxu0 %v14977_v6  ;;  %5159 = vmatprep.mubr.f32.mxu0 %v4676_v12  ;;  %v14990_v12 = vld [vmem:[#allocation9_spill] sm:$0xff]  ;;  %15000 = vst [vmem:[#allocation49_spill] sm:$0xff] %v13858_v42  ;;  %v13875_v57 = vpack.c.bf16 %v15009_v52, %v15007_v37  ;;  %v15012_v35 = vand.u32 4294901760, %v15011_v22  ;;  %v15022_v37 = vand.u32 4294901760, %v15021_v30  ;;  %v15024_v52 = vand.u32 4294901760, %v15023_v48  ;;  %v15026_v22 = vld [vmem:[#allocation68_spill] sm:$0xff] }
 0x3d4   :  { %10333 = vmatprep.subr.bf16.mxu0 %v14978_v58  ;;  %v15036_v30 = vld [vmem:[#allocation73_spill] sm:$0xff]  ;;  %v15038_v48 = vld [vmem:[#allocation74_spill] sm:$0xff] }
 0x3d5   :  { %15010 = vst [vmem:[#allocation55_spill] sm:$0xff] %v13875_v57 }
 0x3d7   :  { %10335 = vmatpush3.bf16.msra.mxu0 %v14979_v21 }
 0x3d8   :  { %10337 = vmatprep.subr.bf16.mxu0 %v14980_v0 }
 0x3db   :  { %10339 = vmatpush3.bf16.msra.mxu0 %v14981_v46 }
 0x3dc   :  { %10341 = vmatprep.subr.bf16.mxu0 %v14982_v28 }
 0x3df   :  { %10343 = vmatpush3.bf16.msra.mxu0 %v14983_v25 }
 0x3e0   :  { %10345 = vmatprep.subr.bf16.mxu0 %v14984_v27 }
 0x3e3   :  { %10347 = vmatpush3.bf16.msra.mxu0 %v14985_v56 }
 0x3e4   :  { %10349 = vmatprep.subr.bf16.mxu0 %v14986_v49 }
 0x3e7   :  { %10351 = vmatpush3.bf16.msra.mxu0 %v14987_v1 }
 0x3e8   :  { %10353 = vmatprep.subr.bf16.mxu0 %v14988_v50 }
 0x3eb   :  { %10355 = vmatpush3.bf16.msra.mxu0 %v14989_v10 }
 0x3ec   :  { %10357 = vmatprep.subr.bf16.mxu0 %v14990_v12 }
 0x3ef   :  { %10359 = vmatpush3.bf16.msra.mxu0 %v14994_v15 }
 0x3f0   :  { %10361 = vmatprep.subr.bf16.mxu0 %v13844_v43 }
 0x3f2   :  { %5163 = vmatmul.mubr.f32.vlgmr.msra.gmra.mrb[30].mxu0 %v15001_v2  ;;  %v15014_v2 = vand.u32 4294901760, %v15013_v7  ;;  %v15028_v7 = vld [vmem:[#allocation69_spill] sm:$0xff] }
 0x3f3   :  { %10363 = vmatpush3.bf16.msra.mxu0 %v13851_v29  ;;  %5329 = vmatprep.mubr.f32.mxu0 %v13750_v34 }
 0x3f4   :  { %10365 = vmatprep.subr.bf16.mxu0 %v13858_v42  ;;  %v13882_v29 = vpack.c.bf16 %v15014_v2, %v15012_v35  ;;  %v13889_v42 = vpack.c.bf16 %v15019_v38, %v15017_v39  ;;  %v15027_v35 = vand.u32 4294901760, %v15026_v22  ;;  %v15029_v2 = vand.u32 4294901760, %v15028_v7  ;;  %v15041_v22 = vld [vmem:[#allocation75_spill] sm:$0xff]  ;;  %v15043_v7 = vld [vmem:[#allocation76_spill] sm:$0xff] }
 0x3f5   :  { %v15032_v39 = vand.u32 4294901760, %v15031_v40  ;;  %v15034_v38 = vand.u32 4294901760, %v15033_v4  ;;  %v15046_v40 = vld [vmem:[#allocation78_spill] sm:$0xff]  ;;  %v15048_v4 = vld [vmem:[#allocation79_spill] sm:$0xff] }
 0x3f6   :  { %15015 = vst [vmem:[#allocation48_spill] sm:$0xff] %v13882_v29  ;;  %15020 = vst [vmem:[#allocation44_spill] sm:$0xff] %v13889_v42 }
 0x3f7   :  { %10367 = vmatpush3.bf16.msra.mxu0 %v13868_v61  ;;  %v13896_v61 = vpack.c.bf16 %v15024_v52, %v15022_v37  ;;  %v15037_v37 = vand.u32 4294901760, %v15036_v30  ;;  %v15039_v52 = vand.u32 4294901760, %v15038_v48  ;;  %v15051_v30 = vld [vmem:[#allocation81_spill] sm:$0xff]  ;;  %v15053_v48 = vld [vmem:[#allocation82_spill] sm:$0xff] }
 0x3f8   :  { %10369 = vmatprep.subr.bf16.mxu0 %v13875_v57  ;;  %v13903_v57 = vpack.c.bf16 %v15029_v2, %v15027_v35  ;;  %v15042_v35 = vand.u32 4294901760, %v15041_v22  ;;  %v15044_v2 = vand.u32 4294901760, %v15043_v7  ;;  %v15056_v22 = vld [vmem:[#allocation12_spill] sm:$0xff]  ;;  %v15058_v7 = vld [vmem:[#allocation83_spill] sm:$0xff] }
 0x3f9   :  { %15025 = vst [vmem:[#allocation51_spill] sm:$0xff] %v13896_v61 }
 0x3fa   :  { %15030 = vst [vmem:[#allocation54_spill] sm:$0xff] %v13903_v57 }
 0x3fb   :  { %10371 = vmatpush3.bf16.msra.mxu0 %v13882_v29  ;;  %v13910_v29 = vpack.c.bf16 %v15034_v38, %v15032_v39  ;;  %v15047_v39 = vand.u32 4294901760, %v15046_v40  ;;  %v15049_v38 = vand.u32 4294901760, %v15048_v4  ;;  %v15061_v40 = vld [vmem:[#allocation84_spill] sm:$0xff]  ;;  %v15063_v4 = vld [vmem:[#allocation85_spill] sm:$0xff] }
 0x3fc   :  { %10373 = vmatprep.subr.bf16.mxu0 %v13889_v42  ;;  %v13917_v42 = vpack.c.bf16 %v15039_v52, %v15037_v37  ;;  %v15052_v37 = vand.u32 4294901760, %v15051_v30  ;;  %v15054_v52 = vand.u32 4294901760, %v15053_v48 }
 0x3fd   :  { %15035 = vst [vmem:[#allocation58_spill] sm:$0xff] %v13910_v29 }
 0x3fe   :  { %15040 = vst [vmem:[#allocation50_spill] sm:$0xff] %v13917_v42 }
 0x3ff   :  { %10375 = vmatpush3.bf16.msra.mxu0 %v13896_v61  ;;  %v13924_v61 = vpack.c.bf16 %v15044_v2, %v15042_v35  ;;  %v15057_v35 = vand.u32 4294901760, %v15056_v22  ;;  %v15059_v2 = vand.u32 4294901760, %v15058_v7  ;;  %v2557_v7 = vld [vmem:[#allocation3 + $0x8] sm:$0xff] }
 0x400   :  { %10377 = vmatprep.subr.bf16.mxu0 %v13903_v57  ;;  %v13931_v57 = vpack.c.bf16 %v15049_v38, %v15047_v39  ;;  %v15062_v39 = vand.u32 4294901760, %v15061_v40  ;;  %v15064_v38 = vand.u32 4294901760, %v15063_v4 }
 0x401   :  { %15045 = vst [vmem:[#allocation43_spill] sm:$0xff] %v13924_v61 }
 0x402   :  { %15050 = vst [vmem:[#allocation53_spill] sm:$0xff] %v13931_v57 }
 0x403   :  { %10379 = vmatpush3.bf16.msra.mxu0 %v13910_v29  ;;  %v13938_v29 = vpack.c.bf16 %v15054_v52, %v15052_v37 }
 0x404   :  { %10381 = vmatprep.subr.bf16.mxu0 %v13917_v42  ;;  %v13945_v42 = vpack.c.bf16 %v15059_v2, %v15057_v35  ;;  %v2556_v2 = vld [vmem:[#allocation3] sm:$0xff] }
 0x405   :  { %15055 = vst [vmem:[#allocation57_spill] sm:$0xff] %v13938_v29  ;;  %v13978_v4 = vand.u32 4294901760, %v2556_v2 }
 0x406   :  { %15060 = vst [vmem:[#allocation60_spill] sm:$0xff] %v13945_v42 }
 0x407   :  { %10383 = vmatpush3.bf16.msra.mxu0 %v13924_v61  ;;  %v13952_v61 = vpack.c.bf16 %v15064_v38, %v15062_v39  ;;  %v13976_v39 = vand.u32 4294901760, %v2557_v7  ;;  %15067 = vst [vmem:[#allocation77_spill] sm:$0xff] %v13978_v4  ;;  %v14010_v51 = vsub.f32 %v2556_v2, %v13978_v4  ;;  %v15078_v2 = vld [vmem:[#allocation34_spill] sm:$0xff] }
 0x408   :  { %10385 = vmatprep.subr.bf16.mxu0 %v13931_v57 }
 0x409   :  { %15065 = vst [vmem:[#allocation65_spill] sm:$0xff] %v13952_v61  ;;  %15066 = vst [vmem:[#allocation70_spill] sm:$0xff] %v13976_v39 }
 0x40a   :  { %15071 = vst [vmem:[#allocation31_spill] sm:$0xff] %v14010_v51 }
 0x40b   :  { %10387 = vmatpush3.bf16.msra.mxu0 %v13938_v29 }
 0x40c   :  { %10389 = vmatprep.subr.bf16.mxu0 %v13945_v42 }
 0x40f   :  { %10391 = vmatpush3.bf16.msra.mxu0 %v13952_v61 }
 0x410   :  { %10393 = vmatprep.subr.bf16.mxu0 %v14976_v24 }
 0x412   :  { %5331 = vmatmul.mubr.f32.vlgmr.msra.gmra.mrb[32].mxu0 %v13744_v31 }
 0x413   :  { %10395 = vmatpush3.bf16.msra.mxu0 %v14977_v6  ;;  %5433 = vmatprep.mubr.f32.mxu0 %v13750_v34 }
 0x414   :  { %10397 = vmatprep.subr.bf16.mxu0 %v14978_v58 }
 0x417   :  { %10399 = vmatpush3.bf16.msra.mxu0 %v14979_v21 }
 0x418   :  { %10401 = vmatprep.subr.bf16.mxu0 %v14980_v0 }
 0x41b   :  { %10403 = vmatpush3.bf16.msra.mxu0 %v14981_v46 }
 0x41c   :  { %10405 = vmatprep.subr.bf16.mxu0 %v14982_v28 }
 0x41f   :  { %10407 = vmatpush3.bf16.msra.mxu0 %v14983_v25 }
 0x420   :  { %10409 = vmatprep.subr.bf16.mxu0 %v14984_v27 }
 0x423   :  { %10411 = vmatpush3.bf16.msra.mxu0 %v14985_v56 }
 0x424   :  { %10413 = vmatprep.subr.bf16.mxu0 %v14986_v49 }
 0x427   :  { %10415 = vmatpush3.bf16.msra.mxu0 %v14987_v1 }
 0x428   :  { %10417 = vmatprep.subr.bf16.mxu0 %v14988_v50 }
 0x42b   :  { %10419 = vmatpush3.bf16.msra.mxu0 %v14989_v10 }
 0x42c   :  { %10421 = vmatprep.subr.bf16.mxu0 %v14990_v12 }
 0x42f   :  { %10423 = vmatpush3.bf16.msra.mxu0 %v14994_v15 }
 0x430   :  { %5454 = vmatprep.subr.mxu0 %v13976_v39 }
 0x432   :  { %5435 = vmatmul.mubr.f32.vlgmr.msra.gmra.mrb[34].mxu0 %v13744_v31 }
 0x433   :  { %5519 = vmatprep.mubr.f32.mxu0 %v14650_v26  ;;  %5456 = vmatpush1.msra.mxu0 %v13978_v4 }
 0x464   :  { %v9484_v34 = vpop.f32.mrb[24].mxu0 }
 0x465   :  { %v9485_v30 = vpop.f32.mrb[25].mxu0 }
 0x466   :  { %v9486_v37 = vadd.f32 %v9485_v30, %v9484_v34  ;;  %v13983_v34 = vsub.f32 %v2557_v7, %v13976_v39 }
 0x468   :  { %15068 = vst [vmem:[#allocation80_spill] sm:$0xff] %v13983_v34 }
 0x478   :  { %v13985_v30 = vpop.f32.mrb[16].mxu1 }
 0x485   :  { %v9519_v48 = vpop.f32.mrb[26].mxu0 }
 0x486   :  { %v9520_v52 = vpop.f32.mrb[27].mxu0 }
 0x487   :  { %v9521_v22 = vadd.f32 %v9520_v52, %v9519_v48  ;;  %v13990_v48 = vand.u32 4294901760, %v13983_v34 }
 0x489   :  { %v4919_v35 = vadd.f32 %v9521_v22, %v9486_v37  ;;  %v13987_v37 = vpop.f32.mrb[17].mxu1  ;;  %15069 = vst [vmem:[#allocation21_spill] sm:$0xff] %v13990_v48  ;;  %v5534_v52 = vsub.f32 %v13983_v34, %v13990_v48 }
 0x48a   :  { %v13994_v22 = vpop.f32.mrb[18].mxu1 }
 0x4a5   :  { %v9554_v40 = vpop.f32.mrb[28].mxu0 }
 0x4a6   :  { %v9555_v38 = vpop.f32.mrb[29].mxu0 }
 0x4a7   :  { %v9556_v61 = vadd.f32 %v9555_v38, %v9554_v40  ;;  %v13996_v40 = vpop.f32.mrb[19].mxu1  ;;  %v13998_v38 = vand.u32 4294901760, %v5534_v52 }
 0x4a9   :  { %v5057_v31 = vadd.f32 %v9556_v61, %v4919_v35  ;;  %15070 = vst [vmem:[#allocation28_spill] sm:$0xff] %v13998_v38  ;;  %5536 = vmatprep.subr.mxu0 %v13998_v38  ;;  %v14001_v61 = vpop.f32.mrb[20].mxu1 }
 0x4aa   :  { %v14003_v35 = vpop.f32.mrb[21].mxu1 }
 0x4ab   :  { %v14005_v7 = vpop.f32.mrb[22].mxu1 }
 0x4ac   :  { %v14007_v42 = vpop.f32.mrb[23].mxu1 }
 0x4c5   :  { %v9589_v29 = vpop.f32.mrb[30].mxu0 }
 0x4c6   :  { %v9590_v57 = vpop.f32.mrb[31].mxu0 }
 0x4c7   :  { %v9591_v43 = vadd.f32 %v9590_v57, %v9589_v29  ;;  %v15077_v57 = vld [vmem:[#allocation30_spill] sm:$0xff] }
 0x4c9   :  { %v5165_v41 = vadd.f32 %v9591_v43, %v5057_v31  ;;  %v15079_v31 = vld [vmem:[#allocation37_spill] sm:$0xff] }
 0x4e5   :  { %v9624_v14 = vpop.f32.mrb[32].mxu0 }
 0x4e6   :  { %v9625_v16 = vpop.f32.mrb[33].mxu0 }
 0x4e7   :  { %v9626_v62 = vadd.f32 %v9625_v16, %v9624_v14  ;;  %v15076_v16 = vld [vmem:[#allocation14_spill] sm:$0xff] }
 0x4e9   :  { %v5333_v44 = vadd.f32 %v9626_v62, %v5165_v41  ;;  %v14015_v41 = vand.u32 4294901760, %v14010_v51  ;;  %v15075_v62 = vld [vmem:[#allocation32_spill] sm:$0xff] }
 0x4eb   :  { %15072 = vst [vmem:[#allocation16_spill] sm:$0xff] %v14015_v41 }
 0x505   :  { %v9659_v52 = vpop.f32.mrb[34].mxu0 }
 0x506   :  { %v9660_v20 = vpop.f32.mrb[35].mxu0 }
 0x507   :  { %v9661_v55 = vadd.f32 %v9660_v20, %v9659_v52  ;;  %v11160_v52 = vmov 1966171168  }
 0x509   :  { %v5437_v38 = vadd.f32 %v9661_v55, %v5333_v44 }
 0x50b   :  { %v5440_v63 = vmul.f32 0.0009765625, %v5437_v38  ;;  %v15080_v38 = vld [vmem:[#allocation29_spill] sm:$0xff] }
 0x50d   :  { %v5441_v19 = vmul.f32 %v5440_v63, %v5440_v63 }
 0x50f   :  { %v5443_v45 = vrot.slane %v5441_v19, 7  ;;  %v5540_v19 = vsub.f32 %v14010_v51, %v14015_v41 }
 0x511   :  { %v5445_v11 = vsub.f32 %v5440_v63, %v5443_v45 }
 0x513   :  { %v5446_v47 = vadd.f32 1e-05, %v5445_v11 }
 0x515   :  { %11106 = vrsqrt.f32 %v5446_v47  ;;  %v14019_v47 = vand.u32 4294901760, %v5540_v19 }
 0x517   :  { %15073 = vst [vmem:[#allocation36_spill] sm:$0xff] %v14019_v47 }
 0x51f   :  { %v11107_v29 = vpop.eup %11106 }
 0x520   :  { %v5448_v43 = vsel %vm4575_vm2, %v5440_v63, %v11107_v29  ;;  %v15074_v63 = vld [vmem:[#allocation33_spill] sm:$0xff]  ;;  %v5922_v29 = vunpack.c.l.s4 %v11160_v52 }
 0x521   :  { %v5451_v14 = vsel %vm5449_vm3, %v5448_v43, 0  ;;  %v5924_v43 = vlaneseq }
 0x522   :  { %v5520_v20 = vand.u32 4294901760, %v5451_v14 }
 0x524   :  { %v5521_v55 = vsub.f32 %v5451_v14, %v5520_v20  ;;  %v5923_v14 = vunpack.c.0.s8 %v5922_v29 }
 0x526   :  { %v5522_v45 = vand.u32 4294901760, %v5521_v55 }
 0x528   :  { %v5523_v11 = vsub.f32 %v5521_v55, %v5522_v45 }
 0x52a   :  { %v5524_v44 = vand.u32 4294901760, %v5523_v11 }
 0x52c   :  { %5525 = vmatmul.mubr.f32.vlgmr.msra.gmra.mrb[36].mxu0 %v5524_v44 }
 0x52d   :  { %5542 = vmatpush1.msra.mxu0 %v14019_v47  ;;  %5605 = vmatprep.mubr.f32.mxu0 %v14650_v26 }
 0x52e   :  { %5615 = vmatprep.subr.mxu0 %v13983_v34 }
 0x534   :  { %5607 = vmatmul.mubr.f32.vlgmr.msra.gmra.mrb[36].mxu0 %v5520_v20 }
 0x535   :  { %5618 = vmatpush1.msra.mxu0 %v14010_v51  ;;  %5681 = vmatprep.mubr.f32.mxu0 %v14650_v26 }
 0x536   :  { %5691 = vmatprep.subr.mxu0 %v13976_v39 }
 0x53c   :  { %5684 = vmatmul.mubr.f32.vlgmr.msra.gmra.mrb[36].mxu0 %v5521_v55 }
 0x53d   :  { %5693 = vmatpush1.msra.mxu0 %v13978_v4  ;;  %5756 = vmatprep.mubr.f32.mxu0 %v14650_v26 }
 0x53e   :  { %5769 = vmatprep.subr.mxu0 %v13990_v48 }
 0x544   :  { %5760 = vmatmul.mubr.f32.vlgmr.msra.gmra.mrb[36].mxu0 %v5522_v45 }
 0x545   :  { %5773 = vmatpush1.msra.mxu0 %v14015_v41  ;;  %5836 = vmatprep.mubr.f32.mxu0 %v14650_v26 }
 0x546   :  { %5845 = vmatprep.subr.mxu0 %v13976_v39 }
 0x54c   :  { %5838 = vmatmul.mubr.f32.vlgmr.msra.gmra.mrb[36].mxu0 %v5520_v20 }
 0x54d   :  { %5847 = vmatpush1.msra.mxu0 %v13978_v4  ;;  %5910 = vmatprep.mubr.f32.mxu0 %v14650_v26 }
 0x54e   :  { %10425 = vmatprep.subr.bf16.mxu0 %v15074_v63 }
 0x554   :  { %5912 = vmatmul.mubr.f32.vlgmr.msra.gmra.mrb[36].mxu0 %v5520_v20  ;;  %v5925_v20 = vshrl.u32 %v5924_v43, 7 }
 0x555   :  { %10427 = vmatpush1.bf16.msra.mxu0 %v15075_v62  ;;  %6089 = vmatprep.mubr.f32.mxu0 %v14650_v26 }
 0x556   :  { %10497 = vmatprep.subr.bf16.mxu0 %v14976_v24  ;;  %v14062_v19 = vsub.s32 %v5923_v14, %v5925_v20  ;;  %v14077_v52 = vsub.s32 0, %v5925_v20  ;;  %v14079_v29 = vsub.s32 1, %v5925_v20 }
 0x558   :  { %6095 = vmatmul.mubr.f32.vlgmr.msra.gmra.mrb[38].mxu0 %v15076_v16  ;;  %15081 = vst [vmem:[#allocation17_spill] sm:$0xff] %v14062_v19  ;;  %15085 = vst [vmem:[#allocation35_spill] sm:$0xff] %v14077_v52 }
 0x559   :  { %6100 = vmatprep.mubr.f32.mxu0 %v14650_v26  ;;  %10499 = vmatpush3.bf16.msra.mxu0 %v14977_v6  ;;  %15086 = vst [vmem:[#allocation20_spill] sm:$0xff] %v14079_v29 }
 0x55a   :  { %10501 = vmatprep.subr.bf16.mxu0 %v14978_v58 }
 0x55c   :  { %6106 = vmatmul.mubr.f32.gmra.mrb[40].mxu0 %v15077_v57 }
 0x55d   :  { %6111 = vmatprep.mubr.f32.mxu0 %v14650_v26  ;;  %10503 = vmatpush3.bf16.msra.mxu0 %v14979_v21 }
 0x55e   :  { %10505 = vmatprep.subr.bf16.mxu0 %v14980_v0 }
 0x560   :  { %6117 = vmatmul.mubr.f32.gmra.mrb[42].mxu0 %v15078_v2 }
 0x561   :  { %6122 = vmatprep.mubr.f32.mxu0 %v14650_v26  ;;  %10507 = vmatpush3.bf16.msra.mxu0 %v14981_v46  ;;  %v15091_v26 = vld [vmem:[#allocation56_spill] sm:$0xff] }
 0x562   :  { %10509 = vmatprep.subr.bf16.mxu0 %v14982_v28 }
 0x564   :  { %6128 = vmatmul.mubr.f32.gmra.mrb[44].mxu0 %v15079_v31  ;;  %v14074_v31 = vld [vmem:[%s14297_s5] sm:$0x3] }
 0x565   :  { %10511 = vmatpush3.bf16.msra.mxu0 %v14983_v25  ;;  %15084 = vst [vmem:[#allocation19_spill] sm:$0xff] %v14074_v31 }
 0x566   :  { %10513 = vmatprep.subr.bf16.mxu0 %v14984_v27 }
 0x569   :  { %10515 = vmatpush3.bf16.msra.mxu0 %v14985_v56 }
 0x56a   :  { %10517 = vmatprep.subr.bf16.mxu0 %v14986_v49 }
 0x56d   :  { %10519 = vmatpush3.bf16.msra.mxu0 %v14987_v1 }
 0x56e   :  { %10521 = vmatprep.subr.bf16.mxu0 %v14988_v50 }
 0x571   :  { %10523 = vmatpush3.bf16.msra.mxu0 %v14989_v10 }
 0x572   :  { %10525 = vmatprep.subr.bf16.mxu0 %v14990_v12 }
 0x575   :  { %10527 = vmatpush3.bf16.msra.mxu0 %v14994_v15 }
 0x576   :  { %10529 = vmatprep.subr.bf16.mxu0 %v15080_v38 }
 0x627   :  { %v5913_v55 = vpop.f32.mrb[36].mxu0 }
 0x628   :  { %v5915_v45 = vpop.f32.mrb[37].mxu0 }
 0x629   :  { %v5920_v11 = vcombine.low %v5913_v55, %v5915_v45 }
 0x62b   :  { %v5927_v44 = vrot.slane %v5920_v11, %v14062_v19  ;;  %v6096_v63 = vpop.f32.mrb[38].mxu0 }
 0x62c   :  { %v14066_v62 = vadd.f32 %v13985_v30, %v6096_v63  ;;  %v6098_v16 = vpop.f32.mrb[39].mxu0 }
 0x62d   :  { %v5928_v57 = vcombine.high %v5927_v44, %v5927_v44  ;;  %v14069_v2 = vadd.f32 %v13987_v37, %v6098_v16 }
 0x62e   :  { %15082 = vst [vmem:[#allocation27_spill] sm:$0xff] %v14066_v62  ;;  %v7965_v20 = vmul.f32 %v14066_v62, %v14066_v62 }
 0x62f   :  { %15083 = vst [vmem:[#allocation13_spill] sm:$0xff] %v14069_v2  ;;  %v5935_v38 = vrot.slane %v5928_v57, %v14062_v19  ;;  %v6107_v43 = vpop.f32.mrb[40].mxu0 }
 0x630   :  { %v14082_v30 = vadd.f32 %v13994_v22, %v6107_v43  ;;  %v6109_v14 = vpop.f32.mrb[41].mxu0 }
 0x631   :  { %v5937_v11 = vmul.f32 %v5935_v38, %v14074_v31  ;;  %v14086_v37 = vadd.f32 %v13996_v40, %v6109_v14  ;;  %v7966_v38 = vmul.f32 %v14069_v2, %v14069_v2 }
 0x632   :  { %15087 = vst [vmem:[#allocation11_spill] sm:$0xff] %v14082_v30  ;;  %v7967_v44 = vmul.f32 %v14082_v30, %v14082_v30  ;;  %v7947_v40 = vadd.f32 %v14082_v30, %v14066_v62  ;;  %v15092_v30 = vld [vmem:[#allocation45_spill] sm:$0xff] }
 0x633   :  { %15088 = vst [vmem:[#allocation15_spill] sm:$0xff] %v14086_v37  ;;  %v5942_v63 = vrot.slane %v5937_v11, %v14077_v52  ;;  %v5946_v16 = vrot.slane %v5937_v11, %v14079_v29  ;;  %v7968_v22 = vmul.f32 %v14086_v37, %v14086_v37  ;;  %v6118_v57 = vpop.f32.mrb[42].mxu0  ;;  %v7956_v43 = vadd.f32 %v14086_v37, %v14069_v2 }
 0x634   :  { %v14103_v14 = vadd.f32 %v14001_v61, %v6118_v57  ;;  %v6120_v11 = vpop.f32.mrb[43].mxu0  ;;  %v7973_v48 = vadd.f32 %v7967_v44, %v7965_v20  ;;  %v15095_v57 = vld [vmem:[#allocation39_spill] sm:$0xff] }
 0x635   :  { %v5949_v31 = vmul.f32 %v5942_v63, %v5913_v55  ;;  %v5950_v41 = vmul.f32 %v5946_v16, %v5915_v45  ;;  %v14106_v51 = vadd.f32 %v14003_v35, %v6120_v11  ;;  %v7982_v34 = vadd.f32 %v7968_v22, %v7966_v38  ;;  %v15093_v45 = vld [vmem:[#allocation42_spill] sm:$0xff] }
 0x636   :  { %15089 = vst [vmem:[#allocation24_spill] sm:$0xff] %v14103_v14  ;;  %v7969_v47 = vmul.f32 %v14103_v14, %v14103_v14  ;;  %v5970_v4 = vmul.f32 %v5942_v63, %v15091_v26  ;;  %v5971_v62 = vmul.f32 %v5946_v16, %v15092_v30  ;;  %v7948_v37 = vadd.f32 %v14103_v14, %v7947_v40  ;;  %v15096_v26 = vld [vmem:[#allocation59_spill] sm:$0xff]  ;;  %v15098_v40 = vld [vmem:[#allocation61_spill] sm:$0xff] }
 0x637   :  { %15090 = vst [vmem:[#allocation26_spill] sm:$0xff] %v14106_v51  ;;  %v5953_v39 = vcombine.low %v5949_v31, %v5950_v41  ;;  %v7970_v61 = vmul.f32 %v14106_v51, %v14106_v51  ;;  %v6129_v55 = vpop.f32.mrb[44].mxu0  ;;  %v5972_v44 = vmul.f32 %v5942_v63, %v15093_v45  ;;  %v7957_v35 = vadd.f32 %v14106_v51, %v7956_v43 }
 0x638   :  { %v14118_v20 = vadd.f32 %v14005_v7, %v6129_v55  ;;  %v6131_v22 = vpop.f32.mrb[45].mxu0  ;;  %v5973_v38 = vmul.f32 %v5946_v16, %v15095_v57  ;;  %v5974_v11 = vmul.f32 %v5942_v63, %v15096_v26  ;;  %v7974_v31 = vadd.f32 %v7973_v48, %v7969_v47  ;;  %v14133_v7 = vld [vmem:[%s14298_s6] sm:$0x3]  ;;  %v15100_v55 = vld [vmem:[#allocation62_spill] sm:$0xff]  ;;  %s11161_s6 = smov [#allocation6]  }
 0x639   :  { %v5960_v41 = vrot.slane %v5953_v39, %v14062_v19  ;;  %v14124_v30 = vadd.f32 %v14007_v42, %v6131_v22  ;;  %v5975_v14 = vmul.f32 %v5946_v16, %v15098_v40  ;;  %15099 = vst [vmem:[#allocation64_spill] sm:$0xff] %v14133_v7  ;;  %v5976_v57 = vmul.f32 %v5942_v63, %v15100_v55  ;;  %v15101_v26 = vld [vmem:[#allocation47_spill] sm:$0xff]  ;;  %s9432_s26 = sshll.u32 %s11161_s6, 4  ;;  %s9433_s26 = int_to_ptr.vmem [resolvable:$true] %s9432_s26 }
 0x63a   :  { %15094 = vst [vmem:[#allocation22_spill] sm:$0xff] %v14118_v20  ;;  %v7949_v45 = vadd.f32 %v14118_v20, %v7948_v37  ;;  %v7971_v43 = vmul.f32 %v14118_v20, %v14118_v20  ;;  %v5977_v39 = vmul.f32 %v5946_v16, %v15101_v26  ;;  %v7983_v42 = vadd.f32 %v7982_v34, %v7970_v61  ;;  %s11132_s27 = scalar_lea.vmem %s9433_s26, 2048  ;;  %p11137_p9 = scmp.lt.s32.totalorder %s9433_s26, %s9433_s26 }
 0x63b   :  { %15097 = vst [vmem:[#allocation63_spill] sm:$0xff] %v14124_v30  ;;  %v5967_v48 = vrot.slane %v5960_v41, %v14062_v19  ;;  %v7958_v47 = vadd.f32 %v14124_v30, %v7957_v35  ;;  %v7972_v37 = vmul.f32 %v14124_v30, %v14124_v30  ;;  %p11133_p8 = scmp.ne.s32.totalorder %s9433_s26, %s11132_s27  ;;  %p11138_p10 = scmp.lt.s32.totalorder %s11132_s27, %s11132_s27 }
 0x63c   :  { %v7950_v22 = vrot.slane %v7949_v45, 4  ;;  %v7975_v40 = vadd.f32 %v7974_v31, %v7971_v43 }
 0x63d   :  { %v7959_v20 = vrot.slane %v7958_v47, 4  ;;  %v7984_v51 = vadd.f32 %v7983_v42, %v7972_v37  ;;  %v5969_v2 = vsub.f32 %v14133_v7, %v5967_v48  ;;  %p11139_p11 = por %p11138_p10, %p11137_p9 }
 0x63e   :  { %v7951_v15 = vadd.f32 %v7950_v22, %v7949_v45  ;;  %v7976_v12 = vrot.slane %v7975_v40, 4 }
 0x63f   :  { %v7960_v10 = vadd.f32 %v7959_v20, %v7958_v47  ;;  %v7985_v63 = vrot.slane %v7984_v51, 4  ;;  %v5982_v16 = vrot.slane %v5969_v2, %v14077_v52  ;;  %v5986_v41 = vrot.slane %v5969_v2, %v14079_v29  ;;  %p11140_p12 = pnand %p11139_p11, %p11133_p8 }
 0x640   :  { %v7952_v34 = vrot.slane %v7951_v15, 2  ;;  %v7977_v61 = vadd.f32 %v7976_v12, %v7975_v40 }
 0x641   :  { %v7961_v35 = vrot.slane %v7960_v10, 2  ;;  %v7986_v55 = vadd.f32 %v7985_v63, %v7984_v51  ;;  %v5989_v26 = vadd.f32 %v5982_v16, %v5970_v4  ;;  %v5990_v30 = vadd.f32 %v5986_v41, %v5971_v62 }
 0x642   :  { %v7953_v19 = vadd.f32 %v7952_v34, %v7951_v15  ;;  %v7978_v31 = vrot.slane %v7977_v61, 2  ;;  %v5991_v43 = vadd.f32 %v5982_v16, %v5972_v44  ;;  %v5992_v42 = vadd.f32 %v5986_v41, %v5973_v38 }
 0x643   :  { %v7962_v37 = vadd.f32 %v7961_v35, %v7960_v10  ;;  %v7987_v48 = vrot.slane %v7986_v55, 2  ;;  %v5993_v45 = vadd.f32 %v5982_v16, %v5974_v11  ;;  %v5994_v22 = vadd.f32 %v5986_v41, %v5975_v14 }
 0x644   :  { %v7954_v20 = vrot.slane %v7953_v19, 1  ;;  %v7979_v47 = vadd.f32 %v7978_v31, %v7977_v61  ;;  %v5995_v7 = vadd.f32 %v5982_v16, %v5976_v57  ;;  %v5996_v52 = vadd.f32 %v5986_v41, %v5977_v39  ;;  %v15119_v31 = vld [vmem:[#allocation10_spill] sm:$0xff] }
 0x645   :  { %v7963_v50 = vrot.slane %v7962_v37, 1  ;;  %v7988_v2 = vadd.f32 %v7987_v48, %v7986_v55  ;;  %v5997_v29 = vmax.f32 %v5989_v26, 0.0  ;;  %v5998_v12 = vmax.f32 %v5990_v30, 0.0  ;;  %v15117_v55 = vld [vmem:[#allocation99_spill] sm:$0xff]  ;;  %v15118_v26 = vld [vmem:[#allocation25_spill] sm:$0xff]  ;;  %v15123_v48 = vld [vmem:[#allocation38_spill] sm:$0xff] }
 0x646   :  { %v7980_v40 = vrot.slane %v7979_v47, 1  ;;  %v5999_v51 = vmax.f32 %v5991_v43, 0.0  ;;  %v6000_v4 = vmax.f32 %v5992_v42, 0.0  ;;  %v6001_v15 = vmax.f32 %v5993_v45, 0.0  ;;  %v15120_v43 = vld [vmem:[#allocation9_spill] sm:$0xff]  ;;  %v15121_v42 = vld [vmem:[#allocation18_spill] sm:$0xff] }
 0x647   :  { %v7989_v62 = vrot.slane %v7988_v2, 1  ;;  %v6002_v63 = vmax.f32 %v5994_v22, 0.0  ;;  %6005 = vst [vmem:[#allocation6] sm:$0xff] %v5997_v29  ;;  %6006 = vst [vmem:[#allocation6 + $0x8] sm:$0xff] %v5998_v12  ;;  %v7955_v10 = vadd.f32 %v7954_v20, %v7953_v19  ;;  %v6003_v38 = vmax.f32 %v5995_v7, 0.0  ;;  %v15124_v45 = vld [vmem:[#allocation49_spill] sm:$0xff] }
 0x648   :  { %v7981_v44 = vadd.f32 %v7980_v40, %v7979_v47  ;;  %v6004_v14 = vmax.f32 %v5996_v52, 0.0  ;;  %6007 = vst [vmem:[#allocation6 + $0x10] sm:$0xff] %v5999_v51  ;;  %6008 = vst [vmem:[#allocation6 + $0x18] sm:$0xff] %v6000_v4  ;;  %v7964_v11 = vadd.f32 %v7963_v50, %v7962_v37  ;;  %v15122_v37 = vld [vmem:[#allocation41_spill] sm:$0xff]  ;;  %v15125_v22 = vld [vmem:[#allocation52_spill] sm:$0xff] }
 0x649   :  { %v7990_v57 = vadd.f32 %v7989_v62, %v7988_v2  ;;  %6009 = vst [vmem:[#allocation6 + $0x20] sm:$0xff] %v6001_v15  ;;  %6010 = vst [vmem:[#allocation6 + $0x28] sm:$0xff] %v6002_v63  ;;  %v15126_v20 = vld [vmem:[#allocation55_spill] sm:$0xff]  ;;  %v15127_v47 = vld [vmem:[#allocation48_spill] sm:$0xff] }
 0x64a   :  { %v7991_v30 = vsel %vm4575_vm2, %v7955_v10, %v7981_v44  ;;  %6011 = vst [vmem:[#allocation6 + $0x30] sm:$0xff] %v6003_v38  ;;  %6012 = vst [vmem:[#allocation6 + $0x38] sm:$0xff] %v6004_v14  ;;  %v15128_v2 = vld [vmem:[#allocation44_spill] sm:$0xff]  ;;  %v15129_v12 = vld [vmem:[#allocation51_spill] sm:$0xff] }
 0x64b   :  { %v14145_v39 = vand.u32 4294901760, %v7991_v30  ;;  %v7992_v16 = vsel %vm4575_vm2, %v7964_v11, %v7990_v57  ;;  %v15130_v40 = vld [vmem:[#allocation54_spill] sm:$0xff]  ;;  %v15133_v62 = vld [vmem:[#allocation43_spill] sm:$0xff]  ;;  %v15134_v15 = vld [vmem:[#allocation53_spill] sm:$0xff] }
 0x64c   :  { %v14148_v29 = vand.u32 4294901760, %v7992_v16  ;;  %v15131_v51 = vld [vmem:[#allocation58_spill] sm:$0xff]  ;;  %v15135_v63 = vld [vmem:[#allocation57_spill] sm:$0xff]  ;;  %v15136_v10 = vld [vmem:[#allocation60_spill] sm:$0xff] }
 0x64d   :  { %v14151_v19 = vsub.f32 %v7991_v30, %v14145_v39  ;;  %v15132_v4 = vld [vmem:[#allocation50_spill] sm:$0xff]  ;;  %v15137_v44 = vld [vmem:[#allocation65_spill] sm:$0xff] }
 0x64e   :  { %v8090_v52 = vsub.f32 %v7992_v16, %v14148_v29 }
 0x64f   :  { %v8097_v50 = vand.u32 4294901760, %v14151_v19 }
 0x650   :  { %v8091_v7 = vand.u32 4294901760, %v8090_v52 }
 0x651   :  { %v8098_v41 = vsub.f32 %v14151_v19, %v8097_v50 }
 0x652   :  { %v8092_v34 = vsub.f32 %v8090_v52, %v8091_v7 }
 0x653   :  { %v8099_v35 = vand.u32 4294901760, %v8098_v41 }
 0x654   :  { %v8093_v61 = vand.u32 4294901760, %v8092_v34 }
 0x656   :  { %8094 = vmatprep.mubr.f32.mxu0 %v8093_v61 }
 0x657   :  { %8100 = vmatmul.mubr.f32.vlgmr.msra.gmra.mrb[46].mxu0 %v8099_v35 }
 0x658   :  { %10531 = vmatpush3.bf16.msra.mxu0 %v13311_v59  ;;  %8330 = vmatprep.mubr.f32.mxu0 %v14148_v29  ;;  %v15102_v59 = vld [vmem:[#allocation86_spill] sm:$0xff] }
 0x659   :  { %10533 = vmatprep.subr.bf16.mxu0 %v14972_v3  ;;  %v15113_v3 = vld [vmem:[#allocation97_spill] sm:$0xff] }
 0x65c   :  { %10535 = vmatpush3.bf16.msra.mxu0 %v13370_v13  ;;  %v15103_v13 = vld [vmem:[#allocation87_spill] sm:$0xff] }
 0x65d   :  { %10537 = vmatprep.subr.bf16.mxu0 %v13390_v53  ;;  %v15104_v53 = vld [vmem:[#allocation88_spill] sm:$0xff] }
 0x660   :  { %10539 = vmatpush3.bf16.msra.mxu0 %v14973_v17  ;;  %v15114_v17 = vld [vmem:[#allocation40_spill] sm:$0xff] }
 0x661   :  { %10541 = vmatprep.subr.bf16.mxu0 %v13439_v18  ;;  %v15105_v18 = vld [vmem:[#allocation89_spill] sm:$0xff] }
 0x664   :  { %10543 = vmatpush3.bf16.msra.mxu0 %v13454_v33  ;;  %v15106_v33 = vld [vmem:[#allocation90_spill] sm:$0xff] }
 0x665   :  { %10545 = vmatprep.subr.bf16.mxu0 %v14974_v60  ;;  %v15115_v60 = vld [vmem:[#allocation46_spill] sm:$0xff] }
 0x668   :  { %10547 = vmatpush3.bf16.msra.mxu0 %v14975_v9  ;;  %v15116_v9 = vld [vmem:[#allocation98_spill] sm:$0xff] }
 0x669   :  { %10549 = vmatprep.subr.bf16.mxu0 %v13525_v54  ;;  %v15107_v54 = vld [vmem:[#allocation91_spill] sm:$0xff] }
 0x66c   :  { %10551 = vmatpush3.bf16.msra.mxu0 %v13541_v5  ;;  %v15109_v5 = vld [vmem:[#allocation93_spill] sm:$0xff] }
 0x66d   :  { %10553 = vmatprep.subr.bf16.mxu0 %v13561_v36  ;;  %v15110_v36 = vld [vmem:[#allocation94_spill] sm:$0xff] }
 0x670   :  { %10555 = vmatpush3.bf16.msra.mxu0 %v13569_v32  ;;  %v15108_v32 = vld [vmem:[#allocation92_spill] sm:$0xff] }
 0x671   :  { %10557 = vmatprep.subr.bf16.mxu0 %v13578_v23  ;;  %v15111_v23 = vld [vmem:[#allocation95_spill] sm:$0xff] }
 0x674   :  { %10559 = vmatpush3.bf16.msra.mxu0 %v13590_v8  ;;  %v15112_v8 = vld [vmem:[#allocation96_spill] sm:$0xff] }
 0x675   :  { %10561 = vmatprep.subr.bf16.mxu0 %v15102_v59 }
 0x677   :  { %8332 = vmatmul.mubr.f32.vlgmr.msra.gmra.mrb[48].mxu0 %v14145_v39 }
 0x678   :  { %10563 = vmatpush3.bf16.msra.mxu0 %v15103_v13  ;;  %8467 = vmatprep.mubr.f32.mxu0 %v8090_v52 }
 0x679   :  { %10565 = vmatprep.subr.bf16.mxu0 %v15104_v53 }
 0x67c   :  { %10567 = vmatpush3.bf16.msra.mxu0 %v15105_v18 }
 0x67d   :  { %10569 = vmatprep.subr.bf16.mxu0 %v15106_v33 }
 0x680   :  { %10571 = vmatpush3.bf16.msra.mxu0 %v15107_v54 }
 0x681   :  { %10573 = vmatprep.subr.bf16.mxu0 %v15108_v32 }
 0x684   :  { %10575 = vmatpush3.bf16.msra.mxu0 %v15109_v5 }
 0x685   :  { %10577 = vmatprep.subr.bf16.mxu0 %v15110_v36 }
 0x688   :  { %10579 = vmatpush3.bf16.msra.mxu0 %v15111_v23 }
 0x689   :  { %10581 = vmatprep.subr.bf16.mxu0 %v15112_v8 }
 0x68c   :  { %10583 = vmatpush3.bf16.msra.mxu0 %v15113_v3 }
 0x68d   :  { %10585 = vmatprep.subr.bf16.mxu0 %v15114_v17  ;;  %v15142_v17 = vld [vmem:[#allocation36_spill] sm:$0xff] }
 0x690   :  { %10587 = vmatpush3.bf16.msra.mxu0 %v15115_v60  ;;  %v15143_v60 = vld [vmem:[#allocation80_spill] sm:$0xff] }
 0x691   :  { %10589 = vmatprep.subr.bf16.mxu0 %v15116_v9  ;;  %v15144_v9 = vld [vmem:[#allocation31_spill] sm:$0xff] }
 0x694   :  { %10591 = vmatpush3.bf16.msra.mxu0 %v15117_v55  ;;  %v15145_v55 = vld [vmem:[#allocation21_spill] sm:$0xff] }
 0x695   :  { %10593 = vmatprep.subr.bf16.mxu0 %v14976_v24 }
 0x697   :  { %8470 = vmatmul.mubr.f32.vlgmr.msra.gmra.mrb[50].mxu0 %v14151_v19 }
 0x698   :  { %10595 = vmatpush3.bf16.msra.mxu0 %v14977_v6  ;;  %8574 = vmatprep.mubr.f32.mxu0 %v8091_v7 }
 0x699   :  { %10597 = vmatprep.subr.bf16.mxu0 %v14978_v58 }
 0x69c   :  { %10599 = vmatpush3.bf16.msra.mxu0 %v14979_v21 }
 0x69d   :  { %10601 = vmatprep.subr.bf16.mxu0 %v14980_v0 }
 0x6a0   :  { %10603 = vmatpush3.bf16.msra.mxu0 %v14981_v46 }
 0x6a1   :  { %10605 = vmatprep.subr.bf16.mxu0 %v14982_v28 }
 0x6a4   :  { %10607 = vmatpush3.bf16.msra.mxu0 %v14983_v25 }
 0x6a5   :  { %10609 = vmatprep.subr.bf16.mxu0 %v14984_v27 }
 0x6a8   :  { %10611 = vmatpush3.bf16.msra.mxu0 %v14985_v56 }
 0x6a9   :  { %10613 = vmatprep.subr.bf16.mxu0 %v14986_v49 }
 0x6ac   :  { %10615 = vmatpush3.bf16.msra.mxu0 %v14987_v1 }
 0x6ad   :  { %10617 = vmatprep.subr.bf16.mxu0 %v15118_v26 }
 0x6b0   :  { %10619 = vmatpush3.bf16.msra.mxu0 %v15119_v31 }
 0x6b1   :  { %10621 = vmatprep.subr.bf16.mxu0 %v15120_v43 }
 0x6b4   :  { %10623 = vmatpush3.bf16.msra.mxu0 %v15121_v42 }
 0x6b5   :  { %10625 = vmatprep.subr.bf16.mxu0 %v15122_v37  ;;  %v15147_v37 = vld [vmem:[#allocation17_spill] sm:$0xff] }
 0x6b7   :  { %8578 = vmatmul.mubr.f32.vlgmr.msra.gmra.mrb[52].mxu0 %v8097_v50 }
 0x6b8   :  { %10627 = vmatpush3.bf16.msra.mxu0 %v15123_v48  ;;  %8744 = vmatprep.mubr.f32.mxu0 %v14148_v29 }
 0x6b9   :  { %10629 = vmatprep.subr.bf16.mxu0 %v15124_v45 }
 0x6bc   :  { %10631 = vmatpush3.bf16.msra.mxu0 %v15125_v22 }
 0x6bd   :  { %10633 = vmatprep.subr.bf16.mxu0 %v15126_v20  ;;  %v15148_v20 = vld [vmem:[#allocation19_spill] sm:$0xff] }
 0x6c0   :  { %10635 = vmatpush3.bf16.msra.mxu0 %v15127_v47 }
 0x6c1   :  { %10637 = vmatprep.subr.bf16.mxu0 %v15128_v2  ;;  %v15149_v2 = vld [vmem:[#allocation35_spill] sm:$0xff] }
 0x6c4   :  { %10639 = vmatpush3.bf16.msra.mxu0 %v15129_v12 }
 0x6c5   :  { %10641 = vmatprep.subr.bf16.mxu0 %v15130_v40  ;;  %v15150_v40 = vld [vmem:[#allocation20_spill] sm:$0xff] }
 0x6c8   :  { %10643 = vmatpush3.bf16.msra.mxu0 %v15131_v51 }
 0x6c9   :  { %10645 = vmatprep.subr.bf16.mxu0 %v15132_v4 }
 0x6cc   :  { %10647 = vmatpush3.bf16.msra.mxu0 %v15133_v62 }
 0x6cd   :  { %10649 = vmatprep.subr.bf16.mxu0 %v15134_v15 }
 0x6d0   :  { %10651 = vmatpush3.bf16.msra.mxu0 %v15135_v63 }
 0x6d1   :  { %10653 = vmatprep.subr.bf16.mxu0 %v15136_v10 }
 0x6d4   :  { %10655 = vmatpush3.bf16.msra.mxu0 %v15137_v44  ;;  %v15151_v44 = vld [vmem:[#allocation64_spill] sm:$0xff] }
 0x6d5   :  { %10657 = vmatprep.subr.bf16.mxu0 %v14976_v24  ;;  %v15138_v24 = vld [vmem:[#allocation70_spill] sm:$0xff] }
 0x6d7   :  { %8746 = vmatmul.mubr.f32.vlgmr.msra.gmra.mrb[54].mxu0 %v14145_v39 }
 0x6d8   :  { %10659 = vmatpush3.bf16.msra.mxu0 %v14977_v6  ;;  %8848 = vmatprep.mubr.f32.mxu0 %v14148_v29  ;;  %v15139_v6 = vld [vmem:[#allocation77_spill] sm:$0xff] }
 0x6d9   :  { %10661 = vmatprep.subr.bf16.mxu0 %v14978_v58  ;;  %v15140_v58 = vmov 0.0  }
 0x6dc   :  { %10663 = vmatpush3.bf16.msra.mxu0 %v14979_v21  ;;  %v15141_v21 = vld [vmem:[#allocation28_spill] sm:$0xff] }
 0x6dd   :  { %10665 = vmatprep.subr.bf16.mxu0 %v14980_v0 }
 0x6e0   :  { %10667 = vmatpush3.bf16.msra.mxu0 %v14981_v46 }
 0x6e1   :  { %10669 = vmatprep.subr.bf16.mxu0 %v14982_v28 }
 0x6e4   :  { %10671 = vmatpush3.bf16.msra.mxu0 %v14983_v25 }
 0x6e5   :  { %10673 = vmatprep.subr.bf16.mxu0 %v14984_v27 }
 0x6e8   :  { %10675 = vmatpush3.bf16.msra.mxu0 %v14985_v56 }
 0x6e9   :  { %10677 = vmatprep.subr.bf16.mxu0 %v14986_v49 }
 0x6ec   :  { %10679 = vmatpush3.bf16.msra.mxu0 %v14987_v1 }
 0x6ed   :  { %10681 = vmatprep.subr.bf16.mxu0 %v15118_v26  ;;  %v15146_v26 = vld [vmem:[#allocation16_spill] sm:$0xff] }
 0x6f0   :  { %10683 = vmatpush3.bf16.msra.mxu0 %v15119_v31 }
 0x6f1   :  { %10685 = vmatprep.subr.bf16.mxu0 %v15120_v43 }
 0x6f4   :  { %10687 = vmatpush3.bf16.msra.mxu0 %v15121_v42 }
 0x6f5   :  { %8868 = vmatprep.subr.mxu0 %v15138_v24 }
 0x6f7   :  { %8850 = vmatmul.mubr.f32.vlgmr.msra.gmra.mrb[56].mxu0 %v14145_v39 }
 0x6f8   :  { %8870 = vmatpush1.msra.mxu0 %v15139_v6  ;;  %8933 = vmatprep.mubr.f32.mxu0 %v15140_v58 }
 0x6f9   :  { %8950 = vmatprep.subr.mxu0 %v15141_v21  ;;  %v15153_v21 = vld [vmem:[#allocation13_spill] sm:$0xff] }
 0x72a   :  { %v9694_v0 = vpop.f32.mrb[46].mxu0 }
 0x72b   :  { %v9695_v46 = vpop.f32.mrb[47].mxu0 }
 0x72c   :  { %v9696_v28 = vadd.f32 %v9695_v46, %v9694_v0  ;;  %v15154_v46 = vld [vmem:[#allocation11_spill] sm:$0xff] }
 0x74a   :  { %v9729_v25 = vpop.f32.mrb[48].mxu0 }
 0x74b   :  { %v9730_v27 = vpop.f32.mrb[49].mxu0 }
 0x74c   :  { %v9731_v56 = vadd.f32 %v9730_v27, %v9729_v25  ;;  %v15155_v25 = vld [vmem:[#allocation15_spill] sm:$0xff] }
 0x74e   :  { %v8334_v49 = vadd.f32 %v9731_v56, %v9696_v28 }
 0x76a   :  { %v9764_v1 = vpop.f32.mrb[50].mxu0 }
 0x76b   :  { %v9765_v38 = vpop.f32.mrb[51].mxu0 }
 0x76c   :  { %v9766_v14 = vadd.f32 %v9765_v38, %v9764_v1  ;;  %v15156_v1 = vld [vmem:[#allocation24_spill] sm:$0xff] }
 0x76e   :  { %v8472_v11 = vadd.f32 %v9766_v14, %v8334_v49  ;;  %v15157_v14 = vld [vmem:[#allocation26_spill] sm:$0xff] }
 0x78a   :  { %v9799_v57 = vpop.f32.mrb[52].mxu0 }
 0x78b   :  { %v9800_v30 = vpop.f32.mrb[53].mxu0 }
 0x78c   :  { %v9801_v39 = vadd.f32 %v9800_v30, %v9799_v57  ;;  %v15158_v57 = vld [vmem:[#allocation22_spill] sm:$0xff] }
 0x78e   :  { %v8580_v16 = vadd.f32 %v9801_v39, %v8472_v11  ;;  %v15159_v39 = vld [vmem:[#allocation63_spill] sm:$0xff] }
 0x7aa   :  { %v9834_v29 = vpop.f32.mrb[54].mxu0 }
 0x7ab   :  { %v9835_v19 = vpop.f32.mrb[55].mxu0 }
 0x7ac   :  { %v9836_v52 = vadd.f32 %v9835_v19, %v9834_v29 }
 0x7ae   :  { %v8748_v50 = vadd.f32 %v9836_v52, %v8580_v16 }
 0x7ca   :  { %v9869_v7 = vpop.f32.mrb[56].mxu0 }
 0x7cb   :  { %v9870_v41 = vpop.f32.mrb[57].mxu0 }
 0x7cc   :  { %v9871_v34 = vadd.f32 %v9870_v41, %v9869_v7 }
 0x7ce   :  { %v8852_v61 = vadd.f32 %v9871_v34, %v8748_v50 }
 0x7d0   :  { %v8855_v35 = vmul.f32 0.0009765625, %v8852_v61 }
 0x7d2   :  { %v8856_v59 = vmul.f32 %v8855_v35, %v8855_v35 }
 0x7d4   :  { %v8858_v13 = vrot.slane %v8856_v59, 7 }
 0x7d6   :  { %v8860_v53 = vsub.f32 %v8855_v35, %v8858_v13 }
 0x7d8   :  { %v8861_v18 = vadd.f32 1e-05, %v8860_v53 }
 0x7da   :  { %11108 = vrsqrt.f32 %v8861_v18 }
 0x7e4   :  { %v11109_v33 = vpop.eup %11108 }
 0x7e5   :  { %v8863_v54 = vsel %vm4575_vm2, %v8855_v35, %v11109_v33 }
 0x7e6   :  { %v8865_v32 = vsel %vm5449_vm3, %v8863_v54, 0 }
 0x7e7   :  { %v8934_v5 = vand.u32 4294901760, %v8865_v32 }
 0x7e9   :  { %v8935_v36 = vsub.f32 %v8865_v32, %v8934_v5 }
 0x7eb   :  { %v8936_v23 = vand.u32 4294901760, %v8935_v36 }
 0x7ed   :  { %v8937_v8 = vsub.f32 %v8935_v36, %v8936_v23 }
 0x7ef   :  { %v8938_v3 = vand.u32 4294901760, %v8937_v8 }
 0x7f1   :  { %8939 = vmatmul.mubr.f32.vlgmr.msra.gmra.mrb[58].mxu0 %v8938_v3 }
 0x7f2   :  { %8956 = vmatpush1.msra.mxu0 %v15142_v17  ;;  %9019 = vmatprep.mubr.f32.mxu0 %v15140_v58 }
 0x7f3   :  { %9029 = vmatprep.subr.mxu0 %v15143_v60 }
 0x7f9   :  { %9021 = vmatmul.mubr.f32.vlgmr.msra.gmra.mrb[58].mxu0 %v8934_v5 }
 0x7fa   :  { %9032 = vmatpush1.msra.mxu0 %v15144_v9  ;;  %9095 = vmatprep.mubr.f32.mxu0 %v15140_v58 }
 0x7fb   :  { %9105 = vmatprep.subr.mxu0 %v15138_v24 }
 0x801   :  { %9098 = vmatmul.mubr.f32.vlgmr.msra.gmra.mrb[58].mxu0 %v8935_v36 }
 0x802   :  { %9107 = vmatpush1.msra.mxu0 %v15139_v6  ;;  %9170 = vmatprep.mubr.f32.mxu0 %v15140_v58 }
 0x803   :  { %9183 = vmatprep.subr.mxu0 %v15145_v55 }
 0x809   :  { %9174 = vmatmul.mubr.f32.vlgmr.msra.gmra.mrb[58].mxu0 %v8936_v23 }
 0x80a   :  { %9187 = vmatpush1.msra.mxu0 %v15146_v26  ;;  %9250 = vmatprep.mubr.f32.mxu0 %v15140_v58 }
 0x80b   :  { %9259 = vmatprep.subr.mxu0 %v15138_v24 }
 0x811   :  { %9252 = vmatmul.mubr.f32.vlgmr.msra.gmra.mrb[58].mxu0 %v8934_v5 }
 0x812   :  { %9261 = vmatpush1.msra.mxu0 %v15139_v6  ;;  %9324 = vmatprep.mubr.f32.mxu0 %v15140_v58  ;;  %v15152_v6 = vld [vmem:[#allocation27_spill] sm:$0xff] }
 0x819   :  { %9326 = vmatmul.mubr.f32.vlgmr.msra.gmra.mrb[58].mxu0 %v8934_v5 }
 0x8ec   :  { %v9327_v31 = vpop.f32.mrb[58].mxu0 }
 0x8ed   :  { %v9329_v43 = vpop.f32.mrb[59].mxu0 }
 0x8ee   :  { %v9334_v42 = vcombine.low %v9327_v31, %v9329_v43 }
 0x8f0   :  { %v9341_v48 = vrot.slane %v9334_v42, %v15147_v37 }
 0x8f2   :  { %v9342_v45 = vcombine.high %v9341_v48, %v9341_v48 }
 0x8f4   :  { %v9349_v22 = vrot.slane %v9342_v45, %v15147_v37 }
 0x8f6   :  { %v9351_v47 = vmul.f32 %v9349_v22, %v15148_v20 }
 0x8f8   :  { %v9356_v12 = vrot.slane %v9351_v47, %v15149_v2  ;;  %v9360_v51 = vrot.slane %v9351_v47, %v15150_v40 }
 0x8fa   :  { %v9363_v4 = vmul.f32 %v9356_v12, %v9327_v31  ;;  %v9364_v62 = vmul.f32 %v9360_v51, %v9329_v43  ;;  %v9384_v58 = vmul.f32 %v15152_v6, %v9356_v12  ;;  %v9385_v0 = vmul.f32 %v15153_v21, %v9360_v51 }
 0x8fb   :  { %v9386_v28 = vmul.f32 %v15154_v46, %v9356_v12  ;;  %v9387_v27 = vmul.f32 %v15155_v25, %v9360_v51  ;;  %v9388_v38 = vmul.f32 %v15156_v1, %v9356_v12  ;;  %v9389_v11 = vmul.f32 %v15157_v14, %v9360_v51 }
 0x8fc   :  { %v9367_v15 = vcombine.low %v9363_v4, %v9364_v62  ;;  %v9390_v30 = vmul.f32 %v15158_v57, %v9356_v12  ;;  %v9391_v16 = vmul.f32 %v15159_v39, %v9360_v51 }
 0x8fe   :  { %v9374_v63 = vrot.slane %v9367_v15, %v15147_v37 }
 0x900   :  { %v9381_v10 = vrot.slane %v9374_v63, %v15147_v37 }
 0x902   :  { %v9383_v24 = vsub.f32 %v15151_v44, %v9381_v10 }
 0x904   :  { %v9396_v56 = vrot.slane %v9383_v24, %v15149_v2  ;;  %v9400_v49 = vrot.slane %v9383_v24, %v15150_v40 }
 0x906   :  { %v9403_v29 = vadd.f32 %v9396_v56, %v9384_v58  ;;  %v9404_v19 = vadd.f32 %v9400_v49, %v9385_v0  ;;  %v9405_v52 = vadd.f32 %v9396_v56, %v9386_v28  ;;  %v9406_v50 = vadd.f32 %v9400_v49, %v9387_v27 }
 0x907   :  { %v9407_v7 = vadd.f32 %v9396_v56, %v9388_v38  ;;  %v9408_v41 = vadd.f32 %v9400_v49, %v9389_v11  ;;  %v9409_v34 = vadd.f32 %v9396_v56, %v9390_v30  ;;  %v9410_v61 = vadd.f32 %v9400_v49, %v9391_v16 }
 0x908   :  { %v9411_v35 = vmax.f32 %v9403_v29, 0.0  ;;  %v9412_v59 = vmax.f32 %v9404_v19, 0.0  ;;  %v9413_v13 = vmax.f32 %v9405_v52, 0.0  ;;  %v9414_v53 = vmax.f32 %v9406_v50, 0.0 }
 0x909   :  { %v9415_v18 = vmax.f32 %v9407_v7, 0.0  ;;  %v9416_v33 = vmax.f32 %v9408_v41, 0.0  ;;  %v9417_v54 = vmax.f32 %v9409_v34, 0.0  ;;  %v9418_v32 = vmax.f32 %v9410_v61, 0.0 }
 0x90a   :  { %9419 = vst [vmem:[#allocation6 + $0x40] sm:$0xff] %v9411_v35  ;;  %9420 = vst [vmem:[#allocation6 + $0x48] sm:$0xff] %v9412_v59 }
 0x90b   :  { %9421 = vst [vmem:[#allocation6 + $0x50] sm:$0xff] %v9413_v13  ;;  %9422 = vst [vmem:[#allocation6 + $0x58] sm:$0xff] %v9414_v53 }
 0x90c   :  { %9423 = vst [vmem:[#allocation6 + $0x60] sm:$0xff] %v9415_v18  ;;  %9424 = vst [vmem:[#allocation6 + $0x68] sm:$0xff] %v9416_v33 }
 0x90d   :  { %9425 = vst [vmem:[#allocation6 + $0x70] sm:$0xff] %v9417_v54  ;;  %9426 = vst [vmem:[#allocation6 + $0x78] sm:$0xff] %v9418_v32 }
 0x90e   :  { %11143 = shalt.err (!%p11140_p12)
}
 0x90f   :  { %s11144_s30 = scalar_lea.hbm %s14299_s7, 2048 }
 0x910   :  { %p11145_p13 = scmp.ne.s32.totalorder %s14299_s7, %s11144_s30  ;;  %p11148_p0 = scmp.lt.u32.totalorder %s11144_s30, %s14299_s7 }
 0x912   :  { %p11150_p1 = pnand %p11148_p0, %p11145_p13 }
 0x914   :  { %11153 = shalt.err (!%p11150_p1)
}
 0x915   :  { %s11162_s12 = smov 256   ;;  %s11163_s0 = smov 16  }
 0x916   :  { %9438 = dma.vmem_to_hbm [thread:$0]  %s9433_s26, 2048, %s14299_s7, [#allocation5], %s11162_s12, %s11162_s12, %s11163_s0  }
 0x917   :  { %11156 = dma.done.wait [#allocation5], 2048  }
 0x918   :  { %11157 = vsyncadd [#allocation5], 4294965248 }
 0x919   :  { %9442 = vsyncpa [#allocation4], 1 }
 0x91a   :  { %9443 = vsyncpa [#allocation5], 1 }

</bundles_post_ra>
